<compile_context>
chip_gen: v7x
topology: tpu7x:2x2x1
jax: 0.10.0
libtpu: 0.0.40
codegen_flags: <defaults>
</compile_context>

<pallas_src>
import functools

import jax
import jax.numpy as jnp
from jax import lax
from jax.experimental import pallas as pl
from jax.experimental.pallas import tpu as pltpu

EPS = 1e-5


# --------------------------------------------------------------------------- #
# In-kernel helpers
# --------------------------------------------------------------------------- #
def _conv3x3_9c(flat_f32, masks_f32, w_ref, W):
    """3x3 'same' conv on a block of whole images flattened to (M, C).

    flat_f32  : (M, C)  f32 activation slab, M = NB*H*W, channels on lanes
    masks_f32 : (M, 9)  f32 per-tap validity masks (column t = dy*3 + dx)
    w_ref     : (9C, C) bf16 weight ref, rows ordered (dy, dx, cin)
    returns   : (M, C)  f32 conv output
    """
    M, _ = flat_f32.shape
    parts = []
    for dy in range(3):
        for dx in range(3):
            t = dy * 3 + dx
            s = (dy - 1) * W + (dx - 1)              # flat source offset of this tap
            if s == 0:
                r = flat_f32
            else:
                r = pltpu.roll(flat_f32, shift=(-s) % M, axis=0)
            if not (dy == 1 and dx == 1):            # center tap is always valid
                r = r * masks_f32[:, t:t + 1]        # zero out-of-image / cross-image rows
            parts.append(r.astype(jnp.bfloat16))     # cast per tap, BEFORE the concat
    patch = jnp.concatenate(parts, axis=-1)          # (M, 9C) bf16
    # Single MXU matmul per block; K accumulated inside the MXU (no f32 VPU adds).
    return jnp.dot(patch, w_ref[...], preferred_element_type=jnp.float32)


def _stats(acc):
    """Partial BN statistics for this block: (2, C) = [sum, sum of squares] (f32)."""
    return jnp.concatenate(
        [jnp.sum(acc, axis=0, keepdims=True),
         jnp.sum(acc * acc, axis=0, keepdims=True)], axis=0)


def _conv_stats_kernel(x_ref, m_ref, w_ref, y_ref, st_ref, *, W, NB, HW):
    flat = x_ref[...].astype(jnp.float32).reshape(NB * HW, -1)
    acc = _conv3x3_9c(flat, m_ref[...], w_ref, W)
    y_ref[...] = acc.reshape(NB, HW, -1).astype(y_ref.dtype)   # bf16 inter-pass act
    st_ref[0] = _stats(acc)                                    # stats from f32 acc


def _bn_relu_conv_stats_kernel(y1_ref, sc_ref, sh_ref, m_ref, w_ref, y_ref, st_ref,
                               *, W, NB, HW):
    h = y1_ref[...].astype(jnp.float32).reshape(NB * HW, -1)
    h = jnp.maximum(h * sc_ref[...] + sh_ref[...], 0.0)        # folded BN1 + ReLU (f32)
    acc = _conv3x3_9c(h, m_ref[...], w_ref, W)
    y_ref[...] = acc.reshape(NB, HW, -1).astype(y_ref.dtype)
    st_ref[0] = _stats(acc)


# --------------------------------------------------------------------------- #
# Wrapper-side helpers
# --------------------------------------------------------------------------- #
def _build_masks(NB, H, W):
    """Per-tap validity masks (M, 9), tiled over NB images.

    Column t = dy*3 + dx. Built with exact integer arithmetic in the wrapper
    (no in-kernel iota / float floor-div tricks)."""
    h = jnp.repeat(jnp.arange(H, dtype=jnp.int32), W)
    w = jnp.tile(jnp.arange(W, dtype=jnp.int32), H)
    h = jnp.tile(h, NB)
    w = jnp.tile(w, NB)
    h_lo = (h >= 1).astype(jnp.float32)
    h_hi = (h <= H - 2).astype(jnp.float32)
    w_lo = (w >= 1).astype(jnp.float32)
    w_hi = (w <= W - 2).astype(jnp.float32)
    ones = jnp.ones_like(h_lo)
    cols = []
    for dy in range(3):
        for dx in range(3):
            m = ones
            if dy == 0:
                m = m * h_lo
            elif dy == 2:
                m = m * h_hi
            if dx == 0:
                m = m * w_lo
            elif dx == 2:
                m = m * w_hi
            cols.append(m)
    return jnp.stack(cols, axis=1)          # (NB*H*W, 9) f32


def _vmem_bytes(M, C):
    """Rough per-grid-step VMEM footprint (bytes)."""
    bf, f = 2, 4
    return (2 * M * C * bf          # input activation block (bf16), double-buffered
            + 2 * M * C * bf        # output activation block (bf16), double-buffered
            + 2 * 9 * C * C * bf    # weights, double-buffered
            + 2 * M * 9 * f         # tap masks, double-buffered
            + 4 * 2 * C * f         # stats out + BN scale/shift in
            + M * 9 * C * bf        # bf16 patch temporary
            + 3 * M * C * f)        # f32 activation / accumulator / tap temporaries


def _choose_nb(N, HW, C, target_m=512, vmem_budget=20 * 2**20):
    """Images per grid step: fill the MXU (M>=512 when possible), keep >=2 grid
    steps for v7x's two TensorCores, and stay within a conservative VMEM budget."""
    nb = max(1, target_m // max(HW, 1))
    if N >= 2:
        nb = min(nb, N // 2)
    nb = max(1, min(nb, N))
    while nb > 1 and (N % nb != 0 or _vmem_bytes(nb * HW, C) > vmem_budget):
        nb -= 1
    return nb


def resnet_block(x_nchw, w1, w2, g1, b1, g2, b2):
    """x_nchw: (N, C, H, W); w*: (Cout, Cin, 3, 3) PyTorch layout; g*/b*: (C,)."""
    N, C, H, W = x_nchw.shape
    HW = H * W
    f32 = jnp.float32
    NB = _choose_nb(N, HW, C)
    G = N // NB
    M = NB * HW

    # NCHW -> (N, HW, C), lane-dense, bf16 (halves the pass-1 HBM read; conv
    # operands are bf16 on the MXU anyway so numerics are unchanged).
    # TODO(synk): read x NCHW directly in pass 1 with an in-kernel (C, HW) transpose
    # to also drop this wrapper-side input relayout.
    xt = jnp.transpose(x_nchw, (0, 2, 3, 1)).reshape(N, HW, C).astype(jnp.bfloat16)

    # (Cout, Cin, 3, 3) -> (kh, kw, Cin, Cout) -> (9*Cin, Cout), bf16 MXU weights,
    # rows ordered to match the 9-tap patch concat.
    w1s = jnp.transpose(w1, (2, 3, 1, 0)).reshape(9 * C, C).astype(jnp.bfloat16)
    w2s = jnp.transpose(w2, (2, 3, 1, 0)).reshape(9 * C, C).astype(jnp.bfloat16)

    masks = _build_masks(NB, H, W)          # (M, 9) f32, identical for every grid step

    act_spec = pl.BlockSpec((NB, HW, C), lambda i: (i, 0, 0))
    mask_spec = pl.BlockSpec((M, 9), lambda i: (0, 0))
    w_spec = pl.BlockSpec((9 * C, C), lambda i: (0, 0))
    vec_spec = pl.BlockSpec((1, C), lambda i: (0, 0))
    st_spec = pl.BlockSpec((1, 2, C), lambda i: (i, 0, 0))

    y_shape = jax.ShapeDtypeStruct((N, HW, C), jnp.bfloat16)
    st_shape = jax.ShapeDtypeStruct((G, 2, C), f32)

    params = pltpu.CompilerParams(
        dimension_semantics=("parallel",),
        vmem_limit_bytes=int(min(56 * 2**20, max(32 * 2**20, 2 * _vmem_bytes(M, C)))),
    )

    # ---- pass 1: conv1 + per-block BN partial statistics --------------------
    y1, st1 = pl.pallas_call(
        functools.partial(_conv_stats_kernel, W=W, NB=NB, HW=HW),
        grid=(G,),
        in_specs=[act_spec, mask_spec, w_spec],
        out_specs=[act_spec, st_spec],
        out_shape=(y_shape, st_shape),
        compiler_params=params,
    )(xt, masks, w1s)

    def bn_affine(st, g, b):
        # One-pass stats: var = E[x^2] - mean^2; fold BN into per-channel scale/shift.
        cnt = float(N * HW)
        mean = jnp.sum(st[:, 0, :], axis=0) / cnt
        var = jnp.sum(st[:, 1, :], axis=0) / cnt - mean * mean
        scale = g.astype(f32) * lax.rsqrt(var + EPS)
        shift = b.astype(f32) - mean * scale
        return scale.reshape(1, C), shift.reshape(1, C)

    sc1, sh1 = bn_affine(st1, g1, b1)

    # ---- pass 2: BN1 + ReLU + conv2 + per-block BN partial statistics -------
    y2, st2 = pl.pallas_call(
        functools.partial(_bn_relu_conv_stats_kernel, W=W, NB=NB, HW=HW),
        grid=(G,),
        in_specs=[act_spec, vec_spec, vec_spec, mask_spec, w_spec],
        out_specs=[act_spec, st_spec],
        out_shape=(y_shape, st_shape),
        compiler_params=params,
    )(y1, sc1, sh1, masks, w2s)

    sc2, sh2 = bn_affine(st2, g2, b2)

    # ---- epilogue: BN2 + residual, fused by XLA with the NHWC->NCHW relayout --
    bn2 = y2.astype(f32) * sc2.reshape(1, 1, C) + sh2.reshape(1, 1, C)
    return x_nchw + jnp.transpose(bn2.reshape(N, H, W, C), (0, 3, 1, 2))


def resnet_block_ref(x_nchw, w1, w2, g1, b1, g2, b2):
    """Pure-JAX reference mirroring the PyTorch forward (training-mode BN)."""
    def conv(x, w):
        return lax.conv_general_dilated(
            x, w, window_strides=(1, 1), padding=((1, 1), (1, 1)),
            dimension_numbers=("NCHW", "OIHW", "NCHW"))

    def bn(x, g, b):
        mean = jnp.mean(x, axis=(0, 2, 3), keepdims=True)
        var = jnp.mean((x - mean) ** 2, axis=(0, 2, 3), keepdims=True)
        return ((x - mean) * lax.rsqrt(var + EPS) * g.reshape(1, -1, 1, 1)
                + b.reshape(1, -1, 1, 1))

    h = jnp.maximum(bn(conv(x_nchw, w1), g1, b1), 0.0)
    return x_nchw + bn(conv(h, w2), g2, b2)


if __name__ == "__main__":
    # Small deterministic example; C lane-friendly (=128), N=4 so batch-blocking
    # (NB=2) and a 2-step grid are both exercised.
    N, C, H, W = 4, 128, 8, 8
    key = jax.random.PRNGKey(0)
    kx, k1, k2 = jax.random.split(key, 3)

    x = jax.random.normal(kx, (N, C, H, W), jnp.float32)
    fan_in = C * 3 * 3
    w1 = jax.random.normal(k1, (C, C, 3, 3), jnp.float32) / jnp.sqrt(fan_in)
    w2 = jax.random.normal(k2, (C, C, 3, 3), jnp.float32) / jnp.sqrt(fan_in)
    # PyTorch BatchNorm2d default affine init: gamma=1, beta=0.
    g1 = jnp.ones((C,), jnp.float32)
    b1 = jnp.zeros((C,), jnp.float32)
    g2 = jnp.ones((C,), jnp.float32)
    b2 = jnp.zeros((C,), jnp.float32)

    out = jax.jit(resnet_block)(x, w1, w2, g1, b1, g2, b2)
    out = jax.block_until_ready(out)

    ref = resnet_block_ref(x, w1, w2, g1, b1, g2, b2)
    assert out.shape == ref.shape == (N, C, H, W)
    max_err = float(jnp.max(jnp.abs(out - ref)))
    # Tolerance sized for bf16 MXU operands + bf16 inter-pass activations with
    # f32 accumulation and f32 BN statistics.
    if not bool(jnp.allclose(out, ref, atol=5e-2, rtol=2e-2)):
        raise AssertionError(f"Pallas kernel mismatch vs reference: max_err={max_err}")

    print("KERNEL_OK")
</pallas_src>

<mosaic_0001>
module attributes {stable_mosaic.version = 11 : i64} {
  func.func @_conv_stats_kernel(%arg0: i32, %arg1: memref<2x64x128xbf16, #tpu.memory_space<vmem>>, %arg2: memref<128x9xf32, #tpu.memory_space<vmem>>, %arg3: memref<1152x128xbf16, #tpu.memory_space<vmem>>, %arg4: memref<2x64x128xbf16, #tpu.memory_space<vmem>>, %arg5: memref<1x2x128xf32, #tpu.memory_space<vmem>>) attributes {dimension_semantics = [#tpu.dimension_semantics<parallel>], iteration_bounds = array<i64: 2>, scalar_prefetch = 0 : i64, scratch_operands = 0 : i64, tpu.core_type = #tpu.core_type<tc>, window_params = [{transform_indices = @transform_0, window_bounds = array<i64: 2, 64, 128>}, {pipeline_mode = #tpu.pipeline_mode<synchronous>, transform_indices = @transform_1, window_bounds = array<i64: 128, 9>}, {pipeline_mode = #tpu.pipeline_mode<synchronous>, transform_indices = @transform_2, window_bounds = array<i64: 1152, 128>}, {transform_indices = @transform_3, window_bounds = array<i64: 2, 64, 128>}, {transform_indices = @transform_4, window_bounds = array<i64: 1, 2, 128>}]} {
    %c0 = arith.constant 0 : index
    %c0_0 = arith.constant 0 : index
    %c0_1 = arith.constant 0 : index
    %0 = vector.load %arg1[%c0, %c0_0, %c0_1] : memref<2x64x128xbf16, #tpu.memory_space<vmem>>, vector<2x64x128xbf16>
    %1 = arith.extf %0 : vector<2x64x128xbf16> to vector<2x64x128xf32>
    %2 = vector.shape_cast %1 : vector<2x64x128xf32> to vector<128x128xf32>
    %c0_2 = arith.constant 0 : index
    %c0_3 = arith.constant 0 : index
    %3 = vector.load %arg2[%c0_2, %c0_3] : memref<128x9xf32, #tpu.memory_space<vmem>>, vector<128x9xf32>
    %c9_i32 = arith.constant 9 : i32
    %4 = tpu.dynamic_rotate %2 by %c9_i32 dim 0 : vector<128x128xf32>, i32 -> vector<128x128xf32>
    %5 = vector.extract_strided_slice %3 {offsets = [0, 0], sizes = [128, 1], strides = [1, 1]} : vector<128x9xf32> to vector<128x1xf32>
    %6 = vector.broadcast %5 : vector<128x1xf32> to vector<128x128xf32>
    %7 = arith.mulf %4, %6 : vector<128x128xf32>
    %8 = arith.truncf %7 : vector<128x128xf32> to vector<128x128xbf16>
    %c8_i32 = arith.constant 8 : i32
    %9 = tpu.dynamic_rotate %2 by %c8_i32 dim 0 : vector<128x128xf32>, i32 -> vector<128x128xf32>
    %10 = vector.extract_strided_slice %3 {offsets = [0, 1], sizes = [128, 1], strides = [1, 1]} : vector<128x9xf32> to vector<128x1xf32>
    %11 = vector.broadcast %10 : vector<128x1xf32> to vector<128x128xf32>
    %12 = arith.mulf %9, %11 : vector<128x128xf32>
    %13 = arith.truncf %12 : vector<128x128xf32> to vector<128x128xbf16>
    %c7_i32 = arith.constant 7 : i32
    %14 = tpu.dynamic_rotate %2 by %c7_i32 dim 0 : vector<128x128xf32>, i32 -> vector<128x128xf32>
    %15 = vector.extract_strided_slice %3 {offsets = [0, 2], sizes = [128, 1], strides = [1, 1]} : vector<128x9xf32> to vector<128x1xf32>
    %16 = vector.broadcast %15 : vector<128x1xf32> to vector<128x128xf32>
    %17 = arith.mulf %14, %16 : vector<128x128xf32>
    %18 = arith.truncf %17 : vector<128x128xf32> to vector<128x128xbf16>
    %c1_i32 = arith.constant 1 : i32
    %19 = tpu.dynamic_rotate %2 by %c1_i32 dim 0 : vector<128x128xf32>, i32 -> vector<128x128xf32>
    %20 = vector.extract_strided_slice %3 {offsets = [0, 3], sizes = [128, 1], strides = [1, 1]} : vector<128x9xf32> to vector<128x1xf32>
    %21 = vector.broadcast %20 : vector<128x1xf32> to vector<128x128xf32>
    %22 = arith.mulf %19, %21 : vector<128x128xf32>
    %23 = arith.truncf %22 : vector<128x128xf32> to vector<128x128xbf16>
    %24 = arith.truncf %2 : vector<128x128xf32> to vector<128x128xbf16>
    %c127_i32 = arith.constant 127 : i32
    %25 = tpu.dynamic_rotate %2 by %c127_i32 dim 0 : vector<128x128xf32>, i32 -> vector<128x128xf32>
    %26 = vector.extract_strided_slice %3 {offsets = [0, 5], sizes = [128, 1], strides = [1, 1]} : vector<128x9xf32> to vector<128x1xf32>
    %27 = vector.broadcast %26 : vector<128x1xf32> to vector<128x128xf32>
    %28 = arith.mulf %25, %27 : vector<128x128xf32>
    %29 = arith.truncf %28 : vector<128x128xf32> to vector<128x128xbf16>
    %c121_i32 = arith.constant 121 : i32
    %30 = tpu.dynamic_rotate %2 by %c121_i32 dim 0 : vector<128x128xf32>, i32 -> vector<128x128xf32>
    %31 = vector.extract_strided_slice %3 {offsets = [0, 6], sizes = [128, 1], strides = [1, 1]} : vector<128x9xf32> to vector<128x1xf32>
    %32 = vector.broadcast %31 : vector<128x1xf32> to vector<128x128xf32>
    %33 = arith.mulf %30, %32 : vector<128x128xf32>
    %34 = arith.truncf %33 : vector<128x128xf32> to vector<128x128xbf16>
    %c120_i32 = arith.constant 120 : i32
    %35 = tpu.dynamic_rotate %2 by %c120_i32 dim 0 : vector<128x128xf32>, i32 -> vector<128x128xf32>
    %36 = vector.extract_strided_slice %3 {offsets = [0, 7], sizes = [128, 1], strides = [1, 1]} : vector<128x9xf32> to vector<128x1xf32>
    %37 = vector.broadcast %36 : vector<128x1xf32> to vector<128x128xf32>
    %38 = arith.mulf %35, %37 : vector<128x128xf32>
    %39 = arith.truncf %38 : vector<128x128xf32> to vector<128x128xbf16>
    %c119_i32 = arith.constant 119 : i32
    %40 = tpu.dynamic_rotate %2 by %c119_i32 dim 0 : vector<128x128xf32>, i32 -> vector<128x128xf32>
    %41 = vector.extract_strided_slice %3 {offsets = [0, 8], sizes = [128, 1], strides = [1, 1]} : vector<128x9xf32> to vector<128x1xf32>
    %42 = vector.broadcast %41 : vector<128x1xf32> to vector<128x128xf32>
    %43 = arith.mulf %40, %42 : vector<128x128xf32>
    %44 = arith.truncf %43 : vector<128x128xf32> to vector<128x128xbf16>
    %45 = tpu.concatenate %8, %13, %18, %23, %24, %29, %34, %39, %44 in 1 : vector<128x128xbf16>, vector<128x128xbf16>, vector<128x128xbf16>, vector<128x128xbf16>, vector<128x128xbf16>, vector<128x128xbf16>, vector<128x128xbf16>, vector<128x128xbf16>, vector<128x128xbf16> -> vector<128x1152xbf16>
    %c0_4 = arith.constant 0 : index
    %c0_5 = arith.constant 0 : index
    %46 = vector.load %arg3[%c0_4, %c0_5] : memref<1152x128xbf16, #tpu.memory_space<vmem>>, vector<1152x128xbf16>
    %cst = arith.constant dense<0.000000e+00> : vector<128x128xf32>
    %47 = tpu.matmul %45, %46, %cst {dimension_numbers = #tpu.dot_dimension_numbers<[1], [0], [0], [1], [0, 0, 1, 1], [], []>} : vector<128x1152xbf16>, vector<1152x128xbf16>, vector<128x128xf32> -> vector<128x128xf32>
    %48 = vector.shape_cast %47 : vector<128x128xf32> to vector<2x64x128xf32>
    %49 = arith.truncf %48 : vector<2x64x128xf32> to vector<2x64x128xbf16>
    %c0_6 = arith.constant 0 : index
    %c0_7 = arith.constant 0 : index
    %c0_8 = arith.constant 0 : index
    %50 = vector.load %arg4[%c0_6, %c0_7, %c0_8] : memref<2x64x128xbf16, #tpu.memory_space<vmem>>, vector<2x64x128xbf16>
    tpu.vector_store %arg4[%c0_6, %c0_7, %c0_8], %49 {strides = array<i32>} : memref<2x64x128xbf16, #tpu.memory_space<vmem>>, vector<2x64x128xbf16>,
    %cst_9 = arith.constant dense<0.000000e+00> : vector<128xf32>
    %51 = vector.multi_reduction <add>, %47, %cst_9 [0] : vector<128x128xf32> to vector<128xf32>
    %52 = vector.shape_cast %51 : vector<128xf32> to vector<1x128xf32>
    %53 = arith.mulf %47, %47 : vector<128x128xf32>
    %cst_10 = arith.constant dense<0.000000e+00> : vector<128xf32>
    %54 = vector.multi_reduction <add>, %53, %cst_10 [0] : vector<128x128xf32> to vector<128xf32>
    %55 = vector.shape_cast %54 : vector<128xf32> to vector<1x128xf32>
    %56 = tpu.concatenate %52, %55 in 0 : vector<1x128xf32>, vector<1x128xf32> -> vector<2x128xf32>
    %c0_11 = arith.constant 0 : index
    %c0_12 = arith.constant 0 : index
    %c0_13 = arith.constant 0 : index
    %57 = vector.load %arg5[%c0_11, %c0_12, %c0_13] : memref<1x2x128xf32, #tpu.memory_space<vmem>>, vector<1x2x128xf32>
    %58 = vector.shape_cast %57 : vector<1x2x128xf32> to vector<2x128xf32>
    %59 = vector.shape_cast %56 : vector<2x128xf32> to vector<1x2x128xf32>
    tpu.vector_store %arg5[%c0_11, %c0_12, %c0_13], %59 {strides = array<i32>} : memref<1x2x128xf32, #tpu.memory_space<vmem>>, vector<1x2x128xf32>,
    return
  }
  func.func @transform_0(%arg0: i32) -> (i32, i32, i32) {
    %c0_i32 = arith.constant 0 : i32
    %c0_i32_0 = arith.constant 0 : i32
    %c0_i32_1 = arith.constant 0 : i32
    return %arg0, %c0_i32, %c0_i32_0 : i32, i32, i32
  }
  func.func @transform_1(%arg0: i32) -> (i32, i32) {
    %c0_i32 = arith.constant 0 : i32
    %c0_i32_0 = arith.constant 0 : i32
    %c0_i32_1 = arith.constant 0 : i32
    return %c0_i32, %c0_i32_0 : i32, i32
  }
  func.func @transform_2(%arg0: i32) -> (i32, i32) {
    %c0_i32 = arith.constant 0 : i32
    %c0_i32_0 = arith.constant 0 : i32
    %c0_i32_1 = arith.constant 0 : i32
    return %c0_i32, %c0_i32_0 : i32, i32
  }
  func.func @transform_3(%arg0: i32) -> (i32, i32, i32) {
    %c0_i32 = arith.constant 0 : i32
    %c0_i32_0 = arith.constant 0 : i32
    %c0_i32_1 = arith.constant 0 : i32
    return %arg0, %c0_i32, %c0_i32_0 : i32, i32, i32
  }
  func.func @transform_4(%arg0: i32) -> (i32, i32, i32) {
    %c0_i32 = arith.constant 0 : i32
    %c0_i32_0 = arith.constant 0 : i32
    %c0_i32_1 = arith.constant 0 : i32
    return %arg0, %c0_i32, %c0_i32_0 : i32, i32, i32
  }
}

module attributes {stable_mosaic.version = 11 : i64} {
  func.func @_bn_relu_conv_stats_kernel(%arg0: i32, %arg1: memref<2x64x128xbf16, #tpu.memory_space<vmem>>, %arg2: memref<1x128xf32, #tpu.memory_space<vmem>>, %arg3: memref<1x128xf32, #tpu.memory_space<vmem>>, %arg4: memref<128x9xf32, #tpu.memory_space<vmem>>, %arg5: memref<1152x128xbf16, #tpu.memory_space<vmem>>, %arg6: memref<2x64x128xbf16, #tpu.memory_space<vmem>>, %arg7: memref<1x2x128xf32, #tpu.memory_space<vmem>>) attributes {dimension_semantics = [#tpu.dimension_semantics<parallel>], iteration_bounds = array<i64: 2>, scalar_prefetch = 0 : i64, scratch_operands = 0 : i64, tpu.core_type = #tpu.core_type<tc>, window_params = [{transform_indices = @transform_0, window_bounds = array<i64: 2, 64, 128>}, {pipeline_mode = #tpu.pipeline_mode<synchronous>, transform_indices = @transform_1, window_bounds = array<i64: 1, 128>}, {pipeline_mode = #tpu.pipeline_mode<synchronous>, transform_indices = @transform_2, window_bounds = array<i64: 1, 128>}, {pipeline_mode = #tpu.pipeline_mode<synchronous>, transform_indices = @transform_3, window_bounds = array<i64: 128, 9>}, {pipeline_mode = #tpu.pipeline_mode<synchronous>, transform_indices = @transform_4, window_bounds = array<i64: 1152, 128>}, {transform_indices = @transform_5, window_bounds = array<i64: 2, 64, 128>}, {transform_indices = @transform_6, window_bounds = array<i64: 1, 2, 128>}]} {
    %c0 = arith.constant 0 : index
    %c0_0 = arith.constant 0 : index
    %c0_1 = arith.constant 0 : index
    %0 = vector.load %arg1[%c0, %c0_0, %c0_1] : memref<2x64x128xbf16, #tpu.memory_space<vmem>>, vector<2x64x128xbf16>
    %1 = arith.extf %0 : vector<2x64x128xbf16> to vector<2x64x128xf32>
    %2 = vector.shape_cast %1 : vector<2x64x128xf32> to vector<128x128xf32>
    %c0_2 = arith.constant 0 : index
    %c0_3 = arith.constant 0 : index
    %3 = vector.load %arg2[%c0_2, %c0_3] : memref<1x128xf32, #tpu.memory_space<vmem>>, vector<1x128xf32>
    %4 = vector.broadcast %3 : vector<1x128xf32> to vector<128x128xf32>
    %5 = arith.mulf %2, %4 : vector<128x128xf32>
    %c0_4 = arith.constant 0 : index
    %c0_5 = arith.constant 0 : index
    %6 = vector.load %arg3[%c0_4, %c0_5] : memref<1x128xf32, #tpu.memory_space<vmem>>, vector<1x128xf32>
    %7 = vector.broadcast %6 : vector<1x128xf32> to vector<128x128xf32>
    %8 = arith.addf %5, %7 : vector<128x128xf32>
    %cst = arith.constant 0.000000e+00 : f32
    %9 = vector.broadcast %cst : f32 to vector<128x128xf32>
    %10 = arith.maximumf %8, %9 : vector<128x128xf32>
    %c0_6 = arith.constant 0 : index
    %c0_7 = arith.constant 0 : index
    %11 = vector.load %arg4[%c0_6, %c0_7] : memref<128x9xf32, #tpu.memory_space<vmem>>, vector<128x9xf32>
    %c9_i32 = arith.constant 9 : i32
    %12 = tpu.dynamic_rotate %10 by %c9_i32 dim 0 : vector<128x128xf32>, i32 -> vector<128x128xf32>
    %13 = vector.extract_strided_slice %11 {offsets = [0, 0], sizes = [128, 1], strides = [1, 1]} : vector<128x9xf32> to vector<128x1xf32>
    %14 = vector.broadcast %13 : vector<128x1xf32> to vector<128x128xf32>
    %15 = arith.mulf %12, %14 : vector<128x128xf32>
    %16 = arith.truncf %15 : vector<128x128xf32> to vector<128x128xbf16>
    %c8_i32 = arith.constant 8 : i32
    %17 = tpu.dynamic_rotate %10 by %c8_i32 dim 0 : vector<128x128xf32>, i32 -> vector<128x128xf32>
    %18 = vector.extract_strided_slice %11 {offsets = [0, 1], sizes = [128, 1], strides = [1, 1]} : vector<128x9xf32> to vector<128x1xf32>
    %19 = vector.broadcast %18 : vector<128x1xf32> to vector<128x128xf32>
    %20 = arith.mulf %17, %19 : vector<128x128xf32>
    %21 = arith.truncf %20 : vector<128x128xf32> to vector<128x128xbf16>
    %c7_i32 = arith.constant 7 : i32
    %22 = tpu.dynamic_rotate %10 by %c7_i32 dim 0 : vector<128x128xf32>, i32 -> vector<128x128xf32>
    %23 = vector.extract_strided_slice %11 {offsets = [0, 2], sizes = [128, 1], strides = [1, 1]} : vector<128x9xf32> to vector<128x1xf32>
    %24 = vector.broadcast %23 : vector<128x1xf32> to vector<128x128xf32>
    %25 = arith.mulf %22, %24 : vector<128x128xf32>
    %26 = arith.truncf %25 : vector<128x128xf32> to vector<128x128xbf16>
    %c1_i32 = arith.constant 1 : i32
    %27 = tpu.dynamic_rotate %10 by %c1_i32 dim 0 : vector<128x128xf32>, i32 -> vector<128x128xf32>
    %28 = vector.extract_strided_slice %11 {offsets = [0, 3], sizes = [128, 1], strides = [1, 1]} : vector<128x9xf32> to vector<128x1xf32>
    %29 = vector.broadcast %28 : vector<128x1xf32> to vector<128x128xf32>
    %30 = arith.mulf %27, %29 : vector<128x128xf32>
    %31 = arith.truncf %30 : vector<128x128xf32> to vector<128x128xbf16>
    %32 = arith.truncf %10 : vector<128x128xf32> to vector<128x128xbf16>
    %c127_i32 = arith.constant 127 : i32
    %33 = tpu.dynamic_rotate %10 by %c127_i32 dim 0 : vector<128x128xf32>, i32 -> vector<128x128xf32>
    %34 = vector.extract_strided_slice %11 {offsets = [0, 5], sizes = [128, 1], strides = [1, 1]} : vector<128x9xf32> to vector<128x1xf32>
    %35 = vector.broadcast %34 : vector<128x1xf32> to vector<128x128xf32>
    %36 = arith.mulf %33, %35 : vector<128x128xf32>
    %37 = arith.truncf %36 : vector<128x128xf32> to vector<128x128xbf16>
    %c121_i32 = arith.constant 121 : i32
    %38 = tpu.dynamic_rotate %10 by %c121_i32 dim 0 : vector<128x128xf32>, i32 -> vector<128x128xf32>
    %39 = vector.extract_strided_slice %11 {offsets = [0, 6], sizes = [128, 1], strides = [1, 1]} : vector<128x9xf32> to vector<128x1xf32>
    %40 = vector.broadcast %39 : vector<128x1xf32> to vector<128x128xf32>
    %41 = arith.mulf %38, %40 : vector<128x128xf32>
    %42 = arith.truncf %41 : vector<128x128xf32> to vector<128x128xbf16>
    %c120_i32 = arith.constant 120 : i32
    %43 = tpu.dynamic_rotate %10 by %c120_i32 dim 0 : vector<128x128xf32>, i32 -> vector<128x128xf32>
    %44 = vector.extract_strided_slice %11 {offsets = [0, 7], sizes = [128, 1], strides = [1, 1]} : vector<128x9xf32> to vector<128x1xf32>
    %45 = vector.broadcast %44 : vector<128x1xf32> to vector<128x128xf32>
    %46 = arith.mulf %43, %45 : vector<128x128xf32>
    %47 = arith.truncf %46 : vector<128x128xf32> to vector<128x128xbf16>
    %c119_i32 = arith.constant 119 : i32
    %48 = tpu.dynamic_rotate %10 by %c119_i32 dim 0 : vector<128x128xf32>, i32 -> vector<128x128xf32>
    %49 = vector.extract_strided_slice %11 {offsets = [0, 8], sizes = [128, 1], strides = [1, 1]} : vector<128x9xf32> to vector<128x1xf32>
    %50 = vector.broadcast %49 : vector<128x1xf32> to vector<128x128xf32>
    %51 = arith.mulf %48, %50 : vector<128x128xf32>
    %52 = arith.truncf %51 : vector<128x128xf32> to vector<128x128xbf16>
    %53 = tpu.concatenate %16, %21, %26, %31, %32, %37, %42, %47, %52 in 1 : vector<128x128xbf16>, vector<128x128xbf16>, vector<128x128xbf16>, vector<128x128xbf16>, vector<128x128xbf16>, vector<128x128xbf16>, vector<128x128xbf16>, vector<128x128xbf16>, vector<128x128xbf16> -> vector<128x1152xbf16>
    %c0_8 = arith.constant 0 : index
    %c0_9 = arith.constant 0 : index
    %54 = vector.load %arg5[%c0_8, %c0_9] : memref<1152x128xbf16, #tpu.memory_space<vmem>>, vector<1152x128xbf16>
    %cst_10 = arith.constant dense<0.000000e+00> : vector<128x128xf32>
    %55 = tpu.matmul %53, %54, %cst_10 {dimension_numbers = #tpu.dot_dimension_numbers<[1], [0], [0], [1], [0, 0, 1, 1], [], []>} : vector<128x1152xbf16>, vector<1152x128xbf16>, vector<128x128xf32> -> vector<128x128xf32>
    %56 = vector.shape_cast %55 : vector<128x128xf32> to vector<2x64x128xf32>
    %57 = arith.truncf %56 : vector<2x64x128xf32> to vector<2x64x128xbf16>
    %c0_11 = arith.constant 0 : index
    %c0_12 = arith.constant 0 : index
    %c0_13 = arith.constant 0 : index
    %58 = vector.load %arg6[%c0_11, %c0_12, %c0_13] : memref<2x64x128xbf16, #tpu.memory_space<vmem>>, vector<2x64x128xbf16>
    tpu.vector_store %arg6[%c0_11, %c0_12, %c0_13], %57 {strides = array<i32>} : memref<2x64x128xbf16, #tpu.memory_space<vmem>>, vector<2x64x128xbf16>,
    %cst_14 = arith.constant dense<0.000000e+00> : vector<128xf32>
    %59 = vector.multi_reduction <add>, %55, %cst_14 [0] : vector<128x128xf32> to vector<128xf32>
    %60 = vector.shape_cast %59 : vector<128xf32> to vector<1x128xf32>
    %61 = arith.mulf %55, %55 : vector<128x128xf32>
    %cst_15 = arith.constant dense<0.000000e+00> : vector<128xf32>
    %62 = vector.multi_reduction <add>, %61, %cst_15 [0] : vector<128x128xf32> to vector<128xf32>
    %63 = vector.shape_cast %62 : vector<128xf32> to vector<1x128xf32>
    %64 = tpu.concatenate %60, %63 in 0 : vector<1x128xf32>, vector<1x128xf32> -> vector<2x128xf32>
    %c0_16 = arith.constant 0 : index
    %c0_17 = arith.constant 0 : index
    %c0_18 = arith.constant 0 : index
    %65 = vector.load %arg7[%c0_16, %c0_17, %c0_18] : memref<1x2x128xf32, #tpu.memory_space<vmem>>, vector<1x2x128xf32>
    %66 = vector.shape_cast %65 : vector<1x2x128xf32> to vector<2x128xf32>
    %67 = vector.shape_cast %64 : vector<2x128xf32> to vector<1x2x128xf32>
    tpu.vector_store %arg7[%c0_16, %c0_17, %c0_18], %67 {strides = array<i32>} : memref<1x2x128xf32, #tpu.memory_space<vmem>>, vector<1x2x128xf32>,
    return
  }
  func.func @transform_0(%arg0: i32) -> (i32, i32, i32) {
    %c0_i32 = arith.constant 0 : i32
    %c0_i32_0 = arith.constant 0 : i32
    %c0_i32_1 = arith.constant 0 : i32
    return %arg0, %c0_i32, %c0_i32_0 : i32, i32, i32
  }
  func.func @transform_1(%arg0: i32) -> (i32, i32) {
    %c0_i32 = arith.constant 0 : i32
    %c0_i32_0 = arith.constant 0 : i32
    %c0_i32_1 = arith.constant 0 : i32
    return %c0_i32, %c0_i32_0 : i32, i32
  }
  func.func @transform_2(%arg0: i32) -> (i32, i32) {
    %c0_i32 = arith.constant 0 : i32
    %c0_i32_0 = arith.constant 0 : i32
    %c0_i32_1 = arith.constant 0 : i32
    return %c0_i32, %c0_i32_0 : i32, i32
  }
  func.func @transform_3(%arg0: i32) -> (i32, i32) {
    %c0_i32 = arith.constant 0 : i32
    %c0_i32_0 = arith.constant 0 : i32
    %c0_i32_1 = arith.constant 0 : i32
    return %c0_i32, %c0_i32_0 : i32, i32
  }
  func.func @transform_4(%arg0: i32) -> (i32, i32) {
    %c0_i32 = arith.constant 0 : i32
    %c0_i32_0 = arith.constant 0 : i32
    %c0_i32_1 = arith.constant 0 : i32
    return %c0_i32, %c0_i32_0 : i32, i32
  }
  func.func @transform_5(%arg0: i32) -> (i32, i32, i32) {
    %c0_i32 = arith.constant 0 : i32
    %c0_i32_0 = arith.constant 0 : i32
    %c0_i32_1 = arith.constant 0 : i32
    return %arg0, %c0_i32, %c0_i32_0 : i32, i32, i32
  }
  func.func @transform_6(%arg0: i32) -> (i32, i32, i32) {
    %c0_i32 = arith.constant 0 : i32
    %c0_i32_0 = arith.constant 0 : i32
    %c0_i32_1 = arith.constant 0 : i32
    return %arg0, %c0_i32, %c0_i32_0 : i32, i32, i32
  }
}

</mosaic_0001>

<bundles_post_ra>
// kernel: resnet_block.2
= control target key start
LH: loop header
LB: loop body
LE: loop exit
PB: predicated region body
PF: predicated region fallthrough
CT: control target
= control target key end

     0   :  { %s3074_s15 = smov 0   ;;  %s4301_s0 = inlined_call_operand.vmem [shape: bf16[4,64,128], index: 0, kind: input, shape index: {}]   ;;  %s4302_s1 = inlined_call_operand.vmem [shape: f32[128,9], index: 1, kind: input, shape index: {}]   ;;  %s4303_s2 = inlined_call_operand.vmem [shape: bf16[1152,128], index: 2, kind: input, shape index: {}]   ;;  %s4304_s3 = inlined_call_operand.vmem [shape: bf16[4,64,128], index: 3, kind: output, shape index: {0}]   ;;  %s4305_s4 = inlined_call_operand.vmem [shape: f32[2,2,128], index: 4, kind: output, shape index: {1}]  }
   0x1 LB: > { %s3080_s16 = sadd.s32 4294967295, %s3039_s15   ;;  %p2357_p0 = scmp.ge.s32.totalorder %s3039_s15, 1  ;;  %s3039_s15 = sphi %s3074_s15, %s15_s15  }
   0x2   : > { %p167_p1 = scmp.lt.s32.totalorder %s3039_s15, 3 }
   0x4   : > { %p168_p2 = pnand %p2357_p0, %p167_p1 }
   0x6   : > { %171 = sbr.rel (%p168_p2) target bundleno = 758 (0x2f6), region = 32 }
   0xd   : > { %v3087_v0 = vld [vmem:[%s4302_s1 + $0x10] sm:$0xff]  ;;  %v3092_v1 = vld [vmem:[%s4302_s1] sm:$0xff]  ;;  %v3041_v2 = vmov 3   ;;  %v3042_v3 = vmov 0   ;;  %v3101_v4 = vld [vmem:[%s4302_s1 + $0x18] sm:$0xff]  ;;  %v3043_v19 = vmov 1  }
   0xe   : > { %2866 = vset.pattern.permute.xlu0 %v3041_v2  ;;  %2864 = vset.pattern.permute.xlu1 %v3042_v3  ;;  %v3106_v5 = vld [vmem:[%s4302_s1 + $0x28] sm:$0xff]  ;;  %v3113_v6 = vld [vmem:[%s4302_s1 + $0x20] sm:$0xff]  ;;  %v3123_v8 = vld [vmem:[%s4302_s1 + $0x38] sm:$0xff]  ;;  %v3044_v31 = vmov 2   ;;  %v4311_v45 = vmov 5   ;;  %v4313_v53 = vmov 6  }
   0xf   : > { %313 = vperm.xlu1 %2864, %v3087_v0   ;;  %615 = vperm.xlu0 %2866, %v3092_v1   ;;  %v2928_v7 = vld [vmem:[%s4303_s2 + $0x40] sm:$0xff]   ;;  %v3128_v9 = vld [vmem:[%s4302_s1 + $0x30] sm:$0xff]  ;;  %v3136_v11 = vld [vmem:[%s4302_s1 + $0x48] sm:$0xff]  ;;  %v4315_v54 = vmov 7   ;;  %s2358_s17 = sshll.u32 %s3080_s16, 1  ;;  %p213_p4 = scmp.lt.s32.totalorder %s3080_s16, 1 }
  0x10   : > { %v2929_v10 = vld [vmem:[%s4303_s2] sm:$0xff]   ;;  %2528 = vmatprep.subr.bf16.mxu0 %v2928_v7  ;;  %v2930_v13 = vld [vmem:[%s4303_s2 + $0x48] sm:$0xff]   ;;  %v3154_v15 = vld [vmem:[%s4302_s1 + $0x58] sm:$0xff]  ;;  %p200_p3 = scmp.lt.s32.totalorder %s2358_s17, 3  ;;  %vm2261_vm2 = vcmask 1040384  }
  0x11   : > { %v3141_v12 = vld [vmem:[%s4302_s1 + $0x40] sm:$0xff]  ;;  %2529 = vmatpush3.bf16.msra.mxu0 %v2929_v10  ;;  %v2931_v14 = vld [vmem:[%s4303_s2 + $0x8] sm:$0xff]   ;;  %v2932_v16 = vld [vmem:[%s4303_s2 + $0x50] sm:$0xff]   ;;  %s4383_s16 = smov (!%p213_p4, %s3080_s16), 1 }
  0x12   : > { %2530 = vmatprep.subr.bf16.mxu0 %v2930_v13  ;;  %v3164_v17 = vld [vmem:[%s4302_s1 + $0x8] sm:$0xff]  ;;  %v2933_v18 = vld [vmem:[%s4303_s2 + $0x10] sm:$0xff]   ;;  %v2934_v20 = vld [vmem:[%s4303_s2 + $0x58] sm:$0xff]   ;;  %s4381_s17 = smov (!%p200_p3, %s2358_s17), 3 }
  0x13   : > { %318 = vperm.xlu1 %2864, %v3101_v4   ;;  %623 = vperm.xlu0 %2866, %v3087_v0   ;;  %v2935_v21 = vld [vmem:[%s4303_s2 + $0x18] sm:$0xff]   ;;  %v2936_v23 = vld [vmem:[%s4303_s2 + $0x60] sm:$0xff]   ;;  %v2938_v25 = vld [vmem:[%s4303_s2 + $0x68] sm:$0xff]   ;;  %s2463_s20 = sshll.u32 %s4381_s17, 5  ;;  %s2364_s17 = sshll.u32 %s4383_s16, 1 }
  0x14   : > { %v3182_v22 = vld [vmem:[%s4302_s1 + $0x78] sm:$0xff]  ;;  %v2937_v24 = vld [vmem:[%s4303_s2 + $0x20] sm:$0xff]   ;;  %v2939_v26 = vld [vmem:[%s4303_s2 + $0x28] sm:$0xff]   ;;  %s3381_s23 = scalar_lea.vmem %s4301_s0, %s2463_s20  ;;  %s4273_s30 = scalar_lea.vmem %s4304_s3, %s2463_s20 }
  0x15   : > { %2531 = vmatpush3.bf16.msra.mxu0 %v2931_v14  ;;  %v2940_v27 = vld [vmem:[%s4303_s2 + $0x70] sm:$0xff]   ;;  %v2942_v29 = vld [vmem:[%s4303_s2 + $0x78] sm:$0xff]   ;;  %v2944_v32 = vld [vmem:[%s4303_s2 + $0xc0] sm:$0xff]   ;;  %v4306_v14 = vmov 8   ;;  %s216_s6 = scalar_lea.vmem %s4305_s4, %s2364_s17 }
  0x16   : > { %2532 = vmatprep.subr.bf16.mxu0 %v2932_v16  ;;  %v2941_v28 = vld [vmem:[%s4303_s2 + $0x30] sm:$0xff]   ;;  %v2943_v30 = vld [vmem:[%s4303_s2 + $0x38] sm:$0xff]   ;;  %v2945_v33 = vld [vmem:[%s4303_s2 + $0x80] sm:$0xff]   ;;  %2592 = vmatprep.subr.bf16.mxu1 %v2944_v32 }
  0x17   : > { %328 = vperm.xlu1 %2864, %v3106_v5   ;;  %631 = vperm.xlu0 %2866, %v3113_v6   ;;  %v3232_v34 = vld [vmem:[%s4302_s1 + $0x50] sm:$0xff]  ;;  %v2946_v35 = vld [vmem:[%s4303_s2 + $0xc8] sm:$0xff]   ;;  %v3246_v37 = vld [vmem:[%s4302_s1 + $0x60] sm:$0xff] }
  0x18   : > { %2593 = vmatpush3.bf16.msra.mxu1 %v2945_v33  ;;  %v2947_v36 = vld [vmem:[%s4303_s2 + $0x88] sm:$0xff]   ;;  %v2948_v38 = vld [vmem:[%s4303_s2 + $0xd0] sm:$0xff]   ;;  %v2950_v41 = vld [vmem:[%s4303_s2 + $0xd8] sm:$0xff]  }
  0x19   : > { %2533 = vmatpush3.bf16.msra.mxu0 %v2933_v18  ;;  %2594 = vmatprep.subr.bf16.mxu1 %v2946_v35  ;;  %v2949_v39 = vld [vmem:[%s4303_s2 + $0x90] sm:$0xff]   ;;  %v2951_v42 = vld [vmem:[%s4303_s2 + $0x98] sm:$0xff]   ;;  %v2952_v43 = vld [vmem:[%s4303_s2 + $0xe0] sm:$0xff]  }
  0x1a   : > { %2534 = vmatprep.subr.bf16.mxu0 %v2934_v20  ;;  %v3259_v40 = vld [vmem:[%s4302_s1 + $0x70] sm:$0xff]  ;;  %v2953_v44 = vld [vmem:[%s4303_s2 + $0xa0] sm:$0xff]   ;;  %v2954_v46 = vld [vmem:[%s4303_s2 + $0xe8] sm:$0xff]  }
  0x1b   : > { %338 = vperm.xlu1 %2864, %v3123_v8   ;;  %639 = vperm.xlu0 %2866, %v3128_v9   ;;  %v2955_v47 = vld [vmem:[%s4303_s2 + $0xa8] sm:$0xff]   ;;  %v2956_v48 = vld [vmem:[%s4303_s2 + $0xf0] sm:$0xff]   ;;  %v2958_v50 = vld [vmem:[%s4303_s2 + $0xf8] sm:$0xff]  }
  0x1c   : > { %2595 = vmatpush3.bf16.msra.mxu1 %v2947_v36  ;;  %v2957_v49 = vld [vmem:[%s4303_s2 + $0xb0] sm:$0xff]   ;;  %v2959_v51 = vld [vmem:[%s4303_s2 + $0xb8] sm:$0xff]   ;;  %v3322_v52 = vld [vmem:[%s4302_s1 + $0x68] sm:$0xff] }
  0x1d   : > { %2535 = vmatpush3.bf16.msra.mxu0 %v2935_v21  ;;  %2596 = vmatprep.subr.bf16.mxu1 %v2948_v38  ;;  %v2960_v61 = vld [vmem:[%s4303_s2 + $0x140] sm:$0xff]   ;;  %v233_v13 = vld [vmem:[%s3381_s23 + $0x38] sm:$0xff]   ;;  %v3420_v32 = vld [vmem:[%s3381_s23 + $0x8] sm:$0xff]  }
  0x1e   : > { %2536 = vmatprep.subr.bf16.mxu0 %v2936_v23  ;;  %v3388_v10 = vld [vmem:[%s3381_s23] sm:$0xff]   ;;  %v3400_v20 = vunpack.c.h.bf16 %v233_v13 }
  0x1f   : > { %348 = vperm.xlu1 %2864, %v3136_v11   ;;  %647 = vperm.xlu0 %2866, %v3141_v12   ;;  %v3425_v35 = vunpack.c.h.bf16 %v3388_v10 }
  0x20   : > { %2597 = vmatpush3.bf16.msra.mxu1 %v2949_v39 }
  0x21   : > { %2537 = vmatpush3.bf16.msra.mxu0 %v2937_v24  ;;  %2598 = vmatprep.subr.bf16.mxu1 %v2950_v41 }
  0x22   : > { %2538 = vmatprep.subr.bf16.mxu0 %v2938_v25  ;;  %v3408_v25 = vunpack.c.l.bf16 %v233_v13  ;;  %v2961_v13 = vld [vmem:[%s4303_s2 + $0x100] sm:$0xff]  }
  0x23   : > { %358 = vperm.xlu1 %2864, %v3154_v15   ;;  %2879 = vset.pattern.permute.xlu0 %v3043_v19 }
  0x24   : > { %410 = vperm.xlu0 %2879, %v3164_v17   ;;  %2599 = vmatpush3.bf16.msra.mxu1 %v2951_v42 }
  0x25   : > { %2539 = vmatpush3.bf16.msra.mxu0 %v2939_v26  ;;  %2600 = vmatprep.subr.bf16.mxu1 %v2952_v43  ;;  %v267_v43 = vrot.slane %v3425_v35, 7 }
  0x26   : > { %2540 = vmatprep.subr.bf16.mxu0 %v2940_v27 }
  0x27   : > { %2865 = vset.pattern.permute.xlu1 %v3043_v19 }
  0x28   : > { %422 = vperm.xlu0 %2879, %v3113_v6   ;;  %406 = vperm.xlu1 %2865, %v3092_v1  }
  0x29   : > { %2541 = vmatpush3.bf16.msra.mxu0 %v2941_v28  ;;  %2601 = vmatpush3.bf16.msra.mxu1 %v2953_v44 }
  0x2a   : > { %2542 = vmatprep.subr.bf16.mxu0 %v2942_v29  ;;  %2602 = vmatprep.subr.bf16.mxu1 %v2954_v46 }
  0x2c   : > { %466 = vperm.xlu0 %2879, %v3182_v22   ;;  %414 = vperm.xlu1 %2865, %v3087_v0  }
  0x2d   : > { %2543 = vmatpush3.bf16.msra.mxu0 %v2943_v30  ;;  %2603 = vmatpush3.bf16.msra.mxu1 %v2955_v47  ;;  %v281_v30 = vrot.slane %v3400_v20, 7 }
  0x2e   : > { %2604 = vmatprep.subr.bf16.mxu1 %v2956_v48  ;;  %2656 = vmatprep.subr.bf16.mxu0 %v2960_v61 }
  0x30   : > { %2884 = vset.pattern.permute.xlu0 %v3042_v3  ;;  %418 = vperm.xlu1 %2865, %v3101_v4  }
  0x31   : > { %303 = vperm.xlu0 %2884, %v3092_v1   ;;  %2605 = vmatpush3.bf16.msra.mxu1 %v2957_v49 }
  0x32   : > { %2606 = vmatprep.subr.bf16.mxu1 %v2958_v50 }
  0x34   : > { %426 = vperm.xlu1 %2865, %v3106_v5  }
  0x35   : > { %308 = vperm.xlu0 %2884, %v3164_v17   ;;  %2607 = vmatpush3.bf16.msra.mxu1 %v2959_v51  ;;  %v3454_v51 = vld [vmem:[%s3381_s23 + $0x10] sm:$0xff]  }
  0x38   : > { %2867 = vset.pattern.permute.xlu1 %v3041_v2 }
  0x39   : > { %323 = vperm.xlu0 %2884, %v3113_v6   ;;  %619 = vperm.xlu1 %2867, %v3164_v17  }
  0x3d   : > { %333 = vperm.xlu0 %2884, %v3128_v9   ;;  %2868 = vset.pattern.permute.xlu1 %v3044_v31 }
  0x3e   : > { %527 = vperm.xlu1 %2868, %v3092_v1  }
  0x41   : > { %343 = vperm.xlu0 %2884, %v3141_v12  }
  0x42   : > { %2869 = vset.pattern.permute.xlu1 %v3043_v19 }
  0x43   : > { %430 = vperm.xlu1 %2869, %v3128_v9  }
  0x45   : > { %353 = vperm.xlu0 %2884, %v3232_v34  }
  0x47   : > { %434 = vperm.xlu1 %2869, %v3123_v8  }
  0x49   : > { %363 = vperm.xlu0 %2884, %v3246_v37  }
  0x4b   : > { %2870 = vset.pattern.permute.xlu1 %v3041_v2 }
  0x4c   : > { %627 = vperm.xlu1 %2870, %v3101_v4  }
  0x4d   : > { %373 = vperm.xlu0 %2884, %v3259_v40  }
  0x50   : > { %2871 = vset.pattern.permute.xlu1 %v3044_v31 }
  0x51   : > { %2889 = vset.pattern.permute.xlu0 %v4311_v45  ;;  %535 = vperm.xlu1 %2871, %v3087_v0  }
  0x52   : > { %711 = vperm.xlu0 %2889, %v3092_v1  }
  0x55   : > { %2872 = vset.pattern.permute.xlu1 %v3043_v19 }
  0x56   : > { %719 = vperm.xlu0 %2889, %v3087_v0   ;;  %438 = vperm.xlu1 %2872, %v3141_v12  }
  0x5a   : > { %2893 = vset.pattern.permute.xlu0 %v3044_v31  ;;  %442 = vperm.xlu1 %2872, %v3136_v11  }
  0x5b   : > { %531 = vperm.xlu0 %2893, %v3164_v17  }
  0x5e   : > { %2873 = vset.pattern.permute.xlu1 %v3041_v2 }
  0x5f   : > { %539 = vperm.xlu0 %2893, %v3101_v4   ;;  %635 = vperm.xlu1 %2873, %v3106_v5  }
  0x63   : > { %2874 = vset.pattern.permute.xlu1 %v3044_v31  ;;  %547 = vperm.xlu0 %2893, %v3106_v5  }
  0x64   : > { %543 = vperm.xlu1 %2874, %v3113_v6  }
  0x67   : > { %555 = vperm.xlu0 %2893, %v3123_v8  }
  0x68   : > { %2875 = vset.pattern.permute.xlu1 %v3043_v19 }
  0x69   : > { %446 = vperm.xlu1 %2875, %v3232_v34  }
  0x6b   : > { %559 = vperm.xlu0 %2893, %v3141_v12  }
  0x6d   : > { %450 = vperm.xlu1 %2875, %v3154_v15  }
  0x6f   : > { %571 = vperm.xlu0 %2893, %v3154_v15  }
  0x71   : > { %2876 = vset.pattern.permute.xlu1 %v3041_v2 }
  0x72   : > { %643 = vperm.xlu1 %2876, %v3123_v8  }
  0x73   : > { %579 = vperm.xlu0 %2893, %v3322_v52  }
  0x76   : > { %2877 = vset.pattern.permute.xlu1 %v3044_v31 }
  0x77   : > { %551 = vperm.xlu1 %2877, %v3128_v9   ;;  %587 = vperm.xlu0 %2893, %v3182_v22  }
  0x7b   : > { %2878 = vset.pattern.permute.xlu1 %v3043_v19  ;;  %2899 = vset.pattern.permute.xlu0 %v4313_v53 }
  0x7c   : > { %454 = vperm.xlu1 %2878, %v3246_v37   ;;  %803 = vperm.xlu0 %2899, %v3164_v17  }
  0x80   : > { %458 = vperm.xlu1 %2878, %v3322_v52   ;;  %811 = vperm.xlu0 %2899, %v3101_v4  }
  0x84   : > { %2880 = vset.pattern.permute.xlu1 %v3041_v2  ;;  %819 = vperm.xlu0 %2899, %v3106_v5  }
  0x85   : > { %651 = vperm.xlu1 %2880, %v3136_v11  }
  0x88   : > { %2906 = vset.pattern.permute.xlu0 %v4315_v54 }
  0x89   : > { %2881 = vset.pattern.permute.xlu1 %v3042_v3  ;;  %887 = vperm.xlu0 %2906, %v3092_v1  }
  0x8a   : > { %368 = vperm.xlu1 %2881, %v3322_v52  }
  0x8d   : > { %895 = vperm.xlu0 %2906, %v3087_v0  }
  0x8e   : > { %v3342_v55 = vpop.permute.xlu1 %313  ;;  %2882 = vset.pattern.permute.xlu1 %v3044_v31  ;;  %v3345_v56 = vpop.permute.xlu0 %615 }
  0x8f   : > { %563 = vperm.xlu1 %2882, %v3136_v11  }
  0x91   : > { %903 = vperm.xlu0 %2906, %v3113_v6  }
  0x92   : > { %v3350_v57 = vpop.permute.xlu1 %318  ;;  %v3352_v58 = vpop.permute.xlu0 %623 }
  0x93   : > { %2883 = vset.pattern.permute.xlu1 %v3043_v19  ;;  %v3398_v19 = vunpack.c.l.bf16 %v3388_v10 }
  0x94   : > { %462 = vperm.xlu1 %2883, %v3259_v40  }
  0x95   : > { %911 = vperm.xlu0 %2906, %v3128_v9   ;;  %4336 = vst [vmem:[#allocation2_spill] sm:$0xff] %v3398_v19  ;;  %v266_v36 = vrot.slane %v3398_v19, 7 }
  0x96   : > { %v3357_v59 = vpop.permute.xlu1 %328  ;;  %v3359_v60 = vpop.permute.xlu0 %631 }
  0x98   : > { %2885 = vset.pattern.permute.xlu1 %v3041_v2 }
  0x99   : > { %655 = vperm.xlu1 %2885, %v3232_v34   ;;  %919 = vperm.xlu0 %2906, %v3141_v12  }
  0x9a   : > { %v3369_v62 = vpop.permute.xlu1 %338  ;;  %v3371_v63 = vpop.permute.xlu0 %639 }
  0x9d   : > { %659 = vperm.xlu1 %2885, %v3154_v15   ;;  %927 = vperm.xlu0 %2906, %v3232_v34  }
  0x9e   : > { %v3383_v0 = vpop.permute.xlu1 %348  ;;  %v3385_v7 = vpop.permute.xlu0 %647 }
  0xa1   : > { %2886 = vset.pattern.permute.xlu1 %v3042_v3  ;;  %2917 = vset.pattern.permute.xlu0 %v4306_v14  ;;  %v282_v3 = vlaneseq }
  0xa2   : > { %v3393_v16 = vpop.permute.xlu1 %358  ;;  %378 = vperm.xlu1 %2886, %v3182_v22   ;;  %975 = vperm.xlu0 %2917, %v3092_v1  }
  0xa3   : > { %v411_v18 = vpop.permute.xlu0 %410  ;;  %v3410_v27 = vshrl.u32 %v282_v3, 7 }
  0xa4   : > { %v470_v21 = vmul.f32 %v411_v18, %v3398_v19 }
  0xa5   : > { %vm284_vm0 = vcmp.lt.s32.totalorder %v3410_v27, 1  ;;  %vm509_vm1 = vcmp.lt.s32.totalorder %v3410_v27, 7  ;;  %v4012_v27 = vld [vmem:[%s4303_s2 + $0x220] sm:$0xff]  }
  0xa6   : > { %2887 = vset.pattern.permute.xlu1 %v3044_v31  ;;  %2918 = vset.pattern.permute.xlu0 %v4313_v53  ;;  %v3462_v18 = vsel %vm284_vm0, %v266_v36, %v267_v43 }
  0xa7   : > { %567 = vperm.xlu1 %2887, %v3232_v34   ;;  %v407_v23 = vpop.permute.xlu1 %406  ;;  %v423_v24 = vpop.permute.xlu0 %422  ;;  %827 = vperm.xlu0 %2918, %v3123_v8   ;;  %v4308_v8 = vrot.slane %v3408_v25, 7 }
  0xa8   : > { %v469_v1 = vmul.f32 %v407_v23, %v3400_v20 }
  0xa9   : > { %v3435_v39 = vsel %vm284_vm0, %v4308_v8, %v281_v30 }
  0xaa   : > { %v485_v26 = vpack.c.bf16 %v470_v21, %v469_v1  ;;  %4337 = vst [vmem:[#allocation3_spill] sm:$0xff] %v3435_v39  ;;  %v2962_v1 = vld [vmem:[%s4303_s2 + $0x148] sm:$0xff]  }
  0xab   : > { %2888 = vset.pattern.permute.xlu1 %v3041_v2  ;;  %v415_v28 = vpop.permute.xlu1 %414  ;;  %v3413_v29 = vpop.permute.xlu0 %466  ;;  %835 = vperm.xlu0 %2918, %v3136_v11   ;;  %v3429_v11 = vunpack.c.l.bf16 %v3420_v32 }
  0xac   : > { %663 = vperm.xlu1 %2888, %v3246_v37   ;;  %1670 = vmatprep.mubr.bf16.mxu0 %v485_v26  ;;  %v471_v49 = vmul.f32 %v415_v28, %v3425_v35  ;;  %v3475_v28 = vunpack.c.h.bf16 %v3420_v32 }
  0xad   : > { %v268_v44 = vrot.slane %v3429_v11, 7 }
  0xaf   : > { %v419_v33 = vpop.permute.xlu1 %418  ;;  %843 = vperm.xlu0 %2918, %v3154_v15   ;;  %v3440_v15 = vsel %vm284_vm0, %v281_v30, %v266_v36  ;;  %v3466_v21 = vsel %vm284_vm0, %v267_v43, %v268_v44  ;;  %v3478_v30 = vunpack.c.l.bf16 %v3454_v51 }
  0xb0   : > { %v304_v38 = vpop.permute.xlu0 %303  ;;  %667 = vperm.xlu1 %2888, %v3322_v52   ;;  %4338 = vst [vmem:[#allocation4_spill] sm:$0xff] %v3440_v15  ;;  %v472_v46 = vmul.f32 %v419_v33, %v3429_v11  ;;  %v678_v50 = vmul.f32 %v3345_v56, %v3440_v15  ;;  %v384_v33 = vmul.f32 %v3350_v57, %v3466_v21 }
  0xb1   : > { %v381_v41 = vmul.f32 %v304_v38, %v3435_v39  ;;  %v2963_v38 = vld [vmem:[%s4303_s2 + $0x108] sm:$0xff]   ;;  %v383_v57 = vmul.f32 %v3342_v55, %v3462_v18  ;;  %v2965_v55 = vld [vmem:[%s4303_s2 + $0x110] sm:$0xff]  }
  0xb2   : > { %v486_v3 = vpack.c.bf16 %v472_v46, %v471_v49 }
  0xb3   : > { %v427_v42 = vpop.permute.xlu1 %426  ;;  %851 = vperm.xlu0 %2918, %v3322_v52   ;;  %v398_v49 = vpack.c.bf16 %v384_v33, %v383_v57 }
  0xb4   : > { %v309_v47 = vpop.permute.xlu0 %308  ;;  %2890 = vset.pattern.permute.xlu1 %v4311_v45  ;;  %v474_v43 = vmul.f32 %v427_v42, %v3478_v30  ;;  %v270_v42 = vrot.slane %v3478_v30, 7 }
  0xb5   : > { %v382_v48 = vmul.f32 %v309_v47, %v3440_v15  ;;  %715 = vperm.xlu1 %2890, %v3164_v17   ;;  %v2964_v47 = vld [vmem:[%s4303_s2 + $0x150] sm:$0xff]  }
  0xb7   : > { %v397_v61 = vpack.c.bf16 %v382_v48, %v381_v41  ;;  %2922 = vset.pattern.permute.xlu0 %v4315_v54  ;;  %v473_v41 = vmul.f32 %v423_v24, %v3475_v28  ;;  %v269_v24 = vrot.slane %v3475_v28, 7 }
  0xb8   : > { %v324_v23 = vpop.permute.xlu0 %323  ;;  %v620_v56 = vpop.permute.xlu1 %619  ;;  %943 = vperm.xlu0 %2922, %v3259_v40  }
  0xb9   : > { %v679_v26 = vmul.f32 %v620_v56, %v3462_v18  ;;  %2891 = vset.pattern.permute.xlu1 %v3044_v31  ;;  %1671 = vmatmul.mubr.bf16.vlgmr.msra.gmra.mrb[0].mxu0 %v397_v61  ;;  %v487_v61 = vpack.c.bf16 %v474_v43, %v473_v41  ;;  %v3519_v56 = vsel %vm284_vm0, %v269_v24, %v270_v42  ;;  %v2968_v41 = vld [vmem:[%s4303_s2 + $0x160] sm:$0xff]  }
  0xba   : > { %575 = vperm.xlu1 %2891, %v3246_v37   ;;  %1678 = vmatprep.mubr.bf16.mxu0 %v486_v3 }
  0xbb   : > { %v694_v36 = vpack.c.bf16 %v679_v26, %v678_v50  ;;  %2657 = vmatpush3.bf16.msra.mxu0 %v2961_v13  ;;  %v3501_v50 = vld [vmem:[%s3381_s23 + $0x18] sm:$0xff]   ;;  %v3509_v13 = vsel %vm284_vm0, %v268_v44, %v269_v24 }
  0xbc   : > { %v334_v46 = vpop.permute.xlu0 %333  ;;  %2658 = vmatprep.subr.bf16.mxu0 %v2962_v1  ;;  %2925 = vset.pattern.permute.xlu0 %v4306_v14  ;;  %4339 = vst [vmem:[#allocation5_spill] sm:$0xff] %v3509_v13  ;;  %v3522_v1 = vunpack.c.h.bf16 %v3454_v51  ;;  %v3525_v44 = vunpack.c.l.bf16 %v3501_v50  ;;  %v385_v33 = vmul.f32 %v324_v23, %v3509_v13  ;;  %v386_v23 = vmul.f32 %v3357_v59, %v3519_v56  ;;  %v2969_v59 = vld [vmem:[%s4303_s2 + $0x120] sm:$0xff]  }
  0xbd   : > { %v3494_v48 = vpop.permute.xlu1 %527  ;;  %1767 = vmatprep.mubr.bf16.mxu1 %v694_v36  ;;  %995 = vperm.xlu0 %2925, %v3106_v5   ;;  %v2977_v36 = vld [vmem:[%s4303_s2 + $0x1c0] sm:$0xff]   ;;  %v496_v14 = vrot.slane %v3475_v28, 1 }
  0xbe   : > { %2892 = vset.pattern.permute.xlu1 %v3041_v2  ;;  %v2966_v2 = vld [vmem:[%s4303_s2 + $0x158] sm:$0xff]   ;;  %4340 = vst [vmem:[#allocation6_spill] sm:$0xff] %v3522_v1  ;;  %2720 = vmatprep.subr.bf16.mxu1 %v2977_v36  ;;  %v272_v43 = vrot.slane %v3525_v44, 7  ;;  %v399_v57 = vpack.c.bf16 %v386_v23, %v385_v33  ;;  %v2972_v36 = vld [vmem:[%s4303_s2 + $0x170] sm:$0xff]  }
  0xbf   : > { %671 = vperm.xlu1 %2892, %v3259_v40   ;;  %2659 = vmatpush3.bf16.msra.mxu0 %v2963_v38 }
  0xc0   : > { %v3511_v3 = vpop.permute.xlu0 %343  ;;  %2660 = vmatprep.subr.bf16.mxu0 %v2964_v47 }
  0xc1   : > { %1679 = vmatmul.mubr.bf16.gmra.mrb[4].mxu0 %v398_v49  ;;  %999 = vperm.xlu0 %2925, %v3128_v9   ;;  %v2967_v9 = vld [vmem:[%s4303_s2 + $0x118] sm:$0xff]  }
  0xc2   : > { %v431_v26 = vpop.permute.xlu1 %430  ;;  %1686 = vmatprep.mubr.bf16.mxu0 %v487_v61  ;;  %v2970_v61 = vld [vmem:[%s4303_s2 + $0x168] sm:$0xff]  }
  0xc3   : > { %675 = vperm.xlu1 %2892, %v3182_v22   ;;  %2661 = vmatpush3.bf16.msra.mxu0 %v2965_v55  ;;  %v271_v22 = vrot.slane %v3522_v1, 7  ;;  %v475_v24 = vmul.f32 %v431_v26, %v3522_v1 }
  0xc4   : > { %v3535_v38 = vpop.permute.xlu0 %353  ;;  %2662 = vmatprep.subr.bf16.mxu0 %v2966_v2 }
  0xc5   : > { %1007 = vperm.xlu0 %2925, %v3141_v12   ;;  %v3553_v12 = vsel %vm284_vm0, %v270_v42, %v271_v22  ;;  %v3564_v26 = vsel %vm284_vm0, %v271_v22, %v272_v43  ;;  %v3587_v22 = vunpack.c.h.bf16 %v3501_v50 }
  0xc6   : > { %v435_v47 = vpop.permute.xlu1 %434  ;;  %4341 = vst [vmem:[#allocation7_spill] sm:$0xff] %v3553_v12  ;;  %4342 = vst [vmem:[#allocation8_spill] sm:$0xff] %v3564_v26  ;;  %v387_v42 = vmul.f32 %v334_v46, %v3553_v12  ;;  %v3579_v46 = vld [vmem:[%s3381_s23 + $0x20] sm:$0xff]  }
  0xc7   : > { %v476_v49 = vmul.f32 %v435_v47, %v3525_v44  ;;  %2894 = vset.pattern.permute.xlu1 %v4311_v45  ;;  %2663 = vmatpush3.bf16.msra.mxu0 %v2967_v9  ;;  %4343 = vst [vmem:[#allocation9_spill] sm:$0xff] %v3579_v46  ;;  %v3590_v47 = vunpack.c.l.bf16 %v3579_v46 }
  0xc8   : > { %723 = vperm.xlu1 %2894, %v3101_v4   ;;  %v3556_v55 = vpop.permute.xlu0 %363  ;;  %2664 = vmatprep.subr.bf16.mxu0 %v2968_v41  ;;  %v2971_v4 = vld [vmem:[%s4303_s2 + $0x128] sm:$0xff]   ;;  %v388_v41 = vmul.f32 %v3369_v62, %v3564_v26  ;;  %v2974_v62 = vld [vmem:[%s4303_s2 + $0x178] sm:$0xff]  }
  0xc9   : > { %v488_v2 = vpack.c.bf16 %v476_v49, %v475_v24  ;;  %1687 = vmatmul.mubr.bf16.gmra.mrb[8].mxu0 %v399_v57  ;;  %1015 = vperm.xlu0 %2925, %v3232_v34   ;;  %v2975_v49 = vld [vmem:[%s4303_s2 + $0x138] sm:$0xff]  }
  0xca   : > { %v400_v23 = vpack.c.bf16 %v388_v41, %v387_v42  ;;  %v4309_v42 = vrot.slane %v3400_v20, 1  ;;  %v494_v41 = vrot.slane %v3425_v35, 1 }
  0xcb   : > { %v628_v33 = vpop.permute.xlu1 %627  ;;  %1694 = vmatprep.mubr.bf16.mxu0 %v488_v2  ;;  %2665 = vmatpush3.bf16.msra.mxu0 %v2969_v59  ;;  %v273_v59 = vrot.slane %v3587_v22, 7  ;;  %v493_v2 = vrot.slane %v3398_v19, 1 }
  0xcc   : > { %2895 = vset.pattern.permute.xlu1 %v3044_v31  ;;  %v3571_v9 = vpop.permute.xlu0 %373  ;;  %2666 = vmatprep.subr.bf16.mxu0 %v2970_v61  ;;  %v2973_v31 = vld [vmem:[%s4303_s2 + $0x130] sm:$0xff]   ;;  %v4310_v61 = vrot.slane %v3590_v47, 7 }
  0xcd   : > { %583 = vperm.xlu1 %2895, %v3259_v40   ;;  %1023 = vperm.xlu0 %2925, %v3246_v37  }
  0xcf   : > { %2667 = vmatpush3.bf16.msra.mxu0 %v2971_v4 }
  0xd0   : > { %v3592_v57 = vpop.permute.xlu1 %535  ;;  %2668 = vmatprep.subr.bf16.mxu0 %v2972_v36  ;;  %v3614_v36 = vsel %vm284_vm0, %v272_v43, %v273_v59  ;;  %v3632_v43 = vsel %vm509_vm1, %v493_v2, %v494_v41 }
  0xd1   : > { %2896 = vset.pattern.permute.xlu1 %v4311_v45  ;;  %1695 = vmatmul.mubr.bf16.gmra.mrb[12].mxu0 %v400_v23  ;;  %v3598_v24 = vpop.permute.xlu0 %711  ;;  %4344 = vst [vmem:[#allocation10_spill] sm:$0xff] %v3614_v36  ;;  %v3622_v23 = vsel %vm284_vm0, %v273_v59, %v4310_v61  ;;  %4347 = vst [vmem:[#allocation13_spill] sm:$0xff] %v3632_v43  ;;  %v681_v61 = vmul.f32 %v628_v33, %v3509_v13 }
  0xd2   : > { %727 = vperm.xlu1 %2896, %v3113_v6   ;;  %1031 = vperm.xlu0 %2925, %v3259_v40   ;;  %4345 = vst [vmem:[#allocation11_spill] sm:$0xff] %v3622_v23 }
  0xd3   : > { %2669 = vmatpush3.bf16.msra.mxu0 %v2973_v31  ;;  %v3628_v31 = vsel %vm509_vm1, %v4309_v42, %v493_v2  ;;  %v390_v2 = vmul.f32 %v3383_v0, %v3622_v23  ;;  %v2979_v0 = vld [vmem:[%s4303_s2 + $0x1c8] sm:$0xff]  }
  0xd4   : > { %2670 = vmatprep.subr.bf16.mxu0 %v2974_v62  ;;  %4346 = vst [vmem:[#allocation12_spill] sm:$0xff] %v3628_v31 }
  0xd5   : > { %v439_v4 = vpop.permute.xlu1 %438  ;;  %v3610_v6 = vpop.permute.xlu0 %719 }
  0xd6   : > { %731 = vperm.xlu1 %2896, %v3106_v5   ;;  %v389_v5 = vmul.f32 %v3511_v3, %v3614_v36  ;;  %v477_v59 = vmul.f32 %v439_v4, %v3587_v22  ;;  %v590_v3 = vmul.f32 %v3494_v48, %v3628_v31  ;;  %v3657_v48 = vld [vmem:[%s3381_s23 + $0x28] sm:$0xff]  }
  0xd7   : > { %2671 = vmatpush3.bf16.msra.mxu0 %v2975_v49  ;;  %v680_v49 = vmul.f32 %v3352_v58, %v3466_v21  ;;  %4348 = vst [vmem:[#allocation14_spill] sm:$0xff] %v3657_v48 }
  0xd8   : > { %v401_v45 = vpack.c.bf16 %v390_v2, %v389_v5  ;;  %v3016_v5 = vld [vmem:[%s4302_s1] sm:$0xff] }
  0xd9   : > { %v443_v62 = vpop.permute.xlu1 %442  ;;  %v695_v33 = vpack.c.bf16 %v681_v61, %v680_v49  ;;  %v2980_v61 = vld [vmem:[%s4303_s2 + $0x188] sm:$0xff]   ;;  %v3675_v49 = vunpack.c.h.bf16 %v3579_v46  ;;  %v4354_v46 = vmov 7  }
  0xda   : > { %v478_v8 = vmul.f32 %v443_v62, %v3590_v47  ;;  %v532_v42 = vpop.permute.xlu0 %531  ;;  %2897 = vset.pattern.permute.xlu1 %v4315_v54  ;;  %v495_v62 = vrot.slane %v3429_v11, 1  ;;  %v2978_v54 = vld [vmem:[%s4303_s2 + $0x180] sm:$0xff]  }
  0xdb   : > { %v591_v58 = vmul.f32 %v532_v42, %v3632_v43  ;;  %891 = vperm.xlu1 %2897, %v3164_v17   ;;  %v4349_v42 = vmov 6   ;;  %4350 = vst [vmem:[#allocation15_spill] sm:$0xff] %v3675_v49 }
  0xdc   : > { %v489_v4 = vpack.c.bf16 %v478_v8, %v477_v59  ;;  %v3661_v17 = vsel %vm509_vm1, %v495_v62, %v496_v14  ;;  %v3669_v59 = vsel %vm509_vm1, %v494_v41, %v495_v62  ;;  %v2981_v41 = vld [vmem:[%s4303_s2 + $0x1d0] sm:$0xff]  }
  0xdd   : > { %v606_v53 = vpack.c.bf16 %v591_v58, %v590_v3  ;;  %v497_v3 = vrot.slane %v3478_v30, 1  ;;  %v498_v58 = vrot.slane %v3522_v1, 1  ;;  %v592_v62 = vmul.f32 %v3592_v57, %v3669_v59 }
  0xde   : > { %v636_v15 = vpop.permute.xlu1 %635  ;;  %1702 = vmatprep.mubr.bf16.mxu0 %v489_v4  ;;  %v540_v8 = vpop.permute.xlu0 %539 }
  0xdf   : > { %2898 = vset.pattern.permute.xlu1 %v4349_v42  ;;  %1703 = vmatmul.mubr.bf16.gmra.mrb[16].mxu0 %v401_v45  ;;  %v3678_v45 = vunpack.c.l.bf16 %v3657_v48  ;;  %v683_v2 = vmul.f32 %v636_v15, %v3553_v12  ;;  %v3705_v31 = vsel %vm509_vm1, %v497_v3, %v498_v58  ;;  %v3709_v12 = vsel %vm509_vm1, %v496_v14, %v497_v3 }
  0xe0   : > { %1768 = vmatmul.mubr.bf16.vlgmr.msra.gmra.mrb[0].mxu1 %v606_v53  ;;  %799 = vperm.xlu1 %2898, %v3016_v5   ;;  %v593_v53 = vmul.f32 %v540_v8, %v3661_v17  ;;  %v2983_v8 = vld [vmem:[%s4303_s2 + $0x190] sm:$0xff]  }
  0xe1   : > { %1775 = vmatprep.mubr.bf16.mxu1 %v695_v33  ;;  %2721 = vmatpush3.bf16.msra.mxu1 %v2978_v54  ;;  %v682_v54 = vmul.f32 %v3359_v60, %v3519_v56  ;;  %v4351_v33 = vmov 5   ;;  %v275_v60 = vrot.slane %v3675_v49, 7  ;;  %v4324_v57 = vrot.slane %v3678_v45, 7 }
  0xe2   : > { %2722 = vmatprep.subr.bf16.mxu1 %v2979_v0  ;;  %v3695_v0 = vld [vmem:[%s4302_s1 + $0x30] sm:$0xff]  ;;  %v607_v15 = vpack.c.bf16 %v593_v53, %v592_v62  ;;  %v548_v19 = vpop.permute.xlu0 %547  ;;  %v2985_v62 = vld [vmem:[%s4303_s2 + $0x198] sm:$0xff]  }
  0xe3   : > { %v544_v4 = vpop.permute.xlu1 %543  ;;  %v696_v5 = vpack.c.bf16 %v683_v2, %v682_v54  ;;  %v3723_v2 = vld [vmem:[%s4302_s1 + $0x38] sm:$0xff]  ;;  %v595_v14 = vmul.f32 %v548_v19, %v3705_v31 }
  0xe4   : > { %2900 = vset.pattern.permute.xlu1 %v4351_v33  ;;  %v594_v3 = vmul.f32 %v544_v4, %v3709_v12 }
  0xe5   : > { %735 = vperm.xlu1 %2900, %v3695_v0   ;;  %2723 = vmatpush3.bf16.msra.mxu1 %v2980_v61  ;;  %v2984_v61 = vld [vmem:[%s4303_s2 + $0x1d8] sm:$0xff]  }
  0xe6   : > { %2724 = vmatprep.subr.bf16.mxu1 %v2981_v41  ;;  %v4352_v41 = vrot.slane %v3590_v47, 7 }
  0xe8   : > { %1776 = vmatmul.mubr.bf16.gmra.mrb[4].mxu1 %v607_v15  ;;  %v447_v53 = vpop.permute.xlu1 %446  ;;  %v3718_v54 = vsel %vm284_vm0, %v4352_v41, %v275_v60  ;;  %v3735_v15 = vsel %vm284_vm0, %v275_v60, %v4324_v57  ;;  %v608_v60 = vpack.c.bf16 %v595_v14, %v594_v3  ;;  %v2988_v3 = vld [vmem:[%s4303_s2 + $0x1e8] sm:$0xff]  }
  0xe9   : > { %4353 = vst [vmem:[#allocation16_spill] sm:$0xff] %v3718_v54  ;;  %1783 = vmatprep.mubr.bf16.mxu1 %v696_v5  ;;  %739 = vperm.xlu1 %2900, %v3723_v2   ;;  %v2986_v5 = vld [vmem:[%s4303_s2 + $0x1e0] sm:$0xff]   ;;  %v391_v19 = vmul.f32 %v3535_v38, %v3718_v54  ;;  %v392_v1 = vmul.f32 %v3393_v16, %v3735_v15  ;;  %v499_v38 = vrot.slane %v3525_v44, 1 }
  0xea   : > { %2725 = vmatpush3.bf16.msra.mxu1 %v2983_v8  ;;  %v479_v8 = vmul.f32 %v447_v53, %v3675_v49  ;;  %v684_v16 = vmul.f32 %v3371_v63, %v3564_v26  ;;  %v3774_v63 = vld [vmem:[%s4302_s1 + $0x10] sm:$0xff]  ;;  %v4358_v26 = vrot.slane %v3587_v22, 1 }
  0xeb   : > { %2726 = vmatprep.subr.bf16.mxu1 %v2984_v61  ;;  %v3750_v61 = vld [vmem:[%s4302_s1 + $0x18] sm:$0xff]  ;;  %v402_v14 = vpack.c.bf16 %v392_v1, %v391_v19  ;;  %v3782_v19 = vsel %vm509_vm1, %v498_v58, %v499_v38  ;;  %v2992_v58 = vld [vmem:[%s4303_s2 + $0x1b0] sm:$0xff]  }
  0xec   : > { %v451_v4 = vpop.permute.xlu1 %450 }
  0xed   : > { %v480_v41 = vmul.f32 %v451_v4, %v3678_v45  ;;  %2901 = vset.pattern.permute.xlu1 %v4354_v46  ;;  %v2987_v4 = vld [vmem:[%s4303_s2 + $0x1a0] sm:$0xff]  }
  0xee   : > { %899 = vperm.xlu1 %2901, %v3750_v61   ;;  %2727 = vmatpush3.bf16.msra.mxu1 %v2985_v62  ;;  %v556_v62 = vpop.permute.xlu0 %555 }
  0xef   : > { %v490_v53 = vpack.c.bf16 %v480_v41, %v479_v8  ;;  %2728 = vmatprep.subr.bf16.mxu1 %v2986_v5  ;;  %v4355_v5 = vrot.slane %v3587_v22, 1  ;;  %v2991_v41 = vld [vmem:[%s4303_s2 + $0x1f0] sm:$0xff]  }
  0xf0   : > { %1784 = vmatmul.mubr.bf16.gmra.mrb[8].mxu1 %v608_v60 }
  0xf1   : > { %v644_v13 = vpop.permute.xlu1 %643  ;;  %1710 = vmatprep.mubr.bf16.mxu0 %v490_v53  ;;  %v3769_v8 = vsel %vm509_vm1, %v499_v38, %v4355_v5  ;;  %v3800_v38 = vld [vmem:[%s3381_s23 + $0x30] sm:$0xff]  }
  0xf2   : > { %v685_v57 = vmul.f32 %v644_v13, %v3614_v36  ;;  %2902 = vset.pattern.permute.xlu1 %v4349_v42  ;;  %1711 = vmatmul.mubr.bf16.gmra.mrb[20].mxu0 %v402_v14  ;;  %v2989_v13 = vld [vmem:[%s4303_s2 + $0x1a8] sm:$0xff]   ;;  %v597_v60 = vmul.f32 %v556_v62, %v3769_v8  ;;  %v2993_v14 = vld [vmem:[%s4303_s2 + $0x1f8] sm:$0xff]   ;;  %v3806_v62 = vunpack.c.h.bf16 %v3657_v48  ;;  %v3809_v5 = vunpack.c.l.bf16 %v3800_v38 }
  0xf3   : > { %807 = vperm.xlu1 %2902, %v3774_v63   ;;  %2729 = vmatpush3.bf16.msra.mxu1 %v2987_v4  ;;  %v686_v36 = vmul.f32 %v3385_v7, %v3622_v23  ;;  %v501_v7 = vrot.slane %v3590_v47, 1  ;;  %v560_v23 = vpop.permute.xlu0 %559 }
  0xf4   : > { %v697_v1 = vpack.c.bf16 %v685_v57, %v684_v16  ;;  %2730 = vmatprep.subr.bf16.mxu1 %v2988_v3  ;;  %v3793_v57 = vld [vmem:[%s4302_s1 + $0x40] sm:$0xff] }
  0xf6   : > { %v552_v53 = vpop.permute.xlu1 %551  ;;  %1791 = vmatprep.mubr.bf16.mxu1 %v697_v1  ;;  %v2994_v1 = vld [vmem:[%s4303_s2 + $0x1b8] sm:$0xff]  }
  0xf7   : > { %v596_v4 = vmul.f32 %v552_v53, %v3782_v19  ;;  %2903 = vset.pattern.permute.xlu1 %v4351_v33  ;;  %2731 = vmatpush3.bf16.msra.mxu1 %v2989_v13  ;;  %v3814_v13 = vld [vmem:[%s4302_s1 + $0x48] sm:$0xff] }
  0xf8   : > { %743 = vperm.xlu1 %2903, %v3793_v57   ;;  %2732 = vmatprep.subr.bf16.mxu1 %v2991_v41 }
  0xf9   : > { %v609_v16 = vpack.c.bf16 %v597_v60, %v596_v4  ;;  %v277_v4 = vrot.slane %v3806_v62, 7 }
  0xfb   : > { %v455_v3 = vpop.permute.xlu1 %454  ;;  %1792 = vmatmul.mubr.bf16.gmra.mrb[12].mxu1 %v609_v16  ;;  %v3023_v16 = vld [vmem:[%s4302_s1 + $0x28] sm:$0xff] }
  0xfc   : > { %747 = vperm.xlu1 %2903, %v3814_v13   ;;  %2733 = vmatpush3.bf16.msra.mxu1 %v2992_v58  ;;  %v481_v60 = vmul.f32 %v455_v3, %v3806_v62  ;;  %v4356_v3 = vrot.slane %v3678_v45, 7 }
  0xfd   : > { %2734 = vmatprep.subr.bf16.mxu1 %v2993_v14  ;;  %v278_v14 = vrot.slane %v3809_v5, 7 }
  0xff   : > { %v459_v41 = vpop.permute.xlu1 %458 }
 0x100   : > { %v482_v53 = vmul.f32 %v459_v41, %v3809_v5  ;;  %2904 = vset.pattern.permute.xlu1 %v4354_v46  ;;  %2735 = vmatpush3.bf16.msra.mxu1 %v2994_v1  ;;  %v3834_v1 = vsel %vm284_vm0, %v4356_v3, %v277_v4 }
 0x101   : > { %907 = vperm.xlu1 %2904, %v3023_v16   ;;  %4357 = vst [vmem:[#allocation17_spill] sm:$0xff] %v3834_v1  ;;  %v3847_v16 = vsel %vm284_vm0, %v277_v4, %v278_v14 }
 0x102   : > { %v491_v58 = vpack.c.bf16 %v482_v53, %v481_v60  ;;  %v3841_v60 = vld [vmem:[%s4302_s1 + $0x20] sm:$0xff] }
 0x104   : > { %v652_v48 = vpop.permute.xlu1 %651  ;;  %1718 = vmatprep.mubr.bf16.mxu0 %v491_v58  ;;  %v393_v58 = vmul.f32 %v3556_v55, %v3834_v1 }
 0x105   : > { %v687_v41 = vmul.f32 %v652_v48, %v3718_v54  ;;  %2905 = vset.pattern.permute.xlu1 %v4349_v42  ;;  %v502_v48 = vrot.slane %v3675_v49, 1  ;;  %v3870_v49 = vld [vmem:[%s4302_s1 + $0x58] sm:$0xff] }
 0x106   : > { %815 = vperm.xlu1 %2905, %v3841_v60  }
 0x107   : > { %v698_v53 = vpack.c.bf16 %v687_v41, %v686_v36  ;;  %v3858_v36 = vsel %vm509_vm1, %v4358_v26, %v501_v7  ;;  %v3863_v55 = vsel %vm509_vm1, %v501_v7, %v502_v48 }
 0x108   : > { %v598_v41 = vmul.f32 %v560_v23, %v3858_v36 }
 0x109   : > { %v369_v3 = vpop.permute.xlu1 %368  ;;  %1799 = vmatprep.mubr.bf16.mxu1 %v698_v53 }
 0x10a   : > { %v394_v54 = vmul.f32 %v369_v3, %v3847_v16  ;;  %2907 = vset.pattern.permute.xlu1 %v4351_v33 }
 0x10b   : > { %751 = vperm.xlu1 %2907, %v3232_v34   ;;  %v3874_v34 = vunpack.c.h.bf16 %v3800_v38 }
 0x10c   : > { %v403_v4 = vpack.c.bf16 %v394_v54, %v393_v58  ;;  %v484_v54 = vmul.f32 %v3413_v29, %v3408_v25 }
 0x10e   : > { %v564_v53 = vpop.permute.xlu1 %563  ;;  %1719 = vmatmul.mubr.bf16.gmra.mrb[24].mxu0 %v403_v4 }
 0x10f   : > { %v599_v3 = vmul.f32 %v564_v53, %v3863_v55  ;;  %755 = vperm.xlu1 %2907, %v3870_v49   ;;  %v279_v53 = vrot.slane %v3874_v34, 7 }
 0x111   : > { %v610_v26 = vpack.c.bf16 %v599_v3, %v598_v41  ;;  %v3886_v29 = vsel %vm284_vm0, %v278_v14, %v279_v53 }
 0x112   : > { %4359 = vst [vmem:[#allocation18_spill] sm:$0xff] %v3886_v29  ;;  %v395_v14 = vmul.f32 %v3571_v9, %v3886_v29 }
 0x113   : > { %2908 = vset.pattern.permute.xlu1 %v4354_v46  ;;  %v463_v23 = vpop.permute.xlu1 %462  ;;  %1800 = vmatmul.mubr.bf16.gmra.mrb[16].mxu1 %v610_v26 }
 0x114   : > { %v483_v7 = vmul.f32 %v463_v23, %v3874_v34  ;;  %915 = vperm.xlu1 %2908, %v3723_v2   ;;  %v504_v23 = vrot.slane %v3806_v62, 1 }
 0x116   : > { %v492_v58 = vpack.c.bf16 %v484_v54, %v483_v7  ;;  %v503_v54 = vrot.slane %v3678_v45, 1 }
 0x118   : > { %2909 = vset.pattern.permute.xlu1 %v4349_v42  ;;  %v656_v4 = vpop.permute.xlu1 %655  ;;  %1726 = vmatprep.mubr.bf16.mxu0 %v492_v58 }
 0x119   : > { %823 = vperm.xlu1 %2909, %v3695_v0   ;;  %v688_v3 = vmul.f32 %v656_v4, %v3735_v15  ;;  %v4360_v0 = vrot.slane %v3408_v25, 7 }
 0x11b   : > { %v3898_v58 = vsel %vm284_vm0, %v279_v53, %v4360_v0 }
 0x11c   : > { %v660_v41 = vpop.permute.xlu1 %659 }
 0x11d   : > { %v689_v26 = vmul.f32 %v660_v41, %v3834_v1  ;;  %2910 = vset.pattern.permute.xlu1 %v4351_v33  ;;  %v3906_v1 = vsel %vm509_vm1, %v503_v54, %v504_v23 }
 0x11e   : > { %759 = vperm.xlu1 %2910, %v3246_v37   ;;  %v572_v37 = vpop.permute.xlu0 %571 }
 0x11f   : > { %v699_v7 = vpack.c.bf16 %v689_v26, %v688_v3  ;;  %v3910_v26 = vsel %vm509_vm1, %v502_v48, %v503_v54  ;;  %v601_v53 = vmul.f32 %v572_v37, %v3906_v1  ;;  %v3921_v48 = vld [vmem:[%s4303_s2 + $0x200] sm:$0xff]   ;;  %v505_v37 = vrot.slane %v3809_v5, 1 }
 0x120   : > { %2800 = vmatprep.subr.bf16.mxu0 %v3921_v48  ;;  %2832 = vmatprep.subr.bf16.mxu1 %v3921_v48 }
 0x121   : > { %v379_v4 = vpop.permute.xlu1 %378  ;;  %1807 = vmatprep.mubr.bf16.mxu1 %v699_v7 }
 0x122   : > { %v396_v41 = vmul.f32 %v379_v4, %v3898_v58  ;;  %763 = vperm.xlu1 %2910, %v3322_v52  }
 0x124   : > { %v404_v3 = vpack.c.bf16 %v396_v41, %v395_v14 }
 0x126   : > { %2911 = vset.pattern.permute.xlu1 %v4354_v46  ;;  %v568_v9 = vpop.permute.xlu1 %567  ;;  %1727 = vmatmul.mubr.bf16.gmra.mrb[28].mxu0 %v404_v3 }
 0x127   : > { %v600_v7 = vmul.f32 %v568_v9, %v3910_v26  ;;  %923 = vperm.xlu1 %2911, %v3814_v13  }
 0x129   : > { %v611_v0 = vpack.c.bf16 %v601_v53, %v600_v7  ;;  %v774_v53 = vmul.f32 %v3598_v24, %v3632_v43  ;;  %v3946_v24 = vsel %vm509_vm1, %v504_v23, %v505_v37  ;;  %v4361_v43 = vrot.slane %v3400_v20, 1 }
 0x12b   : > { %2912 = vset.pattern.permute.xlu1 %v4349_v42  ;;  %v664_v4 = vpop.permute.xlu1 %663  ;;  %1808 = vmatmul.mubr.bf16.gmra.mrb[20].mxu1 %v611_v0 }
 0x12c   : > { %831 = vperm.xlu1 %2912, %v3793_v57   ;;  %v690_v14 = vmul.f32 %v664_v4, %v3847_v16  ;;  %v506_v57 = vrot.slane %v3874_v34, 1 }
 0x12e   : > { %v3942_v0 = vsel %vm509_vm1, %v505_v37, %v506_v57 }
 0x12f   : > { %v668_v54 = vpop.permute.xlu1 %667 }
 0x130   : > { %v691_v41 = vmul.f32 %v668_v54, %v3886_v29  ;;  %2913 = vset.pattern.permute.xlu1 %v4351_v33  ;;  %v3937_v33 = vld [vmem:[%s4302_s1 + $0x78] sm:$0xff] }
 0x131   : > { %767 = vperm.xlu1 %2913, %v3259_v40   ;;  %v580_v40 = vpop.permute.xlu0 %579  ;;  %v3992_v29 = vld [vmem:[%s4303_s2 + $0x218] sm:$0xff]  }
 0x132   : > { %v700_v3 = vpack.c.bf16 %v691_v41, %v690_v14  ;;  %v603_v54 = vmul.f32 %v580_v40, %v3942_v0  ;;  %v3953_v41 = vld [vmem:[%s4303_s2 + $0x208] sm:$0xff]  }
 0x134   : > { %v716_v9 = vpop.permute.xlu1 %715  ;;  %1815 = vmatprep.mubr.bf16.mxu1 %v700_v3 }
 0x135   : > { %v775_v7 = vmul.f32 %v716_v9, %v3669_v59  ;;  %771 = vperm.xlu1 %2913, %v3937_v33   ;;  %v3027_v9 = vld [vmem:[%s4302_s1 + $0x50] sm:$0xff] }
 0x137   : > { %v790_v4 = vpack.c.bf16 %v775_v7, %v774_v53  ;;  %v588_v53 = vpop.permute.xlu0 %587 }
 0x139   : > { %2914 = vset.pattern.permute.xlu1 %v4354_v46  ;;  %v576_v14 = vpop.permute.xlu1 %575  ;;  %1864 = vmatprep.mubr.bf16.mxu0 %v790_v4 }
 0x13a   : > { %v602_v3 = vmul.f32 %v576_v14, %v3946_v24  ;;  %931 = vperm.xlu1 %2914, %v3870_v49   ;;  %1865 = vmatmul.mubr.bf16.vlgmr.msra.gmra.mrb[32].mxu0 %v3388_v10  ;;  %v3968_v10 = vld [vmem:[%s4303_s2 + $0x210] sm:$0xff]   ;;  %v507_v14 = vrot.slane %v3408_v25, 1 }
 0x13b   : > { %2801 = vmatpush3.bf16.msra.mxu0 %v3921_v48 }
 0x13c   : > { %v612_v23 = vpack.c.bf16 %v603_v54, %v602_v3  ;;  %2802 = vmatprep.subr.bf16.mxu0 %v3953_v41  ;;  %v3028_v54 = vld [vmem:[%s4302_s1 + $0x60] sm:$0xff]  ;;  %v804_v3 = vpop.permute.xlu0 %803 }
 0x13e   : > { %2915 = vset.pattern.permute.xlu1 %v4349_v42  ;;  %v672_v37 = vpop.permute.xlu1 %671  ;;  %1816 = vmatmul.mubr.bf16.gmra.mrb[24].mxu1 %v612_v23 }
 0x13f   : > { %839 = vperm.xlu1 %2915, %v3027_v9   ;;  %2803 = vmatpush3.bf16.msra.mxu0 %v3953_v41  ;;  %v692_v40 = vmul.f32 %v672_v37, %v3898_v58  ;;  %v776_v37 = vmul.f32 %v3610_v6, %v3661_v17  ;;  %v3996_v6 = vsel %vm509_vm1, %v506_v57, %v507_v14 }
 0x140   : > { %2804 = vmatprep.subr.bf16.mxu0 %v3968_v10 }
 0x142   : > { %v676_v7 = vpop.permute.xlu1 %675 }
 0x143   : > { %v693_v4 = vmul.f32 %v676_v7, %v3435_v39  ;;  %2916 = vset.pattern.permute.xlu1 %v4354_v46  ;;  %2805 = vmatpush3.bf16.msra.mxu0 %v3968_v10  ;;  %v3987_v39 = vsel %vm509_vm1, %v507_v14, %v4361_v43 }
 0x144   : > { %935 = vperm.xlu1 %2916, %v3028_v54   ;;  %2806 = vmatprep.subr.bf16.mxu0 %v3992_v29 }
 0x145   : > { %v701_v23 = vpack.c.bf16 %v693_v4, %v692_v40  ;;  %v3998_v4 = vpop.permute.xlu0 %811 }
 0x147   : > { %v724_v9 = vpop.permute.xlu1 %723  ;;  %1823 = vmatprep.mubr.bf16.mxu1 %v701_v23  ;;  %v4362_v23 = vmov 8   ;;  %2807 = vmatpush3.bf16.msra.mxu0 %v3992_v29 }
 0x148   : > { %v777_v7 = vmul.f32 %v724_v9, %v3709_v12  ;;  %939 = vperm.xlu1 %2916, %v3322_v52   ;;  %v605_v52 = vmul.f32 %v588_v53, %v3987_v39  ;;  %2808 = vmatprep.subr.bf16.mxu0 %v4012_v27 }
 0x149   : > { %v4014_v53 = vpop.permute.xlu0 %819 }
 0x14a   : > { %v791_v40 = vpack.c.bf16 %v777_v7, %v776_v37  ;;  %v3029_v37 = vld [vmem:[%s4302_s1 + $0x8] sm:$0xff] }
 0x14b   : > { %2809 = vmatpush3.bf16.msra.mxu0 %v4012_v27 }
 0x14c   : > { %2919 = vset.pattern.permute.xlu1 %v4362_v23  ;;  %v584_v43 = vpop.permute.xlu1 %583  ;;  %1872 = vmatprep.mubr.bf16.mxu0 %v791_v40 }
 0x14d   : > { %v604_v9 = vmul.f32 %v584_v43, %v3996_v6  ;;  %979 = vperm.xlu1 %2919, %v3029_v37   ;;  %1873 = vmatmul.mubr.bf16.gmra.mrb[36].mxu0 %v3420_v32  ;;  %v4022_v32 = vld [vmem:[%s4303_s2 + $0x228] sm:$0xff]   ;;  %v888_v43 = vpop.permute.xlu0 %887 }
 0x14e   : > { %2810 = vmatprep.subr.bf16.mxu0 %v4022_v32  ;;  %v950_v37 = vmul.f32 %v888_v43, %v3425_v35  ;;  %v863_v35 = vmul.f32 %v804_v3, %v3466_v21  ;;  %v3030_v3 = vld [vmem:[%s4302_s1 + $0x70] sm:$0xff] }
 0x14f   : > { %v613_v57 = vpack.c.bf16 %v605_v52, %v604_v9  ;;  %2811 = vmatpush3.bf16.msra.mxu0 %v4022_v32 }
 0x151   : > { %2920 = vset.pattern.permute.xlu1 %v4349_v42  ;;  %v728_v14 = vpop.permute.xlu1 %727  ;;  %1824 = vmatmul.mubr.bf16.gmra.mrb[28].mxu1 %v613_v57 }
 0x152   : > { %847 = vperm.xlu1 %2920, %v3028_v54   ;;  %v778_v40 = vmul.f32 %v728_v14, %v3705_v31  ;;  %v4032_v54 = vld [vmem:[%s4303_s2 + $0x230] sm:$0xff]   ;;  %v4041_v14 = vld [vmem:[%s4303_s2 + $0x238] sm:$0xff]  }
 0x153   : > { %2812 = vmatprep.subr.bf16.mxu0 %v4032_v54 }
 0x154   : > { %2813 = vmatpush3.bf16.msra.mxu0 %v4032_v54 }
 0x155   : > { %v732_v7 = vpop.permute.xlu1 %731  ;;  %2814 = vmatprep.subr.bf16.mxu0 %v4041_v14 }
 0x156   : > { %v779_v52 = vmul.f32 %v732_v7, %v3782_v19  ;;  %2921 = vset.pattern.permute.xlu1 %v4362_v23 }
 0x157   : > { %983 = vperm.xlu1 %2921, %v3774_v63  }
 0x158   : > { %v792_v9 = vpack.c.bf16 %v779_v52, %v778_v40  ;;  %2815 = vmatpush3.bf16.msra.mxu0 %v4041_v14 }
 0x15a   : > { %v892_v57 = vpop.permute.xlu1 %891  ;;  %1880 = vmatprep.mubr.bf16.mxu0 %v792_v9 }
 0x15b   : > { %v951_v7 = vmul.f32 %v892_v57, %v3429_v11  ;;  %987 = vperm.xlu1 %2921, %v3750_v61   ;;  %1881 = vmatmul.mubr.bf16.gmra.mrb[40].mxu0 %v3454_v51 }
 0x15d   : > { %v966_v63 = vpack.c.bf16 %v951_v7, %v950_v37  ;;  %v4363_v37 = vld [vmem:[#allocation5_spill] sm:$0xff] }
 0x15f   : > { %2923 = vset.pattern.permute.xlu1 %v4354_v46  ;;  %v800_v40 = vpop.permute.xlu1 %799  ;;  %1961 = vmatprep.mubr.bf16.mxu1 %v966_v63  ;;  %v4365_v63 = vld [vmem:[#allocation9_spill] sm:$0xff] }
 0x160   : > { %v862_v52 = vmul.f32 %v800_v40, %v3462_v18  ;;  %947 = vperm.xlu1 %2923, %v3937_v33   ;;  %v896_v18 = vpop.permute.xlu0 %895  ;;  %v4366_v40 = vld [vmem:[#allocation8_spill] sm:$0xff] }
 0x162   : > { %v878_v11 = vpack.c.bf16 %v863_v35, %v862_v52  ;;  %v867_v52 = vmul.f32 %v4014_v53, %v4366_v40 }
 0x164   : > { %2924 = vset.pattern.permute.xlu1 %v4362_v23  ;;  %v736_v61 = vpop.permute.xlu1 %735  ;;  %1962 = vmatmul.mubr.bf16.vlgmr.msra.gmra.mrb[32].mxu1 %v878_v11 }
 0x165   : > { %991 = vperm.xlu1 %2924, %v3841_v60   ;;  %2840 = vmatpush3.bf16.msra.mxu1 %v3921_v48  ;;  %v780_v21 = vmul.f32 %v736_v61, %v3769_v8  ;;  %v952_v48 = vmul.f32 %v896_v18, %v3475_v28  ;;  %v4367_v61 = vld [vmem:[#allocation7_spill] sm:$0xff] }
 0x166   : > { %2833 = vmatprep.subr.bf16.mxu1 %v3953_v41 }
 0x168   : > { %v740_v51 = vpop.permute.xlu1 %739 }
 0x169   : > { %v781_v46 = vmul.f32 %v740_v51, %v3858_v36  ;;  %2926 = vset.pattern.permute.xlu1 %v4349_v42  ;;  %2841 = vmatpush3.bf16.msra.mxu1 %v3953_v41  ;;  %v865_v41 = vmul.f32 %v3998_v4, %v3519_v56  ;;  %v904_v56 = vpop.permute.xlu0 %903 }
 0x16a   : > { %855 = vperm.xlu1 %2926, %v3030_v3   ;;  %2834 = vmatprep.subr.bf16.mxu1 %v3968_v10 }
 0x16b   : > { %v793_v60 = vpack.c.bf16 %v781_v46, %v780_v21 }
 0x16d   : > { %v900_v43 = vpop.permute.xlu1 %899  ;;  %1888 = vmatprep.mubr.bf16.mxu0 %v793_v60  ;;  %2842 = vmatpush3.bf16.msra.mxu1 %v3968_v10 }
 0x16e   : > { %v953_v9 = vmul.f32 %v900_v43, %v3478_v30  ;;  %859 = vperm.xlu1 %2926, %v3937_v33   ;;  %1889 = vmatmul.mubr.bf16.gmra.mrb[44].mxu0 %v3501_v50 }
 0x16f   : > { %2835 = vmatprep.subr.bf16.mxu1 %v3992_v29 }
 0x170   : > { %v967_v42 = vpack.c.bf16 %v953_v9, %v952_v48 }
 0x171   : > { %2843 = vmatpush3.bf16.msra.mxu1 %v3992_v29 }
 0x172   : > { %2927 = vset.pattern.permute.xlu1 %v4362_v23  ;;  %v808_v28 = vpop.permute.xlu1 %807  ;;  %1969 = vmatprep.mubr.bf16.mxu1 %v967_v42 }
 0x173   : > { %v864_v10 = vmul.f32 %v808_v28, %v4363_v37  ;;  %1003 = vperm.xlu1 %2927, %v3723_v2   ;;  %2836 = vmatprep.subr.bf16.mxu1 %v4012_v27  ;;  %v912_v2 = vpop.permute.xlu0 %911 }
 0x174   : > { %v956_v28 = vmul.f32 %v912_v2, %v3587_v22  ;;  %v4370_v22 = vld [vmem:[#allocation10_spill] sm:$0xff] }
 0x175   : > { %v879_v30 = vpack.c.bf16 %v865_v41, %v864_v10  ;;  %2844 = vmatpush3.bf16.msra.mxu1 %v4012_v27 }
 0x176   : > { %2837 = vmatprep.subr.bf16.mxu1 %v4022_v32 }
 0x177   : > { %1011 = vperm.xlu1 %2927, %v3814_v13   ;;  %v744_v50 = vpop.permute.xlu1 %743  ;;  %1970 = vmatmul.mubr.bf16.gmra.mrb[36].mxu1 %v879_v30  ;;  %v3031_v13 = vld [vmem:[%s4302_s1 + $0x68] sm:$0xff]  ;;  %v920_v35 = vpop.permute.xlu0 %919 }
 0x178   : > { %v782_v4 = vmul.f32 %v744_v50, %v3863_v55  ;;  %v4368_v50 = vld [vmem:[#allocation14_spill] sm:$0xff] }
 0x179   : > { %2845 = vmatpush3.bf16.msra.mxu1 %v4022_v32  ;;  %v4364_v32 = vld [vmem:[#allocation6_spill] sm:$0xff] }
 0x17a   : > { %2838 = vmatprep.subr.bf16.mxu1 %v4032_v54  ;;  %v954_v57 = vmul.f32 %v904_v56, %v4364_v32  ;;  %v4369_v32 = vld [vmem:[#allocation11_spill] sm:$0xff] }
 0x17b   : > { %1019 = vperm.xlu1 %2927, %v3870_v49   ;;  %v748_v29 = vpop.permute.xlu1 %747  ;;  %v4098_v21 = vpop.permute.xlu0 %927 }
 0x17c   : > { %v783_v23 = vmul.f32 %v748_v29, %v3910_v26 }
 0x17d   : > { %2846 = vmatpush3.bf16.msra.mxu1 %v4032_v54 }
 0x17e   : > { %v794_v27 = vpack.c.bf16 %v783_v23, %v782_v4  ;;  %2839 = vmatprep.subr.bf16.mxu1 %v4041_v14 }
 0x17f   : > { %1027 = vperm.xlu1 %2927, %v3031_v13   ;;  %v4100_v60 = vpop.permute.xlu0 %975 }
 0x180   : > { %v908_v7 = vpop.permute.xlu1 %907  ;;  %1896 = vmatprep.mubr.bf16.mxu0 %v794_v27 }
 0x181   : > { %v955_v49 = vmul.f32 %v908_v7, %v3525_v44  ;;  %1897 = vmatmul.mubr.bf16.gmra.mrb[48].mxu0 %v4365_v63  ;;  %2847 = vmatpush3.bf16.msra.mxu1 %v4041_v14 }
 0x183   : > { %v968_v54 = vpack.c.bf16 %v955_v49, %v954_v57  ;;  %1035 = vperm.xlu1 %2927, %v3937_v33   ;;  %v828_v56 = vpop.permute.xlu0 %827 }
 0x184   : > { %v869_v57 = vmul.f32 %v828_v56, %v4369_v32 }
 0x185   : > { %v816_v11 = vpop.permute.xlu1 %815  ;;  %1977 = vmatprep.mubr.bf16.mxu1 %v968_v54 }
 0x186   : > { %v866_v51 = vmul.f32 %v816_v11, %v4367_v61 }
 0x188   : > { %v880_v46 = vpack.c.bf16 %v867_v52, %v866_v51 }
 0x18a   : > { %v752_v18 = vpop.permute.xlu1 %751  ;;  %1978 = vmatmul.mubr.bf16.gmra.mrb[40].mxu1 %v880_v46 }
 0x18b   : > { %v784_v43 = vmul.f32 %v752_v18, %v3906_v1 }
 0x18c   : > { %v2544_v44 = vpop.f32.mrb[0].mxu0 }
 0x18d   : > { %v2545_v3 = vpop.f32.mrb[1].mxu0 }
 0x18e   : > { %v756_v14 = vpop.permute.xlu1 %755  ;;  %v4102_v48 = vadd.f32 %v2545_v3, %v2544_v44  ;;  %v2547_v33 = vpop.f32.mrb[2].mxu0 }
 0x18f   : > { %v785_v53 = vmul.f32 %v756_v14, %v3946_v24  ;;  %v2548_v9 = vpop.f32.mrb[3].mxu0 }
 0x190   : > { %v4106_v42 = vadd.f32 %v2548_v9, %v2547_v33  ;;  %v4371_v33 = vld [vmem:[#allocation15_spill] sm:$0xff] }
 0x191   : > { %v795_v41 = vpack.c.bf16 %v785_v53, %v784_v43  ;;  %v958_v43 = vmul.f32 %v920_v35, %v4371_v33  ;;  %v4372_v35 = vld [vmem:[#allocation16_spill] sm:$0xff] }
 0x193   : > { %v916_v37 = vpop.permute.xlu1 %915  ;;  %1904 = vmatprep.mubr.bf16.mxu0 %v795_v41 }
 0x194   : > { %v957_v10 = vmul.f32 %v916_v37, %v3590_v47  ;;  %v2550_v30 = vpop.f32.mrb[4].mxu0  ;;  %1905 = vmatmul.mubr.bf16.gmra.mrb[52].mxu0 %v4368_v50 }
 0x195   : > { %v2551_v29 = vpop.f32.mrb[5].mxu0 }
 0x196   : > { %v969_v4 = vpack.c.bf16 %v957_v10, %v956_v28  ;;  %v4111_v23 = vadd.f32 %v2551_v29, %v2550_v30  ;;  %v2553_v27 = vpop.f32.mrb[6].mxu0  ;;  %v836_v30 = vpop.permute.xlu0 %835 }
 0x197   : > { %v2554_v13 = vpop.f32.mrb[7].mxu0  ;;  %v871_v29 = vmul.f32 %v836_v30, %v3735_v15 }
 0x198   : > { %v4114_v7 = vadd.f32 %v2554_v13, %v2553_v27  ;;  %v824_v49 = vpop.permute.xlu1 %823  ;;  %1985 = vmatprep.mubr.bf16.mxu1 %v969_v4 }
 0x199   : > { %v868_v2 = vmul.f32 %v824_v49, %v4370_v22 }
 0x19b   : > { %v881_v63 = vpack.c.bf16 %v869_v57, %v868_v2 }
 0x19c   : > { %v2556_v47 = vpop.f32.mrb[8].mxu0 }
 0x19d   : > { %v760_v54 = vpop.permute.xlu1 %759  ;;  %v2557_v40 = vpop.f32.mrb[9].mxu0  ;;  %1986 = vmatmul.mubr.bf16.gmra.mrb[44].mxu1 %v881_v63 }
 0x19e   : > { %v4117_v52 = vadd.f32 %v2557_v40, %v2556_v47  ;;  %v2559_v11 = vpop.f32.mrb[10].mxu0  ;;  %v786_v18 = vmul.f32 %v760_v54, %v3942_v0  ;;  %v4373_v54 = vld [vmem:[#allocation12_spill] sm:$0xff] }
 0x19f   : > { %v2560_v61 = vpop.f32.mrb[11].mxu0 }
 0x1a0   : > { %v4119_v51 = vadd.f32 %v2560_v61, %v2559_v11 }
 0x1a1   : > { %v764_v46 = vpop.permute.xlu1 %763 }
 0x1a2   : > { %v787_v44 = vmul.f32 %v764_v46, %v3996_v6 }
 0x1a4   : > { %v796_v3 = vpack.c.bf16 %v787_v44, %v786_v18  ;;  %v2562_v14 = vpop.f32.mrb[12].mxu0  ;;  %v3032_v18 = vld [vmem:[%s3381_s23 + $0x38] sm:$0xff]  }
 0x1a5   : > { %v2563_v53 = vpop.f32.mrb[13].mxu0 }
 0x1a6   : > { %v4124_v9 = vadd.f32 %v2563_v53, %v2562_v14  ;;  %v924_v41 = vpop.permute.xlu1 %923  ;;  %v2565_v28 = vpop.f32.mrb[14].mxu0  ;;  %1912 = vmatprep.mubr.bf16.mxu0 %v796_v3 }
 0x1a7   : > { %v959_v37 = vmul.f32 %v924_v41, %v3678_v45  ;;  %v2566_v10 = vpop.f32.mrb[15].mxu0  ;;  %1913 = vmatmul.mubr.bf16.gmra.mrb[56].mxu0 %v3800_v38  ;;  %v960_v41 = vmul.f32 %v4098_v21, %v3806_v62 }
 0x1a8   : > { %v4128_v50 = vadd.f32 %v2566_v10, %v2565_v28 }
 0x1a9   : > { %v970_v56 = vpack.c.bf16 %v959_v37, %v958_v43  ;;  %v844_v37 = vpop.permute.xlu0 %843 }
 0x1ab   : > { %v832_v4 = vpop.permute.xlu1 %831  ;;  %1993 = vmatprep.mubr.bf16.mxu1 %v970_v56 }
 0x1ac   : > { %v870_v27 = vmul.f32 %v832_v4, %v4372_v35  ;;  %v873_v4 = vmul.f32 %v844_v37, %v3847_v16 }
 0x1ad   : > { %v852_v37 = vpop.permute.xlu0 %851 }
 0x1ae   : > { %v882_v13 = vpack.c.bf16 %v871_v29, %v870_v27 }
 0x1b0   : > { %v768_v32 = vpop.permute.xlu1 %767  ;;  %1994 = vmatmul.mubr.bf16.gmra.mrb[48].mxu1 %v882_v13 }
 0x1b1   : > { %v788_v63 = vmul.f32 %v768_v32, %v3987_v39  ;;  %v4374_v32 = vld [vmem:[#allocation17_spill] sm:$0xff] }
 0x1b2   : > { %v2568_v57 = vpop.f32.mrb[16].mxu0 }
 0x1b3   : > { %v2608_v49 = vpop.f32.mrb[0].mxu1  ;;  %v2569_v45 = vpop.f32.mrb[17].mxu0 }
 0x1b4   : > { %v4132_v22 = vadd.f32 %v2569_v45, %v2568_v57  ;;  %v2609_v38 = vpop.f32.mrb[1].mxu1  ;;  %v772_v2 = vpop.permute.xlu1 %771 }
 0x1b5   : > { %v2610_v47 = vadd.f32 %v2609_v38, %v2608_v49  ;;  %v789_v15 = vmul.f32 %v772_v2, %v4373_v54  ;;  %v2571_v40 = vpop.f32.mrb[18].mxu0  ;;  %v2611_v11 = vpop.f32.mrb[2].mxu1 }
 0x1b6   : > { %v2572_v61 = vpop.f32.mrb[19].mxu0  ;;  %v2612_v46 = vpop.f32.mrb[3].mxu1 }
 0x1b7   : > { %v4138_v44 = vadd.f32 %v2610_v47, %v4102_v48  ;;  %v797_v3 = vpack.c.bf16 %v789_v15, %v788_v63  ;;  %v4140_v14 = vadd.f32 %v2572_v61, %v2571_v40  ;;  %v2613_v33 = vadd.f32 %v2612_v46, %v2611_v11 }
 0x1b9   : > { %v4143_v43 = vadd.f32 %v2613_v33, %v4106_v42  ;;  %v932_v53 = vpop.permute.xlu1 %931  ;;  %1920 = vmatprep.mubr.bf16.mxu0 %v797_v3 }
 0x1ba   : > { %v961_v28 = vmul.f32 %v932_v53, %v3809_v5  ;;  %1921 = vmatmul.mubr.bf16.gmra.mrb[60].mxu0 %v3032_v18 }
 0x1bb   : > { %v2614_v10 = vpop.f32.mrb[4].mxu1 }
 0x1bc   : > { %v971_v30 = vpack.c.bf16 %v961_v28, %v960_v41  ;;  %v2615_v48 = vpop.f32.mrb[5].mxu1 }
 0x1bd   : > { %v2616_v56 = vadd.f32 %v2615_v48, %v2614_v10  ;;  %v2617_v29 = vpop.f32.mrb[6].mxu1 }
 0x1be   : > { %v2618_v35 = vpop.f32.mrb[7].mxu1  ;;  %v840_v27 = vpop.permute.xlu1 %839  ;;  %2001 = vmatprep.mubr.bf16.mxu1 %v971_v30 }
 0x1bf   : > { %v4150_v42 = vadd.f32 %v2616_v56, %v4111_v23  ;;  %v2619_v13 = vadd.f32 %v2618_v35, %v2617_v29  ;;  %v872_v62 = vmul.f32 %v840_v27, %v4374_v32  ;;  %v875_v56 = vmul.f32 %v852_v37, %v3898_v58  ;;  %v4375_v35 = vld [vmem:[#allocation18_spill] sm:$0xff] }
 0x1c1   : > { %v4154_v5 = vadd.f32 %v2619_v13, %v4114_v7  ;;  %v883_v21 = vpack.c.bf16 %v873_v4, %v872_v62  ;;  %v944_v62 = vpop.permute.xlu0 %943 }
 0x1c3   : > { %v2620_v57 = vpop.f32.mrb[8].mxu1  ;;  %v936_v49 = vpop.permute.xlu1 %935  ;;  %2002 = vmatmul.mubr.bf16.gmra.mrb[52].mxu1 %v883_v21 }
 0x1c4   : > { %v2621_v45 = vpop.f32.mrb[9].mxu1  ;;  %v962_v7 = vmul.f32 %v936_v49, %v3874_v34  ;;  %v964_v49 = vmul.f32 %v944_v62, %v3400_v20 }
 0x1c5   : > { %v2622_v38 = vadd.f32 %v2621_v45, %v2620_v57  ;;  %v2623_v2 = vpop.f32.mrb[10].mxu1  ;;  %v2574_v16 = vpop.f32.mrb[20].mxu0  ;;  %v4376_v45 = vld [vmem:[#allocation2_spill] sm:$0xff] }
 0x1c6   : > { %v2624_v63 = vpop.f32.mrb[11].mxu1  ;;  %v2575_v47 = vpop.f32.mrb[21].mxu0 }
 0x1c7   : > { %v4157_v15 = vadd.f32 %v2622_v38, %v4117_v52  ;;  %v2625_v23 = vadd.f32 %v2624_v63, %v2623_v2  ;;  %v4159_v40 = vadd.f32 %v2575_v47, %v2574_v16  ;;  %v940_v11 = vpop.permute.xlu1 %939  ;;  %v2577_v61 = vpop.f32.mrb[22].mxu0  ;;  %v1038_v52 = vmul.f32 %v4100_v60, %v3669_v59 }
 0x1c8   : > { %v963_v46 = vmul.f32 %v940_v11, %v3408_v25  ;;  %v2578_v18 = vpop.f32.mrb[23].mxu0  ;;  %v996_v2 = vpop.permute.xlu0 %995 }
 0x1c9   : > { %v4164_v3 = vadd.f32 %v2625_v23, %v4119_v51  ;;  %v4166_v33 = vadd.f32 %v2578_v18, %v2577_v61  ;;  %v1043_v47 = vmul.f32 %v996_v2, %v3769_v8 }
 0x1ca   : > { %v972_v53 = vpack.c.bf16 %v963_v46, %v962_v7 }
 0x1cc   : > { %v980_v41 = vpop.permute.xlu1 %979  ;;  %2009 = vmatprep.mubr.bf16.mxu1 %v972_v53  ;;  %v1000_v46 = vpop.permute.xlu0 %999 }
 0x1cd   : > { %v1039_v28 = vmul.f32 %v980_v41, %v3661_v17 }
 0x1ce   : > { %v2626_v10 = vpop.f32.mrb[12].mxu1 }
 0x1cf   : > { %v1054_v30 = vpack.c.bf16 %v1039_v28, %v1038_v52  ;;  %v2627_v34 = vpop.f32.mrb[13].mxu1 }
 0x1d0   : > { %v2628_v48 = vadd.f32 %v2627_v34, %v2626_v10  ;;  %v2629_v25 = vpop.f32.mrb[14].mxu1  ;;  %v1008_v34 = vpop.permute.xlu0 %1007 }
 0x1d1   : > { %v848_v51 = vpop.permute.xlu1 %847  ;;  %v2630_v29 = vpop.f32.mrb[15].mxu1  ;;  %2816 = vmatprep.mubr.bf16.mxu0 %v1054_v30 }
 0x1d2   : > { %v4173_v4 = vadd.f32 %v2628_v48, %v4124_v9  ;;  %v874_v59 = vmul.f32 %v848_v51, %v4375_v35  ;;  %v2631_v60 = vadd.f32 %v2630_v29, %v2629_v25  ;;  %v4377_v48 = vld [vmem:[#allocation3_spill] sm:$0xff] }
 0x1d4   : > { %v884_v27 = vpack.c.bf16 %v875_v56, %v874_v59  ;;  %v4177_v17 = vadd.f32 %v2631_v60, %v4128_v50  ;;  %v4378_v56 = vld [vmem:[#allocation4_spill] sm:$0xff]  ;;  %v1044_v59 = vmul.f32 %v1000_v46, %v3858_v36  ;;  %v1016_v60 = vpop.permute.xlu0 %1015 }
 0x1d6   : > { %v984_v13 = vpop.permute.xlu1 %983  ;;  %2010 = vmatmul.mubr.bf16.gmra.mrb[56].mxu1 %v884_v27 }
 0x1d7   : > { %v1040_v21 = vmul.f32 %v984_v13, %v3709_v12 }
 0x1d8   : > { %v1024_v62 = vpop.permute.xlu0 %1023 }
 0x1da   : > { %v988_v32 = vpop.permute.xlu1 %987 }
 0x1db   : > { %v1041_v58 = vmul.f32 %v988_v32, %v3705_v31  ;;  %v1046_v32 = vmul.f32 %v1008_v34, %v3910_v26 }
 0x1dd   : > { %v1055_v57 = vpack.c.bf16 %v1041_v58, %v1040_v21 }
 0x1df   : > { %v948_v9 = vpop.permute.xlu1 %947  ;;  %2817 = vmatmul.mubr.bf16.vlgmr.msra.gmra.mrb[64].mxu0 %v1055_v57 }
 0x1e0   : > { %v965_v38 = vmul.f32 %v948_v9, %v4376_v45  ;;  %v1048_v9 = vmul.f32 %v1016_v60, %v3946_v24 }
 0x1e1   : > { %v2580_v16 = vpop.f32.mrb[24].mxu0 }
 0x1e2   : > { %v973_v63 = vpack.c.bf16 %v965_v38, %v964_v49  ;;  %v2581_v50 = vpop.f32.mrb[25].mxu0 }
 0x1e3   : > { %v4184_v23 = vadd.f32 %v2581_v50, %v2580_v16  ;;  %v2583_v11 = vpop.f32.mrb[26].mxu0 }
 0x1e4   : > { %v992_v61 = vpop.permute.xlu1 %991  ;;  %v2584_v12 = vpop.f32.mrb[27].mxu0  ;;  %2017 = vmatprep.mubr.bf16.mxu1 %v973_v63 }
 0x1e5   : > { %v1042_v31 = vmul.f32 %v992_v61, %v3782_v19  ;;  %v4187_v7 = vadd.f32 %v2584_v12, %v2583_v11  ;;  %v1032_v11 = vpop.permute.xlu0 %1031 }
 0x1e6   : > { %v2632_v20 = vpop.f32.mrb[16].mxu1 }
 0x1e7   : > { %v1056_v18 = vpack.c.bf16 %v1043_v47, %v1042_v31  ;;  %v2633_v53 = vpop.f32.mrb[17].mxu1 }
 0x1e8   : > { %v2634_v52 = vadd.f32 %v2633_v53, %v2632_v20  ;;  %v2635_v41 = vpop.f32.mrb[18].mxu1  ;;  %v4379_v53 = vld [vmem:[#allocation13_spill] sm:$0xff] }
 0x1e9   : > { %v856_v28 = vpop.permute.xlu1 %855  ;;  %v2636_v37 = vpop.f32.mrb[19].mxu1  ;;  %2820 = vmatprep.mubr.bf16.mxu0 %v1056_v18  ;;  %v1052_v18 = vmul.f32 %v1032_v11, %v4373_v54 }
 0x1ea   : > { %v4190_v8 = vadd.f32 %v2634_v52, %v4132_v22  ;;  %v2637_v10 = vadd.f32 %v2636_v37, %v2635_v41  ;;  %v876_v25 = vmul.f32 %v856_v28, %v4377_v48 }
 0x1ec   : > { %v4193_v30 = vadd.f32 %v2637_v10, %v4140_v14 }
 0x1ed   : > { %v860_v19 = vpop.permute.xlu1 %859 }
 0x1ee   : > { %v877_v51 = vmul.f32 %v860_v19, %v4378_v56 }
 0x1f0   : > { %v885_v29 = vpack.c.bf16 %v877_v51, %v876_v25 }
 0x1f2   : > { %v1004_v35 = vpop.permute.xlu1 %1003  ;;  %2018 = vmatmul.mubr.bf16.gmra.mrb[60].mxu1 %v885_v29 }
 0x1f3   : > { %v1045_v27 = vmul.f32 %v1004_v35, %v3863_v55 }
 0x1f5   : > { %v1057_v22 = vpack.c.bf16 %v1045_v27, %v1044_v59 }
 0x1f6   : > { %v1012_v13 = vpop.permute.xlu1 %1011 }
 0x1f7   : > { %v1047_v14 = vmul.f32 %v1012_v13, %v3906_v1  ;;  %2821 = vmatmul.mubr.bf16.gmra.mrb[68].mxu0 %v1057_v22  ;;  %v1050_v1 = vmul.f32 %v1024_v62, %v3996_v6 }
 0x1f9   : > { %v1058_v21 = vpack.c.bf16 %v1047_v14, %v1046_v32  ;;  %v2586_v58 = vpop.f32.mrb[28].mxu0 }
 0x1fa   : > { %v1020_v57 = vpop.permute.xlu1 %1019  ;;  %v2587_v49 = vpop.f32.mrb[29].mxu0 }
 0x1fb   : > { %v1049_v45 = vmul.f32 %v1020_v57, %v3942_v0  ;;  %v2588_v36 = vadd.f32 %v2587_v49, %v2586_v58  ;;  %v2589_v38 = vpop.f32.mrb[30].mxu0  ;;  %2824 = vmatprep.mubr.bf16.mxu1 %v1058_v21 }
 0x1fc   : > { %v2590_v55 = vpop.f32.mrb[31].mxu0 }
 0x1fd   : > { %v1059_v2 = vpack.c.bf16 %v1049_v45, %v1048_v9  ;;  %v2591_v16 = vadd.f32 %v2590_v55, %v2589_v38 }
 0x1fe   : > { %v1028_v63 = vpop.permute.xlu1 %1027  ;;  %v2638_v26 = vpop.f32.mrb[20].mxu1 }
 0x1ff   : > { %v1051_v50 = vmul.f32 %v1028_v63, %v3987_v39  ;;  %v2639_v47 = vpop.f32.mrb[21].mxu1  ;;  %2825 = vmatmul.mubr.bf16.vlgmr.msra.gmra.mrb[64].mxu1 %v1059_v2 }
 0x200   : > { %v2640_v61 = vadd.f32 %v2639_v47, %v2638_v26  ;;  %v2641_v12 = vpop.f32.mrb[22].mxu1 }
 0x201   : > { %v1060_v24 = vpack.c.bf16 %v1051_v50, %v1050_v1  ;;  %v2642_v31 = vpop.f32.mrb[23].mxu1 }
 0x202   : > { %v4206_v0 = vadd.f32 %v2640_v61, %v4159_v40  ;;  %v2643_v20 = vadd.f32 %v2642_v31, %v2641_v12  ;;  %v1036_v46 = vpop.permute.xlu1 %1035 }
 0x203   : > { %v1053_v52 = vmul.f32 %v1036_v46, %v4379_v53  ;;  %2828 = vmatprep.mubr.bf16.mxu1 %v1060_v24 }
 0x204   : > { %v4211_v6 = vadd.f32 %v2643_v20, %v4166_v33 }
 0x205   : > { %v1061_v39 = vpack.c.bf16 %v1053_v52, %v1052_v18 }
 0x207   : > { %2829 = vmatmul.mubr.bf16.gmra.mrb[68].mxu1 %v1061_v39 }
 0x20d   : > { %v2672_v41 = vpop.f32.mrb[32].mxu0 }
 0x20e   : > { %v2673_v28 = vpop.f32.mrb[33].mxu0 }
 0x20f   : > { %v2674_v37 = vadd.f32 %v2673_v28, %v2672_v41  ;;  %v2675_v10 = vpop.f32.mrb[34].mxu0 }
 0x210   : > { %v2676_v34 = vpop.f32.mrb[35].mxu0 }
 0x211   : > { %v1867_v40 = vadd.f32 %v2674_v37, %v4138_v44  ;;  %v2677_v19 = vadd.f32 %v2676_v34, %v2675_v10  ;;  %v2644_v48 = vpop.f32.mrb[24].mxu1 }
 0x212   : > { %v2645_v25 = vpop.f32.mrb[25].mxu1 }
 0x213   : > { %v1870_v54 = vadd.f32 %v2677_v19, %v4143_v43  ;;  %v2646_v56 = vadd.f32 %v2645_v25, %v2644_v48  ;;  %v2647_v51 = vpop.f32.mrb[26].mxu1 }
 0x214   : > { %v2648_v29 = vpop.f32.mrb[27].mxu1 }
 0x215   : > { %v4216_v33 = vadd.f32 %v2646_v56, %v4184_v23  ;;  %v2649_v35 = vadd.f32 %v2648_v29, %v2647_v51 }
 0x217   : > { %v4219_v59 = vadd.f32 %v2649_v35, %v4187_v7 }
 0x220   : > { %v2678_v60 = vpop.f32.mrb[36].mxu0 }
 0x221   : > { %v2679_v27 = vpop.f32.mrb[37].mxu0 }
 0x222   : > { %v2680_v22 = vadd.f32 %v2679_v27, %v2678_v60  ;;  %v2681_v13 = vpop.f32.mrb[38].mxu0 }
 0x223   : > { %v2682_v44 = vpop.f32.mrb[39].mxu0 }
 0x224   : > { %v1875_v32 = vadd.f32 %v2680_v22, %v4150_v42  ;;  %v2683_v14 = vadd.f32 %v2682_v44, %v2681_v13  ;;  %v2650_v62 = vpop.f32.mrb[28].mxu1 }
 0x225   : > { %v2651_v43 = vpop.f32.mrb[29].mxu1 }
 0x226   : > { %v1878_v21 = vadd.f32 %v2683_v14, %v4154_v5  ;;  %v2652_v58 = vadd.f32 %v2651_v43, %v2650_v62  ;;  %v2653_v57 = vpop.f32.mrb[30].mxu1 }
 0x227   : > { %v2654_v23 = vpop.f32.mrb[31].mxu1 }
 0x228   : > { %v4223_v49 = vadd.f32 %v2652_v58, %v2588_v36  ;;  %v2655_v9 = vadd.f32 %v2654_v23, %v2653_v57 }
 0x22a   : > { %v4225_v7 = vadd.f32 %v2655_v9, %v2591_v16 }
 0x22e   : > { %v2684_v45 = vpop.f32.mrb[40].mxu0 }
 0x22f   : > { %v2685_v38 = vpop.f32.mrb[41].mxu0 }
 0x230   : > { %v2686_v55 = vadd.f32 %v2685_v38, %v2684_v45  ;;  %v2687_v2 = vpop.f32.mrb[42].mxu0 }
 0x231   : > { %v2688_v63 = vpop.f32.mrb[43].mxu0 }
 0x232   : > { %v1883_v42 = vadd.f32 %v2686_v55, %v4157_v15  ;;  %v2689_v26 = vadd.f32 %v2688_v63, %v2687_v2 }
 0x234   : > { %v1886_v1 = vadd.f32 %v2689_v26, %v4164_v3 }
 0x237   : > { %v2736_v50 = vpop.f32.mrb[32].mxu1 }
 0x238   : > { %v2737_v5 = vpop.f32.mrb[33].mxu1 }
 0x239   : > { %v2738_v47 = vadd.f32 %v2737_v5, %v2736_v50  ;;  %v2739_v11 = vpop.f32.mrb[34].mxu1 }
 0x23a   : > { %v2740_v61 = vpop.f32.mrb[35].mxu1 }
 0x23b   : > { %v2741_v36 = vadd.f32 %v2740_v61, %v2739_v11  ;;  %v4229_v12 = vadd.f32 %v2738_v47, %v1867_v40 }
 0x23d   : > { %v4231_v16 = vadd.f32 %v2741_v36, %v1870_v54 }
 0x241   : > { %v2690_v24 = vpop.f32.mrb[44].mxu0 }
 0x242   : > { %v2691_v31 = vpop.f32.mrb[45].mxu0 }
 0x243   : > { %v2692_v20 = vadd.f32 %v2691_v31, %v2690_v24  ;;  %v2693_v46 = vpop.f32.mrb[46].mxu0 }
 0x244   : > { %v2694_v18 = vpop.f32.mrb[47].mxu0 }
 0x245   : > { %v1891_v15 = vadd.f32 %v2692_v20, %v4173_v4  ;;  %v2695_v53 = vadd.f32 %v2694_v18, %v2693_v46 }
 0x247   : > { %v1894_v3 = vadd.f32 %v2695_v53, %v4177_v17 }
 0x24a   : > { %v2742_v52 = vpop.f32.mrb[36].mxu1 }
 0x24b   : > { %v2743_v39 = vpop.f32.mrb[37].mxu1 }
 0x24c   : > { %v2744_v41 = vadd.f32 %v2743_v39, %v2742_v52  ;;  %v2745_v28 = vpop.f32.mrb[38].mxu1 }
 0x24d   : > { %v2746_v37 = vpop.f32.mrb[39].mxu1 }
 0x24e   : > { %v2747_v10 = vadd.f32 %v2746_v37, %v2745_v28  ;;  %v4235_v34 = vadd.f32 %v2744_v41, %v1875_v32 }
 0x250   : > { %v4237_v40 = vadd.f32 %v2747_v10, %v1878_v21 }
 0x254   : > { %v2696_v19 = vpop.f32.mrb[48].mxu0 }
 0x255   : > { %v2697_v48 = vpop.f32.mrb[49].mxu0 }
 0x256   : > { %v2698_v25 = vadd.f32 %v2697_v48, %v2696_v19  ;;  %v2699_v54 = vpop.f32.mrb[50].mxu0 }
 0x257   : > { %v2700_v56 = vpop.f32.mrb[51].mxu0 }
 0x258   : > { %v1899_v4 = vadd.f32 %v2698_v25, %v4190_v8  ;;  %v2701_v51 = vadd.f32 %v2700_v56, %v2699_v54 }
 0x25a   : > { %v1902_v17 = vadd.f32 %v2701_v51, %v4193_v30 }
 0x25d   : > { %v2748_v29 = vpop.f32.mrb[40].mxu1 }
 0x25e   : > { %v2749_v35 = vpop.f32.mrb[41].mxu1 }
 0x25f   : > { %v2750_v60 = vadd.f32 %v2749_v35, %v2748_v29  ;;  %v2751_v27 = vpop.f32.mrb[42].mxu1 }
 0x260   : > { %v2752_v22 = vpop.f32.mrb[43].mxu1 }
 0x261   : > { %v2753_v13 = vadd.f32 %v2752_v22, %v2751_v27  ;;  %v4241_v44 = vadd.f32 %v2750_v60, %v1883_v42 }
 0x263   : > { %v4243_v32 = vadd.f32 %v2753_v13, %v1886_v1 }
 0x267   : > { %v2702_v14 = vpop.f32.mrb[52].mxu0 }
 0x268   : > { %v2703_v62 = vpop.f32.mrb[53].mxu0 }
 0x269   : > { %v2704_v43 = vadd.f32 %v2703_v62, %v2702_v14  ;;  %v2705_v21 = vpop.f32.mrb[54].mxu0 }
 0x26a   : > { %v2706_v58 = vpop.f32.mrb[55].mxu0 }
 0x26b   : > { %v1907_v8 = vadd.f32 %v2704_v43, %v4206_v0  ;;  %v2707_v57 = vadd.f32 %v2706_v58, %v2705_v21 }
 0x26d   : > { %v1910_v30 = vadd.f32 %v2707_v57, %v4211_v6 }
 0x270   : > { %v2754_v23 = vpop.f32.mrb[44].mxu1 }
 0x271   : > { %v2755_v9 = vpop.f32.mrb[45].mxu1 }
 0x272   : > { %v2756_v45 = vadd.f32 %v2755_v9, %v2754_v23  ;;  %v2757_v38 = vpop.f32.mrb[46].mxu1 }
 0x273   : > { %v2758_v55 = vpop.f32.mrb[47].mxu1 }
 0x274   : > { %v2759_v2 = vadd.f32 %v2758_v55, %v2757_v38  ;;  %v4247_v63 = vadd.f32 %v2756_v45, %v1891_v15 }
 0x276   : > { %v4249_v42 = vadd.f32 %v2759_v2, %v1894_v3 }
 0x27a   : > { %v2708_v26 = vpop.f32.mrb[56].mxu0 }
 0x27b   : > { %v2709_v1 = vpop.f32.mrb[57].mxu0 }
 0x27c   : > { %v2710_v50 = vadd.f32 %v2709_v1, %v2708_v26  ;;  %v2711_v5 = vpop.f32.mrb[58].mxu0 }
 0x27d   : > { %v2712_v47 = vpop.f32.mrb[59].mxu0 }
 0x27e   : > { %v1915_v0 = vadd.f32 %v2710_v50, %v4216_v33  ;;  %v2713_v11 = vadd.f32 %v2712_v47, %v2711_v5 }
 0x280   : > { %v1918_v6 = vadd.f32 %v2713_v11, %v4219_v59 }
 0x283   : > { %v2760_v61 = vpop.f32.mrb[48].mxu1 }
 0x284   : > { %v2761_v36 = vpop.f32.mrb[49].mxu1 }
 0x285   : > { %v2762_v24 = vadd.f32 %v2761_v36, %v2760_v61  ;;  %v2763_v31 = vpop.f32.mrb[50].mxu1 }
 0x286   : > { %v2764_v20 = vpop.f32.mrb[51].mxu1 }
 0x287   : > { %v2765_v46 = vadd.f32 %v2764_v20, %v2763_v31  ;;  %v4253_v18 = vadd.f32 %v2762_v24, %v1899_v4 }
 0x289   : > { %v4255_v15 = vadd.f32 %v2765_v46, %v1902_v17 }
 0x28d   : > { %v2714_v53 = vpop.f32.mrb[60].mxu0 }
 0x28e   : > { %v2715_v3 = vpop.f32.mrb[61].mxu0 }
 0x28f   : > { %v2716_v52 = vadd.f32 %v2715_v3, %v2714_v53  ;;  %v2717_v39 = vpop.f32.mrb[62].mxu0 }
 0x290   : > { %v2718_v41 = vpop.f32.mrb[63].mxu0 }
 0x291   : > { %v1923_v33 = vadd.f32 %v2716_v52, %v4223_v49  ;;  %v2719_v28 = vadd.f32 %v2718_v41, %v2717_v39 }
 0x293   : > { %v1926_v59 = vadd.f32 %v2719_v28, %v4225_v7 }
 0x296   : > { %v2766_v37 = vpop.f32.mrb[52].mxu1 }
 0x297   : > { %v2767_v10 = vpop.f32.mrb[53].mxu1 }
 0x298   : > { %v2768_v19 = vadd.f32 %v2767_v10, %v2766_v37  ;;  %v2769_v48 = vpop.f32.mrb[54].mxu1 }
 0x299   : > { %v2770_v25 = vpop.f32.mrb[55].mxu1 }
 0x29a   : > { %v2771_v54 = vadd.f32 %v2770_v25, %v2769_v48  ;;  %v2004_v56 = vadd.f32 %v2768_v19, %v1907_v8 }
 0x29c   : > { %v4259_v4 = vadd.f32 %v2771_v54, %v1910_v30 }
 0x2a9   : > { %v2772_v51 = vpop.f32.mrb[56].mxu1 }
 0x2aa   : > { %v2773_v17 = vpop.f32.mrb[57].mxu1 }
 0x2ab   : > { %v2774_v29 = vadd.f32 %v2773_v17, %v2772_v51  ;;  %v2775_v35 = vpop.f32.mrb[58].mxu1 }
 0x2ac   : > { %v2776_v60 = vpop.f32.mrb[59].mxu1 }
 0x2ad   : > { %v2777_v27 = vadd.f32 %v2776_v60, %v2775_v35  ;;  %v4261_v49 = vadd.f32 %v2774_v29, %v1915_v0 }
 0x2af   : > { %v4263_v22 = vadd.f32 %v2777_v27, %v1918_v6 }
 0x2b2   : > { %v2818_v7 = vpop.f32.mrb[64].mxu0 }
 0x2b3   : > { %v2069_v13 = vadd.f32 %v2818_v7, %v4235_v34  ;;  %v2060_v14 = vpop.f32.mrb[65].mxu0 }
 0x2b4   : > { %v2061_v62 = vadd.f32 %v2060_v14, %v4229_v12  ;;  %v2819_v43 = vpop.f32.mrb[66].mxu0 }
 0x2b5   : > { %v2072_v21 = vadd.f32 %v2819_v43, %v4237_v40  ;;  %v2063_v58 = vpop.f32.mrb[67].mxu0  ;;  %v2226_v12 = vmul.f32 %v2069_v13, %v2069_v13 }
 0x2b6   : > { %v2064_v8 = vadd.f32 %v2063_v58, %v4231_v16  ;;  %v2224_v30 = vmul.f32 %v2061_v62, %v2061_v62 }
 0x2b7   : > { %v2489_v57 = vpack.c.bf16 %v2072_v21, %v2069_v13  ;;  %v2227_v38 = vmul.f32 %v2072_v21, %v2072_v21 }
 0x2b8   : > { %v2484_v34 = vpack.c.bf16 %v2064_v8, %v2061_v62  ;;  %v2203_v23 = vadd.f32 %v2064_v8, %v2061_v62  ;;  %v2225_v9 = vmul.f32 %v2064_v8, %v2064_v8 }
 0x2b9   : > { %2521 = vst [vmem:[%s4273_s30 + $0x8] sm:$0xff] %v2489_v57  }
 0x2ba   : > { %2485 = vst [vmem:[%s4273_s30] sm:$0xff] %v2484_v34   ;;  %v2204_v40 = vadd.f32 %v2203_v23, %v2069_v13  ;;  %v2240_v45 = vadd.f32 %v2225_v9, %v2224_v30 }
 0x2bc   : > { %v2241_v55 = vadd.f32 %v2240_v45, %v2226_v12  ;;  %v2205_v2 = vadd.f32 %v2204_v40, %v2072_v21 }
 0x2be   : > { %v2242_v26 = vadd.f32 %v2241_v55, %v2227_v38 }
 0x2c5   : > { %v2778_v1 = vpop.f32.mrb[60].mxu1 }
 0x2c6   : > { %v2779_v50 = vpop.f32.mrb[61].mxu1 }
 0x2c7   : > { %v2780_v5 = vadd.f32 %v2779_v50, %v2778_v1  ;;  %v2781_v47 = vpop.f32.mrb[62].mxu1 }
 0x2c8   : > { %v2782_v0 = vpop.f32.mrb[63].mxu1 }
 0x2c9   : > { %v2783_v16 = vadd.f32 %v2782_v0, %v2781_v47  ;;  %v2020_v11 = vadd.f32 %v2780_v5, %v1923_v33 }
 0x2ca   : > { %v2822_v6 = vpop.f32.mrb[68].mxu0 }
 0x2cb   : > { %v2085_v61 = vadd.f32 %v2822_v6, %v4247_v63  ;;  %v2076_v36 = vpop.f32.mrb[69].mxu0  ;;  %v2023_v24 = vadd.f32 %v2783_v16, %v1926_v59 }
 0x2cc   : > { %v2077_v31 = vadd.f32 %v2076_v36, %v4241_v44  ;;  %v2823_v20 = vpop.f32.mrb[70].mxu0 }
 0x2cd   : > { %v2088_v46 = vadd.f32 %v2823_v20, %v4249_v42  ;;  %v2079_v53 = vpop.f32.mrb[71].mxu0  ;;  %v2230_v63 = vmul.f32 %v2085_v61, %v2085_v61 }
 0x2ce   : > { %v2206_v3 = vadd.f32 %v2205_v2, %v2077_v31  ;;  %v2228_v52 = vmul.f32 %v2077_v31, %v2077_v31  ;;  %v2080_v39 = vadd.f32 %v2079_v53, %v4243_v32 }
 0x2cf   : > { %v2499_v41 = vpack.c.bf16 %v2088_v46, %v2085_v61  ;;  %v2231_v54 = vmul.f32 %v2088_v46, %v2088_v46 }
 0x2d0   : > { %v2243_v28 = vadd.f32 %v2242_v26, %v2228_v52  ;;  %v2494_v33 = vpack.c.bf16 %v2080_v39, %v2077_v31  ;;  %v2207_v37 = vadd.f32 %v2206_v3, %v2080_v39  ;;  %v2229_v10 = vmul.f32 %v2080_v39, %v2080_v39 }
 0x2d1   : > { %2523 = vst [vmem:[%s4273_s30 + $0x18] sm:$0xff] %v2499_v41  }
 0x2d2   : > { %2522 = vst [vmem:[%s4273_s30 + $0x10] sm:$0xff] %v2494_v33   ;;  %v2208_v19 = vadd.f32 %v2207_v37, %v2085_v61  ;;  %v2244_v59 = vadd.f32 %v2243_v28, %v2229_v10  ;;  %v2826_v48 = vpop.f32.mrb[64].mxu1 }
 0x2d3   : > { %v2101_v44 = vadd.f32 %v2826_v48, %v2004_v56  ;;  %v2092_v25 = vpop.f32.mrb[65].mxu1 }
 0x2d4   : > { %v2245_v42 = vadd.f32 %v2244_v59, %v2230_v63  ;;  %v2093_v51 = vadd.f32 %v2092_v25, %v4253_v18  ;;  %v2209_v32 = vadd.f32 %v2208_v19, %v2088_v46  ;;  %v2827_v17 = vpop.f32.mrb[66].mxu1 }
 0x2d5   : > { %v2104_v29 = vadd.f32 %v2827_v17, %v4259_v4  ;;  %v2095_v35 = vpop.f32.mrb[67].mxu1  ;;  %v2234_v58 = vmul.f32 %v2101_v44, %v2101_v44 }
 0x2d6   : > { %v2210_v60 = vadd.f32 %v2209_v32, %v2093_v51  ;;  %v2232_v27 = vmul.f32 %v2093_v51, %v2093_v51  ;;  %v2246_v7 = vadd.f32 %v2245_v42, %v2231_v54  ;;  %v2096_v13 = vadd.f32 %v2095_v35, %v4255_v15 }
 0x2d7   : > { %v2509_v14 = vpack.c.bf16 %v2104_v29, %v2101_v44  ;;  %v2235_v4 = vmul.f32 %v2104_v29, %v2104_v29 }
 0x2d8   : > { %v2247_v62 = vadd.f32 %v2246_v7, %v2232_v27  ;;  %v2504_v56 = vpack.c.bf16 %v2096_v13, %v2093_v51  ;;  %v2211_v43 = vadd.f32 %v2210_v60, %v2096_v13  ;;  %v2233_v21 = vmul.f32 %v2096_v13, %v2096_v13 }
 0x2d9   : > { %2525 = vst [vmem:[%s4273_s30 + $0x28] sm:$0xff] %v2509_v14  }
 0x2da   : > { %2524 = vst [vmem:[%s4273_s30 + $0x20] sm:$0xff] %v2504_v56   ;;  %v2212_v18 = vadd.f32 %v2211_v43, %v2101_v44  ;;  %v2248_v8 = vadd.f32 %v2247_v62, %v2233_v21  ;;  %v2830_v57 = vpop.f32.mrb[68].mxu1 }
 0x2db   : > { %v2117_v30 = vadd.f32 %v2830_v57, %v2020_v11  ;;  %v2108_v34 = vpop.f32.mrb[69].mxu1 }
 0x2dc   : > { %v2249_v23 = vadd.f32 %v2248_v8, %v2234_v58  ;;  %v2109_v9 = vadd.f32 %v2108_v34, %v4261_v49  ;;  %v2213_v15 = vadd.f32 %v2212_v18, %v2104_v29  ;;  %v2831_v12 = vpop.f32.mrb[70].mxu1 }
 0x2dd   : > { %v2120_v40 = vadd.f32 %v2831_v12, %v2023_v24  ;;  %v2111_v45 = vpop.f32.mrb[71].mxu1  ;;  %v2238_v16 = vmul.f32 %v2117_v30, %v2117_v30 }
 0x2de   : > { %v2214_v38 = vadd.f32 %v2213_v15, %v2109_v9  ;;  %v2236_v55 = vmul.f32 %v2109_v9, %v2109_v9  ;;  %v2250_v2 = vadd.f32 %v2249_v23, %v2235_v4  ;;  %v2112_v26 = vadd.f32 %v2111_v45, %v4263_v22 }
 0x2df   : > { %v2519_v1 = vpack.c.bf16 %v2120_v40, %v2117_v30  ;;  %v2239_v6 = vmul.f32 %v2120_v40, %v2120_v40 }
 0x2e0   : > { %v2251_v50 = vadd.f32 %v2250_v2, %v2236_v55  ;;  %v2514_v5 = vpack.c.bf16 %v2112_v26, %v2109_v9  ;;  %v2215_v47 = vadd.f32 %v2214_v38, %v2112_v26  ;;  %v2237_v0 = vmul.f32 %v2112_v26, %v2112_v26 }
 0x2e1   : > { %2527 = vst [vmem:[%s4273_s30 + $0x38] sm:$0xff] %v2519_v1  }
 0x2e2   : > { %2526 = vst [vmem:[%s4273_s30 + $0x30] sm:$0xff] %v2514_v5   ;;  %v2216_v49 = vadd.f32 %v2215_v47, %v2117_v30  ;;  %v2252_v11 = vadd.f32 %v2251_v50, %v2237_v0 }
 0x2e4   : > { %v2217_v61 = vadd.f32 %v2216_v49, %v2120_v40  ;;  %v2253_v36 = vadd.f32 %v2252_v11, %v2238_v16 }
 0x2e6   : > { %v2218_v24 = vrot.slane %v2217_v61, 4  ;;  %v2254_v31 = vadd.f32 %v2253_v36, %v2239_v6 }
 0x2e8   : > { %v2219_v20 = vadd.f32 %v2218_v24, %v2217_v61  ;;  %v2255_v22 = vrot.slane %v2254_v31, 4 }
 0x2ea   : > { %v2220_v46 = vrot.slane %v2219_v20, 2  ;;  %v2256_v53 = vadd.f32 %v2255_v22, %v2254_v31 }
 0x2ec   : > { %v2221_v3 = vadd.f32 %v2220_v46, %v2219_v20  ;;  %v2257_v52 = vrot.slane %v2256_v53, 2 }
 0x2ee   : > { %v2222_v39 = vrot.slane %v2221_v3, 1  ;;  %v2258_v41 = vadd.f32 %v2257_v52, %v2256_v53 }
 0x2f0   : > { %v2259_v28 = vrot.slane %v2258_v41, 1  ;;  %v2223_v33 = vadd.f32 %v2222_v39, %v2221_v3 }
 0x2f2   : > { %v2260_v37 = vadd.f32 %v2259_v28, %v2258_v41 }
 0x2f4   : > { %v2262_v10 = vsel %vm2261_vm2, %v2223_v33, %v2260_v37 }
 0x2f5   : > { %2263 = vst [vmem:[%s216_s6] sm:$0x3] %v2262_v10 }
 0x2f6 PF: > { %s15_s15 = sadd.s32 1, %s3039_s15  }
 0x2f7   : > { %p12_p5 = scmp.ge.s32.totalorder %s15_s15, 4  }
 0x2f9   :  { %14 = sbr.rel (!%p12_p5) target bundleno = 1 (0x1), region = 74 }

// kernel: resnet_block.3
= control target key start
LH: loop header
LB: loop body
LE: loop exit
PB: predicated region body
PF: predicated region fallthrough
CT: control target
= control target key end

     0   :  { %s3216_s21 = smov 0   ;;  %s4514_s0 = inlined_call_operand.vmem [shape: bf16[4,64,128], index: 0, kind: input, shape index: {}]   ;;  %s4515_s1 = inlined_call_operand.vmem [shape: f32[1,128], index: 1, kind: input, shape index: {}]   ;;  %s4516_s2 = inlined_call_operand.vmem [shape: f32[1,128], index: 2, kind: input, shape index: {}]   ;;  %s4517_s3 = inlined_call_operand.vmem [shape: f32[128,9], index: 3, kind: input, shape index: {}]   ;;  %s4518_s4 = inlined_call_operand.vmem [shape: bf16[1152,128], index: 4, kind: input, shape index: {}]   ;;  %s4519_s5 = inlined_call_operand.vmem [shape: bf16[4,64,128], index: 5, kind: output, shape index: {0}]   ;;  %s4520_s6 = inlined_call_operand.vmem [shape: f32[2,2,128], index: 6, kind: output, shape index: {1}]  }
   0x1 LB: > { %s3222_s22 = sadd.s32 4294967295, %s3171_s21   ;;  %p2473_p0 = scmp.ge.s32.totalorder %s3171_s21, 1  ;;  %s3171_s21 = sphi %s3216_s21, %s17_s21  }
   0x2   : > { %p217_p1 = scmp.lt.s32.totalorder %s3171_s21, 3 }
   0x4   : > { %p218_p2 = pnand %p2473_p0, %p217_p1 }
   0x6   : > { %221 = sbr.rel (%p218_p2) target bundleno = 758 (0x2f6), region = 40 }
   0xd   : > { %v3229_v0 = vld [vmem:[%s4517_s3 + $0x10] sm:$0xff]  ;;  %v3234_v1 = vld [vmem:[%s4517_s3] sm:$0xff]  ;;  %v3173_v2 = vmov 3   ;;  %v3174_v3 = vmov 0   ;;  %v3243_v4 = vld [vmem:[%s4517_s3 + $0x18] sm:$0xff]  ;;  %s2474_s29 = sshll.u32 %s3222_s22, 1 }
   0xe   : > { %3015 = vset.pattern.permute.xlu0 %v3173_v2  ;;  %3013 = vset.pattern.permute.xlu1 %v3174_v3  ;;  %v3249_v5 = vld [vmem:[%s4517_s3 + $0x28] sm:$0xff]  ;;  %v3256_v6 = vld [vmem:[%s4517_s3 + $0x20] sm:$0xff]  ;;  %p254_p3 = scmp.lt.s32.totalorder %s2474_s29, 3  ;;  %v3261_v7 = vld [vmem:[%s4517_s3 + $0x38] sm:$0xff]  ;;  %v3175_v25 = vmov 1   ;;  %v3176_v41 = vmov 2  }
   0xf   : > { %429 = vperm.xlu1 %3013, %v3229_v0   ;;  %731 = vperm.xlu0 %3015, %v3234_v1   ;;  %v3077_v8 = vld [vmem:[%s4518_s4 + $0x40] sm:$0xff]   ;;  %v3273_v9 = vld [vmem:[%s4517_s3 + $0x30] sm:$0xff]  ;;  %v3079_v11 = vld [vmem:[%s4518_s4 + $0x48] sm:$0xff]   ;;  %v4530_v61 = vmov 5   ;;  %p267_p4 = scmp.lt.s32.totalorder %s3222_s22, 1  ;;  %vm2377_vm2 = vcmask 1040384  }
  0x10   : > { %s4587_s29 = smov (!%p254_p3, %s2474_s29), 3  ;;  %v3078_v10 = vld [vmem:[%s4518_s4] sm:$0xff]   ;;  %2677 = vmatprep.subr.bf16.mxu0 %v3077_v8  ;;  %v3287_v12 = vld [vmem:[%s4517_s3 + $0x48] sm:$0xff]  ;;  %v3300_v15 = vld [vmem:[%s4517_s3 + $0x58] sm:$0xff] }
  0x11   : > { %2678 = vmatpush3.bf16.msra.mxu0 %v3078_v10  ;;  %s2573_s18 = sshll.u32 %s4587_s29, 5  ;;  %v3292_v13 = vld [vmem:[%s4517_s3 + $0x40] sm:$0xff]  ;;  %v3080_v14 = vld [vmem:[%s4518_s4 + $0x8] sm:$0xff]   ;;  %v3081_v18 = vld [vmem:[%s4518_s4 + $0x50] sm:$0xff]   ;;  %s4589_s22 = smov (!%p267_p4, %s3222_s22), 1 }
  0x12   : > { %2679 = vmatprep.subr.bf16.mxu0 %v3079_v11  ;;  %s3307_s10 = scalar_lea.vmem %s4514_s0, %s2573_s18  ;;  %v3314_v16 = vld [vmem:[%s4517_s3 + $0x8] sm:$0xff]  ;;  %v3082_v20 = vld [vmem:[%s4518_s4 + $0x10] sm:$0xff]   ;;  %v3331_v21 = vld [vmem:[%s4515_s1] ss:$0 sm:$0xff]  ;;  %s4486_s23 = scalar_lea.vmem %s4519_s5, %s2573_s18 }
  0x13   : > { %434 = vperm.xlu1 %3013, %v3243_v4   ;;  %739 = vperm.xlu0 %3015, %v3229_v0   ;;  %v3317_v17 = vld [vmem:[%s3307_s10 + $0x20] sm:$0xff]   ;;  %v3323_v19 = vld [vmem:[%s3307_s10 + $0x28] sm:$0xff]   ;;  %v3083_v27 = vld [vmem:[%s4518_s4 + $0x58] sm:$0xff]   ;;  %s2480_s29 = sshll.u32 %s4589_s22, 1 }
  0x14   : > { %v2610_v22 = vunpack.c.h.bf16 %v3317_v17  ;;  %v3337_v23 = vld [vmem:[%s4516_s2] ss:$0 sm:$0xff]  ;;  %v2613_v24 = vunpack.c.l.bf16 %v3323_v19  ;;  %v3084_v29 = vld [vmem:[%s4518_s4 + $0x18] sm:$0xff]   ;;  %v3087_v35 = vld [vmem:[%s4518_s4 + $0x68] sm:$0xff]   ;;  %v2614_v51 = vunpack.c.h.bf16 %v3323_v19  ;;  %s270_s25 = scalar_lea.vmem %s4520_s6, %s2480_s29 }
  0x15   : > { %2680 = vmatpush3.bf16.msra.mxu0 %v3080_v14  ;;  %v3085_v32 = vld [vmem:[%s4518_s4 + $0x60] sm:$0xff]   ;;  %v3369_v34 = vld [vmem:[%s4517_s3 + $0x78] sm:$0xff]  ;;  %v3088_v36 = vld [vmem:[%s4518_s4 + $0x28] sm:$0xff]  }
  0x16   : > { %2681 = vmatprep.subr.bf16.mxu0 %v3081_v18  ;;  %v320_v26 = vmul.f32 %v2610_v22, %v3331_v21  ;;  %v321_v28 = vmul.f32 %v2613_v24, %v3331_v21  ;;  %v3086_v33 = vld [vmem:[%s4518_s4 + $0x20] sm:$0xff]   ;;  %v3089_v37 = vld [vmem:[%s4518_s4 + $0x70] sm:$0xff]   ;;  %v3091_v39 = vld [vmem:[%s4518_s4 + $0x78] sm:$0xff]   ;;  %v322_v54 = vmul.f32 %v2614_v51, %v3331_v21 }
  0x17   : > { %444 = vperm.xlu1 %3013, %v3249_v5   ;;  %747 = vperm.xlu0 %3015, %v3256_v6   ;;  %v3090_v38 = vld [vmem:[%s4518_s4 + $0x30] sm:$0xff]   ;;  %v3092_v40 = vld [vmem:[%s4518_s4 + $0x38] sm:$0xff]   ;;  %v3093_v42 = vld [vmem:[%s4518_s4 + $0xc0] sm:$0xff]  }
  0x18   : > { %v3352_v30 = vadd.f32 %v3337_v23, %v320_v26  ;;  %v3355_v31 = vadd.f32 %v3337_v23, %v321_v28  ;;  %v3094_v43 = vld [vmem:[%s4518_s4 + $0x80] sm:$0xff]   ;;  %2741 = vmatprep.subr.bf16.mxu1 %v3093_v42  ;;  %v3411_v44 = vld [vmem:[%s4517_s3 + $0x50] sm:$0xff]  ;;  %v3095_v45 = vld [vmem:[%s4518_s4 + $0xc8] sm:$0xff]   ;;  %v3453_v55 = vadd.f32 %v3337_v23, %v322_v54  ;;  %v4522_v26 = vmov 6  }
  0x19   : > { %2682 = vmatpush3.bf16.msra.mxu0 %v3082_v20  ;;  %2742 = vmatpush3.bf16.msra.mxu1 %v3094_v43  ;;  %v3096_v46 = vld [vmem:[%s4518_s4 + $0x88] sm:$0xff]   ;;  %v3425_v47 = vld [vmem:[%s4517_s3 + $0x60] sm:$0xff]  ;;  %v3097_v48 = vld [vmem:[%s4518_s4 + $0xd0] sm:$0xff]   ;;  %v4526_v54 = vmov 8  }
  0x1a   : > { %2683 = vmatprep.subr.bf16.mxu0 %v3083_v27  ;;  %2743 = vmatprep.subr.bf16.mxu1 %v3095_v45  ;;  %v3098_v49 = vld [vmem:[%s4518_s4 + $0x90] sm:$0xff]   ;;  %v3099_v52 = vld [vmem:[%s4518_s4 + $0xd8] sm:$0xff]   ;;  %v3101_v56 = vld [vmem:[%s4518_s4 + $0xe0] sm:$0xff]   ;;  %v4524_v27 = vmov 7  }
  0x1b   : > { %454 = vperm.xlu1 %3013, %v3261_v7   ;;  %755 = vperm.xlu0 %3015, %v3273_v9   ;;  %v3438_v50 = vld [vmem:[%s4517_s3 + $0x70] sm:$0xff]  ;;  %v3100_v53 = vld [vmem:[%s4518_s4 + $0x98] sm:$0xff]   ;;  %v3102_v58 = vld [vmem:[%s4518_s4 + $0xa0] sm:$0xff]  }
  0x1c   : > { %v2668_v57 = vld [vmem:[%s3307_s10 + $0x30] sm:$0xff]   ;;  %v3103_v8 = vld [vmem:[%s4518_s4 + $0xe8] sm:$0xff]   ;;  %v3107_v20 = vld [vmem:[%s4518_s4 + $0xf8] sm:$0xff]  }
  0x1d   : > { %2684 = vmatpush3.bf16.msra.mxu0 %v3084_v29  ;;  %2744 = vmatpush3.bf16.msra.mxu1 %v3096_v46  ;;  %v2617_v59 = vunpack.c.l.bf16 %v2668_v57  ;;  %v2618_v60 = vunpack.c.h.bf16 %v2668_v57  ;;  %v3104_v10 = vld [vmem:[%s4518_s4 + $0xa8] sm:$0xff]   ;;  %v3105_v18 = vld [vmem:[%s4518_s4 + $0xf0] sm:$0xff]   ;;  %v3108_v22 = vld [vmem:[%s4518_s4 + $0xb8] sm:$0xff]  }
  0x1e   : > { %2685 = vmatprep.subr.bf16.mxu0 %v3085_v32  ;;  %2745 = vmatprep.subr.bf16.mxu1 %v3097_v48  ;;  %v3106_v19 = vld [vmem:[%s4518_s4 + $0xb0] sm:$0xff]   ;;  %v3515_v24 = vld [vmem:[%s4517_s3 + $0x68] sm:$0xff] }
  0x1f   : > { %464 = vperm.xlu1 %3013, %v3287_v12   ;;  %763 = vperm.xlu0 %3015, %v3292_v13   ;;  %v323_v62 = vmul.f32 %v2617_v59, %v3331_v21  ;;  %v324_v63 = vmul.f32 %v2618_v60, %v3331_v21 }
  0x21   : > { %2686 = vmatpush3.bf16.msra.mxu0 %v3086_v33  ;;  %2746 = vmatpush3.bf16.msra.mxu1 %v3098_v49  ;;  %v3475_v11 = vadd.f32 %v3337_v23, %v323_v62  ;;  %v3478_v14 = vadd.f32 %v3337_v23, %v324_v63 }
  0x22   : > { %2687 = vmatprep.subr.bf16.mxu0 %v3087_v35  ;;  %2747 = vmatprep.subr.bf16.mxu1 %v3099_v52  ;;  %v2592_v35 = vld [vmem:[%s3307_s10] sm:$0xff]  }
  0x23   : > { %474 = vperm.xlu1 %3013, %v3300_v15   ;;  %3028 = vset.pattern.permute.xlu0 %v3175_v25  ;;  %v2594_v57 = vunpack.c.h.bf16 %v2592_v35 }
  0x24   : > { %526 = vperm.xlu0 %3028, %v3314_v16  }
  0x25   : > { %2688 = vmatpush3.bf16.msra.mxu0 %v3088_v36  ;;  %2748 = vmatpush3.bf16.msra.mxu1 %v3100_v53  ;;  %v2663_v53 = vld [vmem:[%s3307_s10 + $0x8] sm:$0xff]  }
  0x26   : > { %2689 = vmatprep.subr.bf16.mxu0 %v3089_v37  ;;  %2749 = vmatprep.subr.bf16.mxu1 %v3101_v56  ;;  %v2597_v62 = vunpack.c.l.bf16 %v2663_v53 }
  0x27   : > { %3014 = vset.pattern.permute.xlu1 %v3175_v25 }
  0x28   : > { %538 = vperm.xlu0 %3028, %v3256_v6   ;;  %522 = vperm.xlu1 %3014, %v3234_v1  }
  0x29   : > { %2690 = vmatpush3.bf16.msra.mxu0 %v3090_v38  ;;  %2750 = vmatpush3.bf16.msra.mxu1 %v3102_v58  ;;  %v2593_v38 = vunpack.c.l.bf16 %v2592_v35 }
  0x2a   : > { %2691 = vmatprep.subr.bf16.mxu0 %v3091_v39  ;;  %2751 = vmatprep.subr.bf16.mxu1 %v3103_v8  ;;  %v398_v8 = vlaneseq }
  0x2b   : > { %v311_v42 = vmul.f32 %v2593_v38, %v3331_v21  ;;  %v2664_v38 = vld [vmem:[%s3307_s10 + $0x10] sm:$0xff]  }
  0x2c   : > { %582 = vperm.xlu0 %3028, %v3369_v34   ;;  %530 = vperm.xlu1 %3014, %v3229_v0  }
  0x2d   : > { %2692 = vmatpush3.bf16.msra.mxu0 %v3092_v40  ;;  %2752 = vmatpush3.bf16.msra.mxu1 %v3104_v10  ;;  %v334_v49 = vadd.f32 %v3337_v23, %v311_v42 }
  0x2e   : > { %2753 = vmatprep.subr.bf16.mxu1 %v3105_v18  ;;  %v312_v18 = vmul.f32 %v2594_v57, %v3331_v21 }
  0x2f   : > { %v3583_v59 = vmax.f32 %v334_v49, 0.0  ;;  %v2598_v49 = vunpack.c.h.bf16 %v2663_v53 }
  0x30   : > { %3033 = vset.pattern.permute.xlu0 %v3174_v3  ;;  %534 = vperm.xlu1 %3014, %v3243_v4  }
  0x31   : > { %419 = vperm.xlu0 %3033, %v3234_v1   ;;  %2754 = vmatpush3.bf16.msra.mxu1 %v3106_v19  ;;  %4548 = vst [vmem:[#allocation2_spill] sm:$0xff] %v3583_v59  ;;  %v313_v19 = vmul.f32 %v2597_v62, %v3331_v21  ;;  %v382_v57 = vrot.slane %v3583_v59, 7 }
  0x32   : > { %2755 = vmatprep.subr.bf16.mxu1 %v3107_v20 }
  0x34   : > { %542 = vperm.xlu1 %3014, %v3249_v5  }
  0x35   : > { %424 = vperm.xlu0 %3033, %v3314_v16   ;;  %2756 = vmatpush3.bf16.msra.mxu1 %v3108_v22 }
  0x38   : > { %3016 = vset.pattern.permute.xlu1 %v3173_v2 }
  0x39   : > { %439 = vperm.xlu0 %3033, %v3256_v6   ;;  %735 = vperm.xlu1 %3016, %v3314_v16  }
  0x3d   : > { %449 = vperm.xlu0 %3033, %v3273_v9   ;;  %3017 = vset.pattern.permute.xlu1 %v3176_v41 }
  0x3e   : > { %643 = vperm.xlu1 %3017, %v3234_v1  }
  0x41   : > { %459 = vperm.xlu0 %3033, %v3292_v13  }
  0x42   : > { %3018 = vset.pattern.permute.xlu1 %v3175_v25 }
  0x43   : > { %546 = vperm.xlu1 %3018, %v3273_v9  }
  0x45   : > { %469 = vperm.xlu0 %3033, %v3411_v44  }
  0x47   : > { %550 = vperm.xlu1 %3018, %v3261_v7  }
  0x49   : > { %479 = vperm.xlu0 %3033, %v3425_v47  }
  0x4b   : > { %3019 = vset.pattern.permute.xlu1 %v3173_v2 }
  0x4c   : > { %743 = vperm.xlu1 %3019, %v3243_v4  }
  0x4d   : > { %489 = vperm.xlu0 %3033, %v3438_v50  }
  0x50   : > { %3020 = vset.pattern.permute.xlu1 %v3176_v41 }
  0x51   : > { %3038 = vset.pattern.permute.xlu0 %v4530_v61  ;;  %651 = vperm.xlu1 %3020, %v3229_v0  }
  0x52   : > { %827 = vperm.xlu0 %3038, %v3234_v1  }
  0x55   : > { %3021 = vset.pattern.permute.xlu1 %v3175_v25 }
  0x56   : > { %835 = vperm.xlu0 %3038, %v3229_v0   ;;  %554 = vperm.xlu1 %3021, %v3292_v13  }
  0x5a   : > { %3042 = vset.pattern.permute.xlu0 %v3176_v41  ;;  %558 = vperm.xlu1 %3021, %v3287_v12  }
  0x5b   : > { %647 = vperm.xlu0 %3042, %v3314_v16  }
  0x5e   : > { %3022 = vset.pattern.permute.xlu1 %v3173_v2 }
  0x5f   : > { %655 = vperm.xlu0 %3042, %v3243_v4   ;;  %751 = vperm.xlu1 %3022, %v3249_v5  }
  0x63   : > { %3023 = vset.pattern.permute.xlu1 %v3176_v41  ;;  %663 = vperm.xlu0 %3042, %v3249_v5  }
  0x64   : > { %659 = vperm.xlu1 %3023, %v3256_v6  }
  0x67   : > { %671 = vperm.xlu0 %3042, %v3261_v7  }
  0x68   : > { %3024 = vset.pattern.permute.xlu1 %v3175_v25 }
  0x69   : > { %562 = vperm.xlu1 %3024, %v3411_v44  }
  0x6b   : > { %675 = vperm.xlu0 %3042, %v3292_v13  }
  0x6d   : > { %566 = vperm.xlu1 %3024, %v3300_v15  }
  0x6f   : > { %687 = vperm.xlu0 %3042, %v3300_v15  }
  0x71   : > { %3025 = vset.pattern.permute.xlu1 %v3173_v2 }
  0x72   : > { %759 = vperm.xlu1 %3025, %v3261_v7  }
  0x73   : > { %695 = vperm.xlu0 %3042, %v3515_v24  }
  0x76   : > { %3026 = vset.pattern.permute.xlu1 %v3176_v41 }
  0x77   : > { %667 = vperm.xlu1 %3026, %v3273_v9   ;;  %703 = vperm.xlu0 %3042, %v3369_v34  }
  0x7b   : > { %3027 = vset.pattern.permute.xlu1 %v3175_v25  ;;  %3048 = vset.pattern.permute.xlu0 %v4522_v26 }
  0x7c   : > { %570 = vperm.xlu1 %3027, %v3425_v47   ;;  %919 = vperm.xlu0 %3048, %v3314_v16  }
  0x80   : > { %574 = vperm.xlu1 %3027, %v3515_v24   ;;  %927 = vperm.xlu0 %3048, %v3243_v4  }
  0x84   : > { %3029 = vset.pattern.permute.xlu1 %v3173_v2  ;;  %935 = vperm.xlu0 %3048, %v3249_v5  }
  0x85   : > { %767 = vperm.xlu1 %3029, %v3287_v12  }
  0x88   : > { %3055 = vset.pattern.permute.xlu0 %v4524_v27 }
  0x89   : > { %3030 = vset.pattern.permute.xlu1 %v3174_v3  ;;  %1003 = vperm.xlu0 %3055, %v3234_v1  }
  0x8a   : > { %484 = vperm.xlu1 %3030, %v3515_v24  }
  0x8d   : > { %1011 = vperm.xlu0 %3055, %v3229_v0   ;;  %v2669_v0 = vld [vmem:[%s3307_s10 + $0x38] sm:$0xff]  }
  0x8e   : > { %v3535_v28 = vpop.permute.xlu1 %429  ;;  %3031 = vset.pattern.permute.xlu1 %v3176_v41  ;;  %v3538_v29 = vpop.permute.xlu0 %731  ;;  %v2622_v39 = vunpack.c.h.bf16 %v2669_v0  ;;  %v2621_v45 = vunpack.c.l.bf16 %v2669_v0  ;;  %v3600_v0 = vshrl.u32 %v398_v8, 7  ;;  %v3633_v8 = vld [vmem:[%s3307_s10 + $0x18] sm:$0xff]  }
  0x8f   : > { %679 = vperm.xlu1 %3031, %v3287_v12  }
  0x90   : > { %v326_v43 = vmul.f32 %v2622_v39, %v3331_v21  ;;  %v325_v52 = vmul.f32 %v2621_v45, %v3331_v21  ;;  %vm400_vm0 = vcmp.lt.s32.totalorder %v3600_v0, 1  ;;  %vm625_vm1 = vcmp.lt.s32.totalorder %v3600_v0, 7  ;;  %v4220_v0 = vld [vmem:[%s4518_s4 + $0x220] sm:$0xff]  }
  0x91   : > { %1019 = vperm.xlu0 %3055, %v3256_v6   ;;  %v3109_v6 = vld [vmem:[%s4518_s4 + $0x140] sm:$0xff]  }
  0x92   : > { %v3542_v32 = vpop.permute.xlu1 %434  ;;  %v3544_v33 = vpop.permute.xlu0 %739  ;;  %2805 = vmatprep.subr.bf16.mxu0 %v3109_v6  ;;  %v349_v51 = vadd.f32 %v3337_v23, %v326_v43  ;;  %v348_v63 = vadd.f32 %v3337_v23, %v325_v52  ;;  %v336_v43 = vadd.f32 %v3337_v23, %v313_v19 }
  0x93   : > { %3032 = vset.pattern.permute.xlu1 %v3175_v25 }
  0x94   : > { %578 = vperm.xlu1 %3032, %v3438_v50   ;;  %v3585_v60 = vmax.f32 %v349_v51, 0.0  ;;  %v3598_v22 = vmax.f32 %v348_v63, 0.0  ;;  %v2601_v51 = vunpack.c.l.bf16 %v2664_v38 }
  0x95   : > { %1027 = vperm.xlu0 %3055, %v3273_v9  }
  0x96   : > { %v3551_v36 = vpop.permute.xlu1 %444  ;;  %v3553_v37 = vpop.permute.xlu0 %747  ;;  %v397_v42 = vrot.slane %v3585_v60, 7  ;;  %v4521_v45 = vrot.slane %v3598_v22, 7 }
  0x98   : > { %3034 = vset.pattern.permute.xlu1 %v3173_v2  ;;  %v3623_v63 = vsel %vm400_vm0, %v4521_v45, %v397_v42  ;;  %v3628_v53 = vsel %vm400_vm0, %v397_v42, %v382_v57  ;;  %v2602_v42 = vunpack.c.h.bf16 %v2664_v38  ;;  %v3110_v38 = vld [vmem:[%s4518_s4 + $0x100] sm:$0xff]  }
  0x99   : > { %771 = vperm.xlu1 %3034, %v3411_v44   ;;  %1035 = vperm.xlu0 %3055, %v3292_v13   ;;  %4549 = vst [vmem:[#allocation3_spill] sm:$0xff] %v3623_v63  ;;  %4550 = vst [vmem:[#allocation4_spill] sm:$0xff] %v3628_v53 }
  0x9a   : > { %v3561_v25 = vpop.permute.xlu1 %454  ;;  %v3563_v40 = vpop.permute.xlu0 %755 }
  0x9d   : > { %775 = vperm.xlu1 %3034, %v3300_v15   ;;  %1043 = vperm.xlu0 %3055, %v3411_v44  }
  0x9e   : > { %v3569_v46 = vpop.permute.xlu1 %464  ;;  %v3571_v48 = vpop.permute.xlu0 %763 }
  0xa1   : > { %3035 = vset.pattern.permute.xlu1 %v3174_v3  ;;  %3066 = vset.pattern.permute.xlu0 %v4526_v54 }
  0xa2   : > { %v3579_v56 = vpop.permute.xlu1 %474  ;;  %494 = vperm.xlu1 %3035, %v3369_v34   ;;  %1091 = vperm.xlu0 %3066, %v3234_v1  }
  0xa3   : > { %v527_v58 = vpop.permute.xlu0 %526 }
  0xa4   : > { %v586_v3 = vmul.f32 %v527_v58, %v3583_v59  ;;  %v3617_v58 = vmax.f32 %v336_v43, 0.0 }
  0xa6   : > { %3036 = vset.pattern.permute.xlu1 %v3176_v41  ;;  %3067 = vset.pattern.permute.xlu0 %v4522_v26  ;;  %v794_v26 = vmul.f32 %v3538_v29, %v3628_v53  ;;  %v3111_v29 = vld [vmem:[%s4518_s4 + $0x148] sm:$0xff]  }
  0xa7   : > { %683 = vperm.xlu1 %3036, %v3411_v44   ;;  %v523_v1 = vpop.permute.xlu1 %522  ;;  %v3592_v10 = vpop.permute.xlu0 %538  ;;  %943 = vperm.xlu0 %3067, %v3261_v7   ;;  %v335_v7 = vadd.f32 %v3337_v23, %v312_v18 }
  0xa8   : > { %v585_v20 = vmul.f32 %v523_v1, %v3585_v60 }
  0xaa   : > { %v601_v35 = vpack.c.bf16 %v586_v3, %v585_v20  ;;  %v315_v3 = vmul.f32 %v2601_v51, %v3331_v21  ;;  %v384_v20 = vrot.slane %v3617_v58, 7 }
  0xab   : > { %3037 = vset.pattern.permute.xlu1 %v3173_v2  ;;  %v531_v39 = vpop.permute.xlu1 %530  ;;  %v3604_v6 = vpop.permute.xlu0 %582  ;;  %951 = vperm.xlu0 %3067, %v3287_v12   ;;  %v3614_v12 = vmax.f32 %v335_v7, 0.0 }
  0xac   : > { %779 = vperm.xlu1 %3037, %v3425_v47   ;;  %1786 = vmatprep.mubr.bf16.mxu0 %v601_v35  ;;  %v338_v51 = vadd.f32 %v3337_v23, %v315_v3 }
  0xad   : > { %v383_v19 = vrot.slane %v3614_v12, 7  ;;  %v587_v45 = vmul.f32 %v531_v39, %v3614_v12 }
  0xaf   : > { %v535_v52 = vpop.permute.xlu1 %534  ;;  %959 = vperm.xlu0 %3067, %v3300_v15   ;;  %v314_v15 = vmul.f32 %v2598_v49, %v3331_v21 }
  0xb0   : > { %v420_v62 = vpop.permute.xlu0 %419  ;;  %783 = vperm.xlu1 %3037, %v3515_v24   ;;  %v588_v35 = vmul.f32 %v535_v52, %v3617_v58 }
  0xb1   : > { %v497_v1 = vmul.f32 %v420_v62, %v3623_v63  ;;  %v337_v49 = vadd.f32 %v3337_v23, %v314_v15  ;;  %v2605_v62 = vunpack.c.l.bf16 %v3633_v8  ;;  %v3659_v15 = vsel %vm400_vm0, %v383_v19, %v384_v20 }
  0xb2   : > { %v602_v3 = vpack.c.bf16 %v588_v35, %v587_v45  ;;  %v500_v35 = vmul.f32 %v3542_v32, %v3659_v15 }
  0xb3   : > { %v543_v18 = vpop.permute.xlu1 %542  ;;  %967 = vperm.xlu0 %3067, %v3515_v24   ;;  %v317_v45 = vmul.f32 %v2605_v62, %v3331_v21  ;;  %v3113_v62 = vld [vmem:[%s4518_s4 + $0x150] sm:$0xff]  }
  0xb4   : > { %v425_v7 = vpop.permute.xlu0 %424  ;;  %3039 = vset.pattern.permute.xlu1 %v4530_v61 }
  0xb5   : > { %v498_v43 = vmul.f32 %v425_v7, %v3628_v53  ;;  %831 = vperm.xlu1 %3039, %v3314_v16   ;;  %v3655_v16 = vsel %vm400_vm0, %v382_v57, %v383_v19  ;;  %v3667_v57 = vmax.f32 %v337_v49, 0.0  ;;  %v316_v19 = vmul.f32 %v2602_v42, %v3331_v21 }
  0xb7   : > { %v513_v52 = vpack.c.bf16 %v498_v43, %v497_v1  ;;  %3071 = vset.pattern.permute.xlu0 %v4524_v27  ;;  %v3669_v43 = vmax.f32 %v338_v51, 0.0  ;;  %v589_v49 = vmul.f32 %v3592_v10, %v3667_v57  ;;  %v385_v10 = vrot.slane %v3667_v57, 7 }
  0xb8   : > { %v440_v39 = vpop.permute.xlu0 %439  ;;  %v736_v7 = vpop.permute.xlu1 %735  ;;  %1059 = vperm.xlu0 %3071, %v3438_v50  }
  0xb9   : > { %v795_v1 = vmul.f32 %v736_v7, %v3655_v16  ;;  %3040 = vset.pattern.permute.xlu1 %v3176_v41  ;;  %1787 = vmatmul.mubr.bf16.vlgmr.msra.gmra.mrb[0].mxu0 %v513_v52  ;;  %v3112_v52 = vld [vmem:[%s4518_s4 + $0x108] sm:$0xff]   ;;  %v590_v51 = vmul.f32 %v543_v18, %v3669_v43  ;;  %v386_v18 = vrot.slane %v3669_v43, 7 }
  0xba   : > { %691 = vperm.xlu1 %3040, %v3425_v47   ;;  %1794 = vmatprep.mubr.bf16.mxu0 %v602_v3  ;;  %v340_v3 = vadd.f32 %v3337_v23, %v317_v45 }
  0xbb   : > { %v810_v27 = vpack.c.bf16 %v795_v1, %v794_v26  ;;  %2806 = vmatpush3.bf16.msra.mxu0 %v3110_v38  ;;  %v499_v26 = vmul.f32 %v3535_v28, %v3655_v16  ;;  %v339_v38 = vadd.f32 %v3337_v23, %v316_v19  ;;  %v603_v28 = vpack.c.bf16 %v590_v51, %v589_v49 }
  0xbc   : > { %v3682_v42 = vpop.permute.xlu0 %449  ;;  %2807 = vmatprep.subr.bf16.mxu0 %v3111_v29  ;;  %3074 = vset.pattern.permute.xlu0 %v4526_v54  ;;  %v3714_v1 = vsel %vm400_vm0, %v385_v10, %v386_v18  ;;  %v3718_v45 = vmax.f32 %v340_v3, 0.0  ;;  %v2606_v49 = vunpack.c.h.bf16 %v3633_v8  ;;  %v2609_v51 = vunpack.c.l.bf16 %v3317_v17 }
  0xbd   : > { %v3690_v32 = vpop.permute.xlu1 %643  ;;  %1883 = vmatprep.mubr.bf16.mxu1 %v810_v27  ;;  %1111 = vperm.xlu0 %3074, %v3249_v5   ;;  %v514_v7 = vpack.c.bf16 %v500_v35, %v499_v26  ;;  %v3114_v27 = vld [vmem:[%s4518_s4 + $0x110] sm:$0xff]   ;;  %v3704_v5 = vsel %vm400_vm0, %v384_v20, %v385_v10  ;;  %v3716_v19 = vmax.f32 %v339_v38, 0.0 }
  0xbe   : > { %3041 = vset.pattern.permute.xlu1 %v3173_v2  ;;  %4551 = vst [vmem:[#allocation5_spill] sm:$0xff] %v3704_v5  ;;  %v3115_v2 = vld [vmem:[%s4518_s4 + $0x158] sm:$0xff]   ;;  %v501_v35 = vmul.f32 %v440_v39, %v3704_v5  ;;  %v502_v39 = vmul.f32 %v3551_v36, %v3714_v1  ;;  %v388_v10 = vrot.slane %v3718_v45, 7  ;;  %v3118_v36 = vld [vmem:[%s4518_s4 + $0x120] sm:$0xff]  }
  0xbf   : > { %787 = vperm.xlu1 %3041, %v3438_v50   ;;  %2808 = vmatpush3.bf16.msra.mxu0 %v3112_v52  ;;  %v3116_v52 = vld [vmem:[%s4518_s4 + $0x118] sm:$0xff]   ;;  %v387_v26 = vrot.slane %v3716_v19, 7 }
  0xc0   : > { %v3706_v29 = vpop.permute.xlu0 %459  ;;  %2809 = vmatprep.subr.bf16.mxu0 %v3113_v62  ;;  %v515_v38 = vpack.c.bf16 %v502_v39, %v501_v35 }
  0xc1   : > { %1795 = vmatmul.mubr.bf16.gmra.mrb[4].mxu0 %v514_v7  ;;  %1115 = vperm.xlu0 %3074, %v3273_v9   ;;  %v3125_v9 = vld [vmem:[%s4518_s4 + $0x1c0] sm:$0xff]   ;;  %v318_v7 = vmul.f32 %v2606_v49, %v3331_v21 }
  0xc2   : > { %v547_v20 = vpop.permute.xlu1 %546  ;;  %1802 = vmatprep.mubr.bf16.mxu0 %v603_v28  ;;  %2869 = vmatprep.subr.bf16.mxu1 %v3125_v9 }
  0xc3   : > { %791 = vperm.xlu1 %3041, %v3369_v34   ;;  %2810 = vmatpush3.bf16.msra.mxu0 %v3114_v27  ;;  %v3117_v34 = vld [vmem:[%s4518_s4 + $0x160] sm:$0xff]   ;;  %v591_v17 = vmul.f32 %v547_v20, %v3716_v19  ;;  %v3750_v27 = vsel %vm400_vm0, %v386_v18, %v387_v26 }
  0xc4   : > { %v3730_v62 = vpop.permute.xlu0 %469  ;;  %2811 = vmatprep.subr.bf16.mxu0 %v3115_v2  ;;  %4552 = vst [vmem:[#allocation6_spill] sm:$0xff] %v3750_v27  ;;  %v3119_v2 = vld [vmem:[%s4518_s4 + $0x168] sm:$0xff]   ;;  %v503_v18 = vmul.f32 %v3682_v42, %v3750_v27  ;;  %v3121_v42 = vld [vmem:[%s4518_s4 + $0x170] sm:$0xff]  }
  0xc5   : > { %1123 = vperm.xlu0 %3074, %v3292_v13   ;;  %v319_v13 = vmul.f32 %v2609_v51, %v3331_v21  ;;  %v3761_v21 = vsel %vm400_vm0, %v387_v26, %v388_v10  ;;  %v3798_v26 = vld [vmem:[%s4517_s3 + $0x20] sm:$0xff] }
  0xc6   : > { %v551_v8 = vpop.permute.xlu1 %550  ;;  %v504_v49 = vmul.f32 %v3561_v25, %v3761_v21  ;;  %v3123_v25 = vld [vmem:[%s4518_s4 + $0x178] sm:$0xff]  }
  0xc7   : > { %v592_v3 = vmul.f32 %v551_v8, %v3718_v45  ;;  %3043 = vset.pattern.permute.xlu1 %v4530_v61  ;;  %2812 = vmatpush3.bf16.msra.mxu0 %v3116_v52  ;;  %v341_v52 = vadd.f32 %v3337_v23, %v318_v7  ;;  %v342_v9 = vadd.f32 %v3337_v23, %v319_v13  ;;  %v3122_v23 = vld [vmem:[%s4518_s4 + $0x130] sm:$0xff]   ;;  %v3124_v8 = vld [vmem:[%s4518_s4 + $0x138] sm:$0xff]  }
  0xc8   : > { %839 = vperm.xlu1 %3043, %v3243_v4   ;;  %v3753_v28 = vpop.permute.xlu0 %479  ;;  %2813 = vmatprep.subr.bf16.mxu0 %v3117_v34  ;;  %v3120_v4 = vld [vmem:[%s4518_s4 + $0x128] sm:$0xff]   ;;  %v516_v51 = vpack.c.bf16 %v504_v49, %v503_v18 }
  0xc9   : > { %v604_v20 = vpack.c.bf16 %v592_v3, %v591_v17  ;;  %1803 = vmatmul.mubr.bf16.gmra.mrb[8].mxu0 %v515_v38  ;;  %1131 = vperm.xlu0 %3074, %v3411_v44   ;;  %v3785_v34 = vmax.f32 %v342_v9, 0.0  ;;  %v609_v3 = vrot.slane %v3583_v59, 1 }
  0xcb   : > { %v744_v35 = vpop.permute.xlu1 %743  ;;  %1810 = vmatprep.mubr.bf16.mxu0 %v604_v20  ;;  %2814 = vmatpush3.bf16.msra.mxu0 %v3118_v36  ;;  %v4529_v17 = vrot.slane %v3785_v34, 7  ;;  %v4528_v36 = vrot.slane %v3585_v60, 1  ;;  %v3820_v20 = vld [vmem:[%s4517_s3 + $0x28] sm:$0xff] }
  0xcc   : > { %3044 = vset.pattern.permute.xlu1 %v3176_v41  ;;  %v3771_v44 = vpop.permute.xlu0 %489  ;;  %2815 = vmatprep.subr.bf16.mxu0 %v3119_v2  ;;  %v3783_v41 = vmax.f32 %v341_v52, 0.0  ;;  %v610_v2 = vrot.slane %v3614_v12, 1 }
  0xcd   : > { %699 = vperm.xlu1 %3044, %v3438_v50   ;;  %1139 = vperm.xlu0 %3074, %v3425_v47  }
  0xce   : > { %v389_v38 = vrot.slane %v3783_v41, 7 }
  0xcf   : > { %2816 = vmatpush3.bf16.msra.mxu0 %v3120_v4  ;;  %v3837_v4 = vsel %vm625_vm1, %v609_v3, %v610_v2 }
  0xd0   : > { %v3787_v39 = vpop.permute.xlu1 %651  ;;  %2817 = vmatprep.subr.bf16.mxu0 %v3121_v42  ;;  %v3827_v18 = vsel %vm400_vm0, %v389_v38, %v4529_v17  ;;  %4556 = vst [vmem:[#allocation10_spill] sm:$0xff] %v3837_v4  ;;  %v796_v42 = vmul.f32 %v3544_v33, %v3659_v15  ;;  %v3856_v33 = vld [vmem:[%s4517_s3 + $0x8] sm:$0xff] }
  0xd1   : > { %3045 = vset.pattern.permute.xlu1 %v4530_v61  ;;  %1811 = vmatmul.mubr.bf16.gmra.mrb[12].mxu0 %v516_v51  ;;  %v3793_v47 = vpop.permute.xlu0 %827  ;;  %4554 = vst [vmem:[#allocation8_spill] sm:$0xff] %v3827_v18  ;;  %v612_v51 = vrot.slane %v3667_v57, 1 }
  0xd2   : > { %843 = vperm.xlu1 %3045, %v3798_v26   ;;  %1147 = vperm.xlu0 %3074, %v3438_v50   ;;  %v3814_v50 = vsel %vm400_vm0, %v388_v10, %v389_v38  ;;  %v3833_v10 = vsel %vm625_vm1, %v4528_v36, %v609_v3  ;;  %v506_v38 = vmul.f32 %v3569_v46, %v3827_v18  ;;  %v611_v36 = vrot.slane %v3617_v58, 1  ;;  %v3126_v46 = vld [vmem:[%s4518_s4 + $0x180] sm:$0xff]  }
  0xd3   : > { %2818 = vmatpush3.bf16.msra.mxu0 %v3122_v23  ;;  %4553 = vst [vmem:[#allocation7_spill] sm:$0xff] %v3814_v50  ;;  %4555 = vst [vmem:[#allocation9_spill] sm:$0xff] %v3833_v10  ;;  %v505_v52 = vmul.f32 %v3706_v29, %v3814_v50  ;;  %v706_v3 = vmul.f32 %v3690_v32, %v3833_v10  ;;  %v797_v29 = vmul.f32 %v744_v35, %v3704_v5  ;;  %v3127_v35 = vld [vmem:[%s4518_s4 + $0x1c8] sm:$0xff]  }
  0xd4   : > { %2819 = vmatprep.subr.bf16.mxu0 %v3123_v25  ;;  %v3868_v61 = vsel %vm625_vm1, %v611_v36, %v612_v51 }
  0xd5   : > { %v555_v7 = vpop.permute.xlu1 %554  ;;  %v3810_v13 = vpop.permute.xlu0 %835 }
  0xd6   : > { %847 = vperm.xlu1 %3045, %v3820_v20   ;;  %v593_v49 = vmul.f32 %v555_v7, %v3783_v41 }
  0xd7   : > { %2820 = vmatpush3.bf16.msra.mxu0 %v3124_v8  ;;  %v4557_v8 = vmov 7  }
  0xd9   : > { %v559_v9 = vpop.permute.xlu1 %558 }
  0xda   : > { %v594_v23 = vmul.f32 %v559_v9, %v3785_v34  ;;  %v648_v25 = vpop.permute.xlu0 %647  ;;  %3046 = vset.pattern.permute.xlu1 %v4557_v8  ;;  %v517_v9 = vpack.c.bf16 %v506_v38, %v505_v52  ;;  %v4558_v52 = vmov 6   ;;  %v3882_v38 = vmax.f32 %v3352_v30, 0.0 }
  0xdb   : > { %v707_v54 = vmul.f32 %v648_v25, %v3837_v4  ;;  %1007 = vperm.xlu1 %3046, %v3856_v33   ;;  %v811_v25 = vpack.c.bf16 %v797_v29, %v796_v42  ;;  %v3128_v42 = vld [vmem:[%s4518_s4 + $0x188] sm:$0xff]   ;;  %v614_v30 = vrot.slane %v3716_v19, 1 }
  0xdc   : > { %v605_v7 = vpack.c.bf16 %v594_v23, %v593_v49  ;;  %v3876_v23 = vsel %vm625_vm1, %v610_v2, %v611_v36  ;;  %v3129_v36 = vld [vmem:[%s4518_s4 + $0x1d0] sm:$0xff]   ;;  %v798_v2 = vmul.f32 %v3553_v37, %v3714_v1  ;;  %v391_v37 = vrot.slane %v3882_v38, 7 }
  0xdd   : > { %v722_v17 = vpack.c.bf16 %v707_v54, %v706_v3  ;;  %v3152_v54 = vld [vmem:[%s4517_s3] sm:$0xff] }
  0xde   : > { %v752_v32 = vpop.permute.xlu1 %751  ;;  %1818 = vmatprep.mubr.bf16.mxu0 %v605_v7  ;;  %v656_v49 = vpop.permute.xlu0 %655  ;;  %v613_v7 = vrot.slane %v3669_v43, 1 }
  0xdf   : > { %3047 = vset.pattern.permute.xlu1 %v4558_v52  ;;  %1819 = vmatmul.mubr.bf16.gmra.mrb[16].mxu0 %v517_v9  ;;  %v709_v3 = vmul.f32 %v656_v49, %v3868_v61  ;;  %v799_v29 = vmul.f32 %v752_v32, %v3750_v27 }
  0xe0   : > { %1884 = vmatmul.mubr.bf16.vlgmr.msra.gmra.mrb[0].mxu1 %v722_v17  ;;  %915 = vperm.xlu1 %3047, %v3152_v54   ;;  %v3885_v17 = vmax.f32 %v3355_v31, 0.0  ;;  %v708_v31 = vmul.f32 %v3787_v39, %v3876_v23  ;;  %v3912_v53 = vsel %vm625_vm1, %v613_v7, %v614_v30  ;;  %v3916_v10 = vsel %vm625_vm1, %v612_v51, %v613_v7 }
  0xe1   : > { %1891 = vmatprep.mubr.bf16.mxu1 %v811_v25  ;;  %2870 = vmatpush3.bf16.msra.mxu1 %v3126_v46  ;;  %v4559_v46 = vmov 5   ;;  %v3130_v25 = vld [vmem:[%s4518_s4 + $0x190] sm:$0xff]   ;;  %v812_v49 = vpack.c.bf16 %v799_v29, %v798_v2  ;;  %4560 = vst [vmem:[#allocation11_spill] sm:$0xff] %v3916_v10  ;;  %v3930_v29 = vld [vmem:[%s4517_s3 + $0x38] sm:$0xff] }
  0xe2   : > { %2871 = vmatprep.subr.bf16.mxu1 %v3127_v35  ;;  %v3902_v35 = vld [vmem:[%s4517_s3 + $0x30] sm:$0xff]  ;;  %v723_v32 = vpack.c.bf16 %v709_v3, %v708_v31  ;;  %v4536_v39 = vrot.slane %v3885_v17, 7  ;;  %v664_v54 = vpop.permute.xlu0 %663  ;;  %v3132_v31 = vld [vmem:[%s4518_s4 + $0x198] sm:$0xff]  }
  0xe3   : > { %v660_v9 = vpop.permute.xlu1 %659  ;;  %v711_v51 = vmul.f32 %v664_v54, %v3912_v53 }
  0xe4   : > { %3049 = vset.pattern.permute.xlu1 %v4559_v46  ;;  %v710_v7 = vmul.f32 %v660_v9, %v3916_v10 }
  0xe5   : > { %851 = vperm.xlu1 %3049, %v3902_v35   ;;  %2872 = vmatpush3.bf16.msra.mxu1 %v3128_v42  ;;  %v3131_v42 = vld [vmem:[%s4518_s4 + $0x1d8] sm:$0xff]  }
  0xe6   : > { %2873 = vmatprep.subr.bf16.mxu1 %v3129_v36  ;;  %v4561_v36 = vrot.slane %v3785_v34, 7 }
  0xe8   : > { %1892 = vmatmul.mubr.bf16.gmra.mrb[4].mxu1 %v723_v32  ;;  %v563_v3 = vpop.permute.xlu1 %562  ;;  %v3925_v2 = vsel %vm400_vm0, %v4561_v36, %v391_v37  ;;  %v3942_v32 = vsel %vm400_vm0, %v391_v37, %v4536_v39  ;;  %v724_v37 = vpack.c.bf16 %v711_v51, %v710_v7  ;;  %v3135_v7 = vld [vmem:[%s4518_s4 + $0x1e8] sm:$0xff]  }
  0xe9   : > { %4562 = vst [vmem:[#allocation12_spill] sm:$0xff] %v3925_v2  ;;  %1899 = vmatprep.mubr.bf16.mxu1 %v812_v49  ;;  %855 = vperm.xlu1 %3049, %v3930_v29   ;;  %4563 = vst [vmem:[#allocation13_spill] sm:$0xff] %v3942_v32  ;;  %v3133_v49 = vld [vmem:[%s4518_s4 + $0x1e0] sm:$0xff]   ;;  %v507_v54 = vmul.f32 %v3730_v62, %v3925_v2  ;;  %v508_v27 = vmul.f32 %v3579_v56, %v3942_v32  ;;  %v615_v62 = vrot.slane %v3718_v45, 1 }
  0xea   : > { %2874 = vmatpush3.bf16.msra.mxu1 %v3130_v25  ;;  %v595_v25 = vmul.f32 %v563_v3, %v3882_v38  ;;  %v800_v56 = vmul.f32 %v3563_v40, %v3761_v21  ;;  %v3981_v40 = vld [vmem:[%s4517_s3 + $0x10] sm:$0xff] }
  0xeb   : > { %2875 = vmatprep.subr.bf16.mxu1 %v3131_v42  ;;  %v3957_v42 = vld [vmem:[%s4517_s3 + $0x18] sm:$0xff]  ;;  %v518_v51 = vpack.c.bf16 %v508_v27, %v507_v54  ;;  %v3989_v54 = vsel %vm625_vm1, %v614_v30, %v615_v62  ;;  %v3138_v30 = vld [vmem:[%s4518_s4 + $0x1b0] sm:$0xff]  }
  0xec   : > { %v567_v9 = vpop.permute.xlu1 %566 }
  0xed   : > { %v596_v36 = vmul.f32 %v567_v9, %v3885_v17  ;;  %3050 = vset.pattern.permute.xlu1 %v4557_v8  ;;  %v3134_v9 = vld [vmem:[%s4518_s4 + $0x1a0] sm:$0xff]  }
  0xee   : > { %1015 = vperm.xlu1 %3050, %v3957_v42   ;;  %2876 = vmatpush3.bf16.msra.mxu1 %v3132_v31  ;;  %v672_v31 = vpop.permute.xlu0 %671 }
  0xef   : > { %v606_v3 = vpack.c.bf16 %v596_v36, %v595_v25  ;;  %2877 = vmatprep.subr.bf16.mxu1 %v3133_v49  ;;  %v4564_v49 = vrot.slane %v3783_v41, 1  ;;  %v3137_v36 = vld [vmem:[%s4518_s4 + $0x1f0] sm:$0xff]  }
  0xf0   : > { %1900 = vmatmul.mubr.bf16.gmra.mrb[8].mxu1 %v724_v37 }
  0xf1   : > { %v760_v5 = vpop.permute.xlu1 %759  ;;  %1826 = vmatprep.mubr.bf16.mxu0 %v606_v3  ;;  %v3976_v25 = vsel %vm625_vm1, %v615_v62, %v4564_v49  ;;  %v4018_v49 = vld [vmem:[%s4517_s3 + $0x48] sm:$0xff] }
  0xf2   : > { %v801_v39 = vmul.f32 %v760_v5, %v3814_v50  ;;  %3051 = vset.pattern.permute.xlu1 %v4558_v52  ;;  %1827 = vmatmul.mubr.bf16.gmra.mrb[20].mxu0 %v518_v51  ;;  %v3136_v5 = vld [vmem:[%s4518_s4 + $0x1a8] sm:$0xff]   ;;  %v713_v37 = vmul.f32 %v672_v31, %v3976_v25  ;;  %v4013_v31 = vmax.f32 %v3475_v11, 0.0  ;;  %v4076_v50 = vmax.f32 %v3478_v14, 0.0 }
  0xf3   : > { %923 = vperm.xlu1 %3051, %v3981_v40   ;;  %2878 = vmatpush3.bf16.msra.mxu1 %v3134_v9 }
  0xf4   : > { %v813_v27 = vpack.c.bf16 %v801_v39, %v800_v56  ;;  %2879 = vmatprep.subr.bf16.mxu1 %v3135_v7  ;;  %v4000_v39 = vld [vmem:[%s4517_s3 + $0x40] sm:$0xff]  ;;  %v3139_v56 = vld [vmem:[%s4518_s4 + $0x1f8] sm:$0xff]   ;;  %v4010_v7 = vmax.f32 %v3453_v55, 0.0  ;;  %v395_v14 = vrot.slane %v4076_v50, 7 }
  0xf6   : > { %v668_v3 = vpop.permute.xlu1 %667  ;;  %1907 = vmatprep.mubr.bf16.mxu1 %v813_v27  ;;  %v393_v11 = vrot.slane %v4010_v7, 7 }
  0xf7   : > { %v712_v9 = vmul.f32 %v668_v3, %v3989_v54  ;;  %3052 = vset.pattern.permute.xlu1 %v4559_v46  ;;  %2880 = vmatpush3.bf16.msra.mxu1 %v3136_v5  ;;  %v3140_v5 = vld [vmem:[%s4518_s4 + $0x1b8] sm:$0xff]   ;;  %v802_v3 = vmul.f32 %v3571_v48, %v3827_v18 }
  0xf8   : > { %859 = vperm.xlu1 %3052, %v4000_v39   ;;  %2881 = vmatprep.subr.bf16.mxu1 %v3137_v36 }
  0xf9   : > { %v725_v62 = vpack.c.bf16 %v713_v37, %v712_v9  ;;  %v394_v9 = vrot.slane %v4013_v31, 7 }
  0xfb   : > { %v571_v51 = vpop.permute.xlu1 %570  ;;  %1908 = vmatmul.mubr.bf16.gmra.mrb[12].mxu1 %v725_v62  ;;  %v4565_v62 = vrot.slane %v3885_v17, 7  ;;  %v4044_v48 = vsel %vm400_vm0, %v393_v11, %v394_v9 }
  0xfc   : > { %863 = vperm.xlu1 %3052, %v4018_v49   ;;  %2882 = vmatpush3.bf16.msra.mxu1 %v3138_v30  ;;  %v597_v55 = vmul.f32 %v571_v51, %v4010_v7 }
  0xfd   : > { %2883 = vmatprep.subr.bf16.mxu1 %v3139_v56  ;;  %v4036_v56 = vsel %vm400_vm0, %v4565_v62, %v393_v11  ;;  %v4567_v62 = vrot.slane %v3783_v41, 1  ;;  %v4060_v11 = vld [vmem:[%s4517_s3 + $0x50] sm:$0xff] }
  0xfe   : > { %4566 = vst [vmem:[#allocation14_spill] sm:$0xff] %v4036_v56 }
  0xff   : > { %v575_v27 = vpop.permute.xlu1 %574 }
 0x100   : > { %v598_v36 = vmul.f32 %v575_v27, %v4013_v31  ;;  %3053 = vset.pattern.permute.xlu1 %v4557_v8  ;;  %2884 = vmatpush3.bf16.msra.mxu1 %v3140_v5  ;;  %v509_v27 = vmul.f32 %v3753_v28, %v4036_v56 }
 0x101   : > { %1023 = vperm.xlu1 %3053, %v3820_v20   ;;  %v617_v20 = vrot.slane %v3785_v34, 1 }
 0x102   : > { %v607_v37 = vpack.c.bf16 %v598_v36, %v597_v55  ;;  %v618_v55 = vrot.slane %v3882_v38, 1 }
 0x104   : > { %v768_v30 = vpop.permute.xlu1 %767  ;;  %1834 = vmatprep.mubr.bf16.mxu0 %v607_v37 }
 0x105   : > { %v803_v51 = vmul.f32 %v768_v30, %v3925_v2  ;;  %3054 = vset.pattern.permute.xlu1 %v4558_v52  ;;  %v676_v30 = vpop.permute.xlu0 %675 }
 0x106   : > { %931 = vperm.xlu1 %3054, %v3798_v26  }
 0x107   : > { %v814_v5 = vpack.c.bf16 %v803_v51, %v802_v3  ;;  %v4055_v3 = vsel %vm625_vm1, %v4567_v62, %v617_v20  ;;  %v4065_v51 = vsel %vm625_vm1, %v617_v20, %v618_v55  ;;  %v4072_v62 = vld [vmem:[%s4517_s3 + $0x58] sm:$0xff]  ;;  %v600_v20 = vmul.f32 %v3604_v6, %v3598_v22 }
 0x108   : > { %v4088_v6 = vsel %vm400_vm0, %v394_v9, %v395_v14  ;;  %v4569_v9 = vrot.slane %v3598_v22, 7 }
 0x109   : > { %v485_v36 = vpop.permute.xlu1 %484  ;;  %1915 = vmatprep.mubr.bf16.mxu1 %v814_v5  ;;  %v714_v5 = vmul.f32 %v676_v30, %v4055_v3  ;;  %4568 = vst [vmem:[#allocation15_spill] sm:$0xff] %v4088_v6 }
 0x10a   : > { %v510_v37 = vmul.f32 %v485_v36, %v4044_v48  ;;  %3056 = vset.pattern.permute.xlu1 %v4559_v46 }
 0x10b   : > { %867 = vperm.xlu1 %3056, %v4060_v11  }
 0x10c   : > { %v519_v28 = vpack.c.bf16 %v510_v37, %v509_v27 }
 0x10e   : > { %v680_v36 = vpop.permute.xlu1 %679  ;;  %1835 = vmatmul.mubr.bf16.gmra.mrb[24].mxu0 %v519_v28 }
 0x10f   : > { %v715_v2 = vmul.f32 %v680_v36, %v4065_v51  ;;  %871 = vperm.xlu1 %3056, %v4072_v62  }
 0x111   : > { %v726_v27 = vpack.c.bf16 %v715_v2, %v714_v5 }
 0x113   : > { %3057 = vset.pattern.permute.xlu1 %v4557_v8  ;;  %v579_v37 = vpop.permute.xlu1 %578  ;;  %1916 = vmatmul.mubr.bf16.gmra.mrb[16].mxu1 %v726_v27 }
 0x114   : > { %v599_v30 = vmul.f32 %v579_v37, %v4076_v50  ;;  %1031 = vperm.xlu1 %3057, %v3930_v29   ;;  %v620_v37 = vrot.slane %v4010_v7, 1 }
 0x116   : > { %v608_v28 = vpack.c.bf16 %v600_v20, %v599_v30  ;;  %v4096_v20 = vld [vmem:[%s4517_s3 + $0x60] sm:$0xff] }
 0x118   : > { %3058 = vset.pattern.permute.xlu1 %v4558_v52  ;;  %v772_v36 = vpop.permute.xlu1 %771  ;;  %1842 = vmatprep.mubr.bf16.mxu0 %v608_v28  ;;  %v4105_v28 = vsel %vm400_vm0, %v395_v14, %v4569_v9 }
 0x119   : > { %939 = vperm.xlu1 %3058, %v3902_v35   ;;  %v804_v5 = vmul.f32 %v772_v36, %v3942_v32  ;;  %v619_v35 = vrot.slane %v3885_v17, 1  ;;  %v511_v36 = vmul.f32 %v3771_v44, %v4088_v6  ;;  %v688_v32 = vpop.permute.xlu0 %687 }
 0x11b   : > { %v4113_v18 = vsel %vm625_vm1, %v619_v35, %v620_v37 }
 0x11c   : > { %v776_v2 = vpop.permute.xlu1 %775  ;;  %v717_v14 = vmul.f32 %v688_v32, %v4113_v18 }
 0x11d   : > { %v805_v27 = vmul.f32 %v776_v2, %v4036_v56  ;;  %3059 = vset.pattern.permute.xlu1 %v4559_v46 }
 0x11e   : > { %875 = vperm.xlu1 %3059, %v4096_v20  }
 0x11f   : > { %v815_v30 = vpack.c.bf16 %v805_v27, %v804_v5  ;;  %v4117_v27 = vsel %vm625_vm1, %v618_v55, %v619_v35 }
 0x121   : > { %v495_v2 = vpop.permute.xlu1 %494  ;;  %1923 = vmatprep.mubr.bf16.mxu1 %v815_v30 }
 0x122   : > { %v512_v56 = vmul.f32 %v495_v2, %v4105_v28  ;;  %879 = vperm.xlu1 %3059, %v3515_v24  }
 0x124   : > { %v520_v5 = vpack.c.bf16 %v512_v56, %v511_v36  ;;  %v4128_v56 = vld [vmem:[%s4518_s4 + $0x200] sm:$0xff]   ;;  %v4137_v36 = vld [vmem:[%s4517_s3 + $0x70] sm:$0xff] }
 0x125   : > { %2949 = vmatprep.subr.bf16.mxu0 %v4128_v56  ;;  %2981 = vmatprep.subr.bf16.mxu1 %v4128_v56 }
 0x126   : > { %3060 = vset.pattern.permute.xlu1 %v4557_v8  ;;  %v684_v44 = vpop.permute.xlu1 %683  ;;  %1843 = vmatmul.mubr.bf16.gmra.mrb[28].mxu0 %v520_v5  ;;  %v622_v5 = vrot.slane %v4076_v50, 1 }
 0x127   : > { %v716_v30 = vmul.f32 %v684_v44, %v4117_v27  ;;  %1039 = vperm.xlu1 %3060, %v4018_v49   ;;  %v890_v44 = vmul.f32 %v3793_v47, %v3837_v4  ;;  %v4167_v4 = vld [vmem:[%s4518_s4 + $0x208] sm:$0xff]  }
 0x129   : > { %v727_v9 = vpack.c.bf16 %v717_v14, %v716_v30 }
 0x12b   : > { %3061 = vset.pattern.permute.xlu1 %v4558_v52  ;;  %v780_v2 = vpop.permute.xlu1 %779  ;;  %1924 = vmatmul.mubr.bf16.gmra.mrb[20].mxu1 %v727_v9  ;;  %v4149_v9 = vld [vmem:[%s4517_s3 + $0x78] sm:$0xff] }
 0x12c   : > { %947 = vperm.xlu1 %3061, %v4000_v39   ;;  %v806_v55 = vmul.f32 %v780_v2, %v4044_v48  ;;  %v621_v39 = vrot.slane %v4013_v31, 1  ;;  %v696_v2 = vpop.permute.xlu0 %695 }
 0x12f   : > { %v784_v32 = vpop.permute.xlu1 %783 }
 0x130   : > { %v807_v35 = vmul.f32 %v784_v32, %v4088_v6  ;;  %3062 = vset.pattern.permute.xlu1 %v4559_v46  ;;  %v4154_v32 = vsel %vm625_vm1, %v621_v39, %v622_v5 }
 0x131   : > { %883 = vperm.xlu1 %3062, %v4137_v36  }
 0x132   : > { %v816_v14 = vpack.c.bf16 %v807_v35, %v806_v55  ;;  %v818_v55 = vpack.c.bf16 %v3614_v12, %v3583_v59  ;;  %v4160_v35 = vsel %vm625_vm1, %v620_v37, %v621_v39  ;;  %v819_v59 = vpack.c.bf16 %v3667_v57, %v3617_v58 }
 0x134   : > { %v832_v46 = vpop.permute.xlu1 %831  ;;  %1931 = vmatprep.mubr.bf16.mxu1 %v816_v14  ;;  %v719_v14 = vmul.f32 %v696_v2, %v4154_v32 }
 0x135   : > { %v891_v30 = vmul.f32 %v832_v46, %v3876_v23  ;;  %887 = vperm.xlu1 %3062, %v4149_v9  }
 0x137   : > { %v906_v47 = vpack.c.bf16 %v891_v30, %v890_v44  ;;  %v704_v44 = vpop.permute.xlu0 %703  ;;  %v4179_v30 = vld [vmem:[%s4518_s4 + $0x210] sm:$0xff]  }
 0x139   : > { %3063 = vset.pattern.permute.xlu1 %v4557_v8  ;;  %v692_v46 = vpop.permute.xlu1 %691  ;;  %1980 = vmatprep.mubr.bf16.mxu0 %v906_v47 }
 0x13a   : > { %v718_v6 = vmul.f32 %v692_v46, %v4160_v35  ;;  %1047 = vperm.xlu1 %3063, %v4072_v62   ;;  %1981 = vmatmul.mubr.bf16.vlgmr.msra.gmra.mrb[32].mxu0 %v818_v55  ;;  %v892_v46 = vmul.f32 %v3810_v13, %v3868_v61 }
 0x13b   : > { %2950 = vmatpush3.bf16.msra.mxu0 %v4128_v56  ;;  %v920_v47 = vpop.permute.xlu0 %919 }
 0x13c   : > { %v728_v37 = vpack.c.bf16 %v719_v14, %v718_v6  ;;  %2951 = vmatprep.subr.bf16.mxu0 %v4167_v4 }
 0x13e   : > { %3064 = vset.pattern.permute.xlu1 %v4558_v52  ;;  %v788_v39 = vpop.permute.xlu1 %787  ;;  %1932 = vmatmul.mubr.bf16.gmra.mrb[24].mxu1 %v728_v37 }
 0x13f   : > { %955 = vperm.xlu1 %3064, %v4060_v11   ;;  %2952 = vmatpush3.bf16.msra.mxu0 %v4167_v4  ;;  %v808_v55 = vmul.f32 %v788_v39, %v4105_v28  ;;  %v623_v11 = vrot.slane %v3598_v22, 1 }
 0x140   : > { %2953 = vmatprep.subr.bf16.mxu0 %v4179_v30 }
 0x142   : > { %v792_v2 = vpop.permute.xlu1 %791 }
 0x143   : > { %v809_v6 = vmul.f32 %v792_v2, %v3623_v63  ;;  %3065 = vset.pattern.permute.xlu1 %v4557_v8  ;;  %2954 = vmatpush3.bf16.msra.mxu0 %v4179_v30  ;;  %v4570_v2 = vrot.slane %v3585_v60, 1 }
 0x144   : > { %1051 = vperm.xlu1 %3065, %v4096_v20  }
 0x145   : > { %v817_v14 = vpack.c.bf16 %v809_v6, %v808_v55  ;;  %v4196_v63 = vsel %vm625_vm1, %v623_v11, %v4570_v2  ;;  %v4203_v55 = vld [vmem:[%s4518_s4 + $0x218] sm:$0xff]   ;;  %v4207_v6 = vsel %vm625_vm1, %v622_v5, %v623_v11 }
 0x146   : > { %2955 = vmatprep.subr.bf16.mxu0 %v4203_v55 }
 0x147   : > { %v840_v37 = vpop.permute.xlu1 %839  ;;  %1939 = vmatprep.mubr.bf16.mxu1 %v817_v14  ;;  %v721_v14 = vmul.f32 %v704_v44, %v4196_v63  ;;  %2956 = vmatpush3.bf16.msra.mxu0 %v4203_v55 }
 0x148   : > { %v893_v39 = vmul.f32 %v840_v37, %v3916_v10  ;;  %1055 = vperm.xlu1 %3065, %v3515_v24   ;;  %v4209_v24 = vpop.permute.xlu0 %927  ;;  %v4571_v37 = vmov 8   ;;  %2957 = vmatprep.subr.bf16.mxu0 %v4220_v0 }
 0x14a   : > { %v907_v13 = vpack.c.bf16 %v893_v39, %v892_v46 }
 0x14b   : > { %2958 = vmatpush3.bf16.msra.mxu0 %v4220_v0 }
 0x14c   : > { %3068 = vset.pattern.permute.xlu1 %v4571_v37  ;;  %v700_v2 = vpop.permute.xlu1 %699  ;;  %1988 = vmatprep.mubr.bf16.mxu0 %v907_v13  ;;  %v4222_v44 = vpop.permute.xlu0 %935  ;;  %v820_v13 = vpack.c.bf16 %v3716_v19, %v3669_v43 }
 0x14d   : > { %v720_v10 = vmul.f32 %v700_v2, %v4207_v6  ;;  %1095 = vperm.xlu1 %3068, %v3856_v33   ;;  %1989 = vmatmul.mubr.bf16.gmra.mrb[36].mxu0 %v819_v59  ;;  %v4231_v59 = vld [vmem:[%s4518_s4 + $0x228] sm:$0xff]  }
 0x14e   : > { %2959 = vmatprep.subr.bf16.mxu0 %v4231_v59 }
 0x14f   : > { %v729_v5 = vpack.c.bf16 %v721_v14, %v720_v10  ;;  %2960 = vmatpush3.bf16.msra.mxu0 %v4231_v59 }
 0x150   : > { %v1004_v39 = vpop.permute.xlu0 %1003 }
 0x151   : > { %3069 = vset.pattern.permute.xlu1 %v4558_v52  ;;  %v844_v11 = vpop.permute.xlu1 %843  ;;  %1940 = vmatmul.mubr.bf16.gmra.mrb[28].mxu1 %v729_v5  ;;  %v1066_v2 = vmul.f32 %v1004_v39, %v3614_v12 }
 0x152   : > { %963 = vperm.xlu1 %3069, %v4096_v20   ;;  %v894_v33 = vmul.f32 %v844_v11, %v3912_v53  ;;  %v4241_v20 = vld [vmem:[%s4518_s4 + $0x230] sm:$0xff]   ;;  %v4252_v11 = vld [vmem:[%s4518_s4 + $0x238] sm:$0xff]  }
 0x153   : > { %2961 = vmatprep.subr.bf16.mxu0 %v4241_v20 }
 0x154   : > { %2962 = vmatpush3.bf16.msra.mxu0 %v4241_v20 }
 0x155   : > { %v848_v10 = vpop.permute.xlu1 %847  ;;  %2963 = vmatprep.subr.bf16.mxu0 %v4252_v11 }
 0x156   : > { %v895_v46 = vmul.f32 %v848_v10, %v3989_v54  ;;  %3070 = vset.pattern.permute.xlu1 %v4571_v37 }
 0x157   : > { %1099 = vperm.xlu1 %3070, %v3981_v40  }
 0x158   : > { %v908_v14 = vpack.c.bf16 %v895_v46, %v894_v33  ;;  %v979_v33 = vmul.f32 %v920_v47, %v3659_v15  ;;  %2964 = vmatpush3.bf16.msra.mxu0 %v4252_v11  ;;  %v821_v47 = vpack.c.bf16 %v3783_v41, %v3718_v45 }
 0x15a   : > { %v1008_v5 = vpop.permute.xlu1 %1007  ;;  %1996 = vmatprep.mubr.bf16.mxu0 %v908_v14 }
 0x15b   : > { %v1067_v10 = vmul.f32 %v1008_v5, %v3617_v58  ;;  %1103 = vperm.xlu1 %3070, %v3957_v42   ;;  %1997 = vmatmul.mubr.bf16.gmra.mrb[40].mxu0 %v820_v13 }
 0x15d   : > { %v1082_v40 = vpack.c.bf16 %v1067_v10, %v1066_v2 }
 0x15f   : > { %3072 = vset.pattern.permute.xlu1 %v4557_v8  ;;  %v916_v12 = vpop.permute.xlu1 %915  ;;  %2077 = vmatprep.mubr.bf16.mxu1 %v1082_v40 }
 0x160   : > { %v978_v46 = vmul.f32 %v916_v12, %v3655_v16  ;;  %1063 = vperm.xlu1 %3072, %v4149_v9   ;;  %v1012_v16 = vpop.permute.xlu0 %1011 }
 0x162   : > { %v994_v39 = vpack.c.bf16 %v979_v33, %v978_v46  ;;  %v4573_v46 = vld [vmem:[#allocation6_spill] sm:$0xff] }
 0x164   : > { %3073 = vset.pattern.permute.xlu1 %v4571_v37  ;;  %v852_v58 = vpop.permute.xlu1 %851  ;;  %2078 = vmatmul.mubr.bf16.vlgmr.msra.gmra.mrb[32].mxu1 %v994_v39 }
 0x165   : > { %1107 = vperm.xlu1 %3073, %v3798_v26   ;;  %2989 = vmatpush3.bf16.msra.mxu1 %v4128_v56  ;;  %v896_v8 = vmul.f32 %v852_v58, %v3976_v25  ;;  %v1068_v56 = vmul.f32 %v1012_v16, %v3667_v57 }
 0x166   : > { %2982 = vmatprep.subr.bf16.mxu1 %v4167_v4 }
 0x168   : > { %v856_v15 = vpop.permute.xlu1 %855 }
 0x169   : > { %v897_v42 = vmul.f32 %v856_v15, %v4055_v3  ;;  %3075 = vset.pattern.permute.xlu1 %v4558_v52  ;;  %2990 = vmatpush3.bf16.msra.mxu1 %v4167_v4  ;;  %v981_v52 = vmul.f32 %v4209_v24, %v3714_v1 }
 0x16a   : > { %971 = vperm.xlu1 %3075, %v4137_v36   ;;  %2983 = vmatprep.subr.bf16.mxu1 %v4179_v30  ;;  %v4572_v36 = vld [vmem:[#allocation5_spill] sm:$0xff] }
 0x16b   : > { %v909_v26 = vpack.c.bf16 %v897_v42, %v896_v8 }
 0x16d   : > { %v1016_v13 = vpop.permute.xlu1 %1015  ;;  %2004 = vmatprep.mubr.bf16.mxu0 %v909_v26  ;;  %2991 = vmatpush3.bf16.msra.mxu1 %v4179_v30  ;;  %v1020_v30 = vpop.permute.xlu0 %1019 }
 0x16e   : > { %v1069_v14 = vmul.f32 %v1016_v13, %v3669_v43  ;;  %975 = vperm.xlu1 %3075, %v4149_v9   ;;  %2005 = vmatmul.mubr.bf16.gmra.mrb[44].mxu0 %v821_v47 }
 0x16f   : > { %2984 = vmatprep.subr.bf16.mxu1 %v4203_v55 }
 0x170   : > { %v1083_v4 = vpack.c.bf16 %v1069_v14, %v1068_v56  ;;  %v823_v56 = vpack.c.bf16 %v4010_v7, %v3885_v17 }
 0x171   : > { %2992 = vmatpush3.bf16.msra.mxu1 %v4203_v55 }
 0x172   : > { %3076 = vset.pattern.permute.xlu1 %v4571_v37  ;;  %v924_v57 = vpop.permute.xlu1 %923  ;;  %2085 = vmatprep.mubr.bf16.mxu1 %v1083_v4 }
 0x173   : > { %v980_v2 = vmul.f32 %v924_v57, %v4572_v36  ;;  %1119 = vperm.xlu1 %3076, %v3930_v29   ;;  %2985 = vmatprep.subr.bf16.mxu1 %v4220_v0  ;;  %v1028_v29 = vpop.permute.xlu0 %1027 }
 0x174   : > { %v1072_v14 = vmul.f32 %v1028_v29, %v3783_v41  ;;  %v4575_v41 = vld [vmem:[#allocation7_spill] sm:$0xff] }
 0x175   : > { %v995_v43 = vpack.c.bf16 %v981_v52, %v980_v2  ;;  %2993 = vmatpush3.bf16.msra.mxu1 %v4220_v0  ;;  %v822_v0 = vpack.c.bf16 %v3882_v38, %v3785_v34 }
 0x176   : > { %2986 = vmatprep.subr.bf16.mxu1 %v4231_v59 }
 0x177   : > { %1127 = vperm.xlu1 %3076, %v4018_v49   ;;  %v860_v1 = vpop.permute.xlu1 %859  ;;  %2086 = vmatmul.mubr.bf16.gmra.mrb[36].mxu1 %v995_v43  ;;  %v1036_v40 = vpop.permute.xlu0 %1035 }
 0x178   : > { %v898_v24 = vmul.f32 %v860_v1, %v4065_v51 }
 0x179   : > { %2994 = vmatpush3.bf16.msra.mxu1 %v4231_v59  ;;  %v3164_v59 = vld [vmem:[%s4517_s3 + $0x68] sm:$0xff] }
 0x17a   : > { %2987 = vmatprep.subr.bf16.mxu1 %v4241_v20 }
 0x17b   : > { %1135 = vperm.xlu1 %3076, %v4072_v62   ;;  %v864_v55 = vpop.permute.xlu1 %863  ;;  %v1070_v62 = vmul.f32 %v1020_v30, %v3716_v19  ;;  %v4308_v58 = vpop.permute.xlu0 %1043 }
 0x17c   : > { %v899_v37 = vmul.f32 %v864_v55, %v4117_v27 }
 0x17d   : > { %2995 = vmatpush3.bf16.msra.mxu1 %v4241_v20  ;;  %v983_v20 = vmul.f32 %v4222_v44, %v3761_v21 }
 0x17e   : > { %v910_v49 = vpack.c.bf16 %v899_v37, %v898_v24  ;;  %2988 = vmatprep.subr.bf16.mxu1 %v4252_v11  ;;  %v4574_v24 = vld [vmem:[#allocation8_spill] sm:$0xff] }
 0x17f   : > { %1143 = vperm.xlu1 %3076, %v3164_v59   ;;  %v4310_v42 = vpop.permute.xlu0 %1091 }
 0x180   : > { %v1024_v5 = vpop.permute.xlu1 %1023  ;;  %2012 = vmatprep.mubr.bf16.mxu0 %v910_v49 }
 0x181   : > { %v1071_v10 = vmul.f32 %v1024_v5, %v3718_v45  ;;  %2013 = vmatmul.mubr.bf16.gmra.mrb[48].mxu0 %v822_v0  ;;  %2996 = vmatpush3.bf16.msra.mxu1 %v4252_v11 }
 0x183   : > { %v1084_v33 = vpack.c.bf16 %v1071_v10, %v1070_v62  ;;  %1151 = vperm.xlu1 %3076, %v4149_v9   ;;  %v944_v36 = vpop.permute.xlu0 %943 }
 0x184   : > { %v985_v37 = vmul.f32 %v944_v36, %v4574_v24 }
 0x185   : > { %v932_v12 = vpop.permute.xlu1 %931  ;;  %2093 = vmatprep.mubr.bf16.mxu1 %v1084_v33 }
 0x186   : > { %v982_v39 = vmul.f32 %v932_v12, %v4573_v46 }
 0x188   : > { %v996_v19 = vpack.c.bf16 %v983_v20, %v982_v39 }
 0x18a   : > { %v868_v15 = vpop.permute.xlu1 %867  ;;  %2094 = vmatmul.mubr.bf16.gmra.mrb[40].mxu1 %v996_v19 }
 0x18b   : > { %v900_v47 = vmul.f32 %v868_v15, %v4113_v18  ;;  %v824_v15 = vpack.c.bf16 %v4076_v50, %v4013_v31 }
 0x18c   : > { %v2693_v45 = vpop.f32.mrb[0].mxu0 }
 0x18d   : > { %v2694_v8 = vpop.f32.mrb[1].mxu0 }
 0x18e   : > { %v872_v11 = vpop.permute.xlu1 %871  ;;  %v4312_v16 = vadd.f32 %v2694_v8, %v2693_v45  ;;  %v2696_v9 = vpop.f32.mrb[2].mxu0 }
 0x18f   : > { %v901_v21 = vmul.f32 %v872_v11, %v4160_v35  ;;  %v2697_v44 = vpop.f32.mrb[3].mxu0  ;;  %v1074_v11 = vmul.f32 %v1036_v40, %v3882_v38 }
 0x190   : > { %v4316_v26 = vadd.f32 %v2697_v44, %v2696_v9 }
 0x191   : > { %v911_v13 = vpack.c.bf16 %v901_v21, %v900_v47 }
 0x193   : > { %v1032_v4 = vpop.permute.xlu1 %1031  ;;  %2020 = vmatprep.mubr.bf16.mxu0 %v911_v13 }
 0x194   : > { %v1073_v52 = vmul.f32 %v1032_v4, %v3785_v34  ;;  %v2699_v57 = vpop.f32.mrb[4].mxu0  ;;  %2021 = vmatmul.mubr.bf16.gmra.mrb[52].mxu0 %v823_v56 }
 0x195   : > { %v2700_v2 = vpop.f32.mrb[5].mxu0 }
 0x196   : > { %v1085_v43 = vpack.c.bf16 %v1073_v52, %v1072_v14  ;;  %v4322_v1 = vadd.f32 %v2700_v2, %v2699_v57  ;;  %v2702_v30 = vpop.f32.mrb[6].mxu0  ;;  %v952_v14 = vpop.permute.xlu0 %951  ;;  %v4576_v57 = vld [vmem:[#allocation13_spill] sm:$0xff] }
 0x197   : > { %v2703_v55 = vpop.f32.mrb[7].mxu0  ;;  %v987_v36 = vmul.f32 %v952_v14, %v4576_v57 }
 0x198   : > { %v4325_v0 = vadd.f32 %v2703_v55, %v2702_v30  ;;  %v940_v49 = vpop.permute.xlu1 %939  ;;  %2101 = vmatprep.mubr.bf16.mxu1 %v1085_v43  ;;  %v4577_v43 = vld [vmem:[#allocation12_spill] sm:$0xff] }
 0x199   : > { %v984_v29 = vmul.f32 %v940_v49, %v4575_v41 }
 0x19b   : > { %v997_v59 = vpack.c.bf16 %v985_v37, %v984_v29 }
 0x19c   : > { %v2705_v62 = vpop.f32.mrb[8].mxu0 }
 0x19d   : > { %v876_v34 = vpop.permute.xlu1 %875  ;;  %v2706_v5 = vpop.f32.mrb[9].mxu0  ;;  %2102 = vmatmul.mubr.bf16.gmra.mrb[44].mxu1 %v997_v59 }
 0x19e   : > { %v4328_v10 = vadd.f32 %v2706_v5, %v2705_v62  ;;  %v2708_v33 = vpop.f32.mrb[10].mxu0  ;;  %v902_v39 = vmul.f32 %v876_v34, %v4154_v32  ;;  %v4578_v62 = vld [vmem:[#allocation9_spill] sm:$0xff] }
 0x19f   : > { %v2709_v20 = vpop.f32.mrb[11].mxu0 }
 0x1a0   : > { %v4330_v12 = vadd.f32 %v2709_v20, %v2708_v33 }
 0x1a1   : > { %v880_v46 = vpop.permute.xlu1 %879 }
 0x1a2   : > { %v903_v19 = vmul.f32 %v880_v46, %v4207_v6 }
 0x1a4   : > { %v912_v45 = vpack.c.bf16 %v903_v19, %v902_v39  ;;  %v2711_v8 = vpop.f32.mrb[12].mxu0  ;;  %v825_v39 = vpack.c.bf16 %v3585_v60, %v3598_v22 }
 0x1a5   : > { %v2712_v9 = vpop.f32.mrb[13].mxu0 }
 0x1a6   : > { %v4337_v47 = vadd.f32 %v2712_v9, %v2711_v8  ;;  %v1040_v21 = vpop.permute.xlu1 %1039  ;;  %v2714_v44 = vpop.f32.mrb[14].mxu0  ;;  %2028 = vmatprep.mubr.bf16.mxu0 %v912_v45 }
 0x1a7   : > { %v1075_v56 = vmul.f32 %v1040_v21, %v3885_v17  ;;  %v2715_v13 = vpop.f32.mrb[15].mxu0  ;;  %2029 = vmatmul.mubr.bf16.gmra.mrb[56].mxu0 %v824_v15  ;;  %v1076_v21 = vmul.f32 %v4308_v58, %v4010_v7 }
 0x1a8   : > { %v4340_v4 = vadd.f32 %v2715_v13, %v2714_v44 }
 0x1a9   : > { %v1086_v52 = vpack.c.bf16 %v1075_v56, %v1074_v11  ;;  %v960_v56 = vpop.permute.xlu0 %959 }
 0x1ab   : > { %v948_v2 = vpop.permute.xlu1 %947  ;;  %2109 = vmatprep.mubr.bf16.mxu1 %v1086_v52 }
 0x1ac   : > { %v986_v38 = vmul.f32 %v948_v2, %v4577_v43 }
 0x1ae   : > { %v998_v40 = vpack.c.bf16 %v987_v36, %v986_v38  ;;  %v989_v36 = vmul.f32 %v960_v56, %v4044_v48 }
 0x1b0   : > { %v884_v30 = vpop.permute.xlu1 %883  ;;  %2110 = vmatmul.mubr.bf16.gmra.mrb[48].mxu1 %v998_v40  ;;  %v4579_v40 = vld [vmem:[#allocation14_spill] sm:$0xff] }
 0x1b1   : > { %v904_v29 = vmul.f32 %v884_v30, %v4196_v63 }
 0x1b2   : > { %v2717_v55 = vpop.f32.mrb[16].mxu0 }
 0x1b3   : > { %v2757_v24 = vpop.f32.mrb[0].mxu1  ;;  %v2718_v37 = vpop.f32.mrb[17].mxu0 }
 0x1b4   : > { %v4344_v49 = vadd.f32 %v2718_v37, %v2717_v55  ;;  %v2758_v17 = vpop.f32.mrb[1].mxu1  ;;  %v888_v41 = vpop.permute.xlu1 %887 }
 0x1b5   : > { %v2759_v59 = vadd.f32 %v2758_v17, %v2757_v24  ;;  %v905_v34 = vmul.f32 %v888_v41, %v4578_v62  ;;  %v2720_v5 = vpop.f32.mrb[18].mxu0  ;;  %v2760_v33 = vpop.f32.mrb[2].mxu1 }
 0x1b6   : > { %v2721_v20 = vpop.f32.mrb[19].mxu0  ;;  %v2761_v46 = vpop.f32.mrb[3].mxu1 }
 0x1b7   : > { %v4351_v19 = vadd.f32 %v2759_v59, %v4312_v16  ;;  %v913_v15 = vpack.c.bf16 %v905_v34, %v904_v29  ;;  %v4353_v45 = vadd.f32 %v2721_v20, %v2720_v5  ;;  %v2762_v8 = vadd.f32 %v2761_v46, %v2760_v33 }
 0x1b9   : > { %v4356_v11 = vadd.f32 %v2762_v8, %v4316_v26  ;;  %v1048_v9 = vpop.permute.xlu1 %1047  ;;  %2036 = vmatprep.mubr.bf16.mxu0 %v913_v15 }
 0x1ba   : > { %v1077_v44 = vmul.f32 %v1048_v9, %v4013_v31  ;;  %2037 = vmatmul.mubr.bf16.gmra.mrb[60].mxu0 %v825_v39 }
 0x1bb   : > { %v2763_v13 = vpop.f32.mrb[4].mxu1 }
 0x1bc   : > { %v1087_v14 = vpack.c.bf16 %v1077_v44, %v1076_v21  ;;  %v2764_v16 = vpop.f32.mrb[5].mxu1  ;;  %v968_v44 = vpop.permute.xlu0 %967 }
 0x1bd   : > { %v2765_v52 = vadd.f32 %v2764_v16, %v2763_v13  ;;  %v2766_v57 = vpop.f32.mrb[6].mxu1  ;;  %v991_v16 = vmul.f32 %v968_v44, %v4105_v28 }
 0x1be   : > { %v2767_v2 = vpop.f32.mrb[7].mxu1  ;;  %v956_v43 = vpop.permute.xlu1 %955  ;;  %2117 = vmatprep.mubr.bf16.mxu1 %v1087_v14 }
 0x1bf   : > { %v4363_v26 = vadd.f32 %v2765_v52, %v4322_v1  ;;  %v2768_v38 = vadd.f32 %v2767_v2, %v2766_v57  ;;  %v988_v7 = vmul.f32 %v956_v43, %v4579_v40 }
 0x1c0   : > { %v1060_v40 = vpop.permute.xlu0 %1059 }
 0x1c1   : > { %v4367_v31 = vadd.f32 %v2768_v38, %v4325_v0  ;;  %v999_v58 = vpack.c.bf16 %v989_v36, %v988_v7  ;;  %v4580_v36 = vld [vmem:[#allocation15_spill] sm:$0xff] }
 0x1c2   : > { %v4581_v7 = vld [vmem:[#allocation11_spill] sm:$0xff] }
 0x1c3   : > { %v2769_v30 = vpop.f32.mrb[8].mxu1  ;;  %v1052_v55 = vpop.permute.xlu1 %1051  ;;  %2118 = vmatmul.mubr.bf16.gmra.mrb[52].mxu1 %v999_v58 }
 0x1c4   : > { %v2770_v24 = vpop.f32.mrb[9].mxu1  ;;  %v1078_v0 = vmul.f32 %v1052_v55, %v4076_v50  ;;  %v1080_v55 = vmul.f32 %v1060_v40, %v3585_v60 }
 0x1c5   : > { %v2771_v37 = vadd.f32 %v2770_v24, %v2769_v30  ;;  %v2772_v17 = vpop.f32.mrb[10].mxu1  ;;  %v2723_v48 = vpop.f32.mrb[20].mxu0  ;;  %v4582_v24 = vld [vmem:[#allocation2_spill] sm:$0xff] }
 0x1c6   : > { %v2773_v41 = vpop.f32.mrb[11].mxu1  ;;  %v2724_v29 = vpop.f32.mrb[21].mxu0 }
 0x1c7   : > { %v4370_v59 = vadd.f32 %v2771_v37, %v4328_v10  ;;  %v2774_v1 = vadd.f32 %v2773_v41, %v2772_v17  ;;  %v4372_v34 = vadd.f32 %v2724_v29, %v2723_v48  ;;  %v1056_v5 = vpop.permute.xlu1 %1055  ;;  %v2726_v33 = vpop.f32.mrb[22].mxu0  ;;  %v1154_v10 = vmul.f32 %v4310_v42, %v3876_v23 }
 0x1c8   : > { %v1079_v20 = vmul.f32 %v1056_v5, %v3598_v22  ;;  %v2727_v46 = vpop.f32.mrb[23].mxu0  ;;  %v1112_v17 = vpop.permute.xlu0 %1111 }
 0x1c9   : > { %v4377_v39 = vadd.f32 %v2774_v1, %v4330_v12  ;;  %v4379_v15 = vadd.f32 %v2727_v46, %v2726_v33  ;;  %v1159_v29 = vmul.f32 %v1112_v17, %v3976_v25 }
 0x1ca   : > { %v1088_v8 = vpack.c.bf16 %v1079_v20, %v1078_v0 }
 0x1cc   : > { %v1096_v9 = vpop.permute.xlu1 %1095  ;;  %2125 = vmatprep.mubr.bf16.mxu1 %v1088_v8  ;;  %v1116_v46 = vpop.permute.xlu0 %1115 }
 0x1cd   : > { %v1155_v21 = vmul.f32 %v1096_v9, %v3868_v61 }
 0x1ce   : > { %v2775_v56 = vpop.f32.mrb[12].mxu1 }
 0x1cf   : > { %v1170_v13 = vpack.c.bf16 %v1155_v21, %v1154_v10  ;;  %v2776_v50 = vpop.f32.mrb[13].mxu1 }
 0x1d0   : > { %v2777_v14 = vadd.f32 %v2776_v50, %v2775_v56  ;;  %v2778_v22 = vpop.f32.mrb[14].mxu1 }
 0x1d1   : > { %v964_v12 = vpop.permute.xlu1 %963  ;;  %v2779_v52 = vpop.f32.mrb[15].mxu1  ;;  %2965 = vmatprep.mubr.bf16.mxu0 %v1170_v13 }
 0x1d2   : > { %v4386_v57 = vadd.f32 %v2777_v14, %v4337_v47  ;;  %v990_v23 = vmul.f32 %v964_v12, %v4580_v36  ;;  %v2780_v42 = vadd.f32 %v2779_v52, %v2778_v22  ;;  %v1124_v14 = vpop.permute.xlu0 %1123  ;;  %v4583_v22 = vld [vmem:[#allocation3_spill] sm:$0xff]  ;;  %v4584_v12 = vld [vmem:[#allocation4_spill] sm:$0xff] }
 0x1d3   : > { %v1162_v40 = vmul.f32 %v1124_v14, %v4117_v27 }
 0x1d4   : > { %v1000_v2 = vpack.c.bf16 %v991_v16, %v990_v23  ;;  %v4390_v61 = vadd.f32 %v2780_v42, %v4340_v4  ;;  %v1160_v42 = vmul.f32 %v1116_v46, %v4055_v3 }
 0x1d6   : > { %v1100_v43 = vpop.permute.xlu1 %1099  ;;  %2126 = vmatmul.mubr.bf16.gmra.mrb[56].mxu1 %v1000_v2  ;;  %v1132_v2 = vpop.permute.xlu0 %1131 }
 0x1d7   : > { %v1156_v58 = vmul.f32 %v1100_v43, %v4581_v7 }
 0x1da   : > { %v1104_v38 = vpop.permute.xlu1 %1103  ;;  %v1140_v7 = vpop.permute.xlu0 %1139 }
 0x1db   : > { %v1157_v28 = vmul.f32 %v1104_v38, %v3912_v53 }
 0x1dd   : > { %v1171_v30 = vpack.c.bf16 %v1157_v28, %v1156_v58 }
 0x1df   : > { %v1064_v47 = vpop.permute.xlu1 %1063  ;;  %2966 = vmatmul.mubr.bf16.vlgmr.msra.gmra.mrb[64].mxu0 %v1171_v30 }
 0x1e0   : > { %v1081_v37 = vmul.f32 %v1064_v47, %v4582_v24  ;;  %v1164_v47 = vmul.f32 %v1132_v2, %v4160_v35 }
 0x1e1   : > { %v2729_v48 = vpop.f32.mrb[24].mxu0 }
 0x1e2   : > { %v1089_v41 = vpack.c.bf16 %v1081_v37, %v1080_v55  ;;  %v2730_v4 = vpop.f32.mrb[25].mxu0 }
 0x1e3   : > { %v4397_v1 = vadd.f32 %v2730_v4, %v2729_v48  ;;  %v2732_v5 = vpop.f32.mrb[26].mxu0 }
 0x1e4   : > { %v1108_v33 = vpop.permute.xlu1 %1107  ;;  %v2733_v0 = vpop.f32.mrb[27].mxu0  ;;  %2133 = vmatprep.mubr.bf16.mxu1 %v1089_v41 }
 0x1e5   : > { %v1158_v53 = vmul.f32 %v1108_v33, %v3989_v54  ;;  %v4400_v20 = vadd.f32 %v2733_v0, %v2732_v5  ;;  %v1148_v5 = vpop.permute.xlu0 %1147 }
 0x1e6   : > { %v2781_v60 = vpop.f32.mrb[16].mxu1 }
 0x1e7   : > { %v1172_v8 = vpack.c.bf16 %v1159_v29, %v1158_v53  ;;  %v2782_v10 = vpop.f32.mrb[17].mxu1 }
 0x1e8   : > { %v2783_v9 = vadd.f32 %v2782_v10, %v2781_v60  ;;  %v2784_v21 = vpop.f32.mrb[18].mxu1  ;;  %v4585_v10 = vld [vmem:[#allocation10_spill] sm:$0xff] }
 0x1e9   : > { %v972_v44 = vpop.permute.xlu1 %971  ;;  %v2785_v56 = vpop.f32.mrb[19].mxu1  ;;  %2969 = vmatprep.mubr.bf16.mxu0 %v1172_v8  ;;  %v1168_v8 = vmul.f32 %v1148_v5, %v4578_v62 }
 0x1ea   : > { %v4403_v25 = vadd.f32 %v2783_v9, %v4344_v49  ;;  %v2786_v13 = vadd.f32 %v2785_v56, %v2784_v21  ;;  %v992_v16 = vmul.f32 %v972_v44, %v4583_v22 }
 0x1ec   : > { %v4406_v50 = vadd.f32 %v2786_v13, %v4353_v45 }
 0x1ed   : > { %v976_v54 = vpop.permute.xlu1 %975 }
 0x1ee   : > { %v993_v52 = vmul.f32 %v976_v54, %v4584_v12 }
 0x1f0   : > { %v1001_v36 = vpack.c.bf16 %v993_v52, %v992_v16 }
 0x1f2   : > { %v1120_v23 = vpop.permute.xlu1 %1119  ;;  %2134 = vmatmul.mubr.bf16.gmra.mrb[60].mxu1 %v1001_v36 }
 0x1f3   : > { %v1161_v43 = vmul.f32 %v1120_v23, %v4065_v51 }
 0x1f5   : > { %v1173_v49 = vpack.c.bf16 %v1161_v43, %v1160_v42 }
 0x1f6   : > { %v1128_v38 = vpop.permute.xlu1 %1127 }
 0x1f7   : > { %v1163_v45 = vmul.f32 %v1128_v38, %v4113_v18  ;;  %2970 = vmatmul.mubr.bf16.gmra.mrb[68].mxu0 %v1173_v49  ;;  %v1166_v18 = vmul.f32 %v1140_v7, %v4207_v6 }
 0x1f9   : > { %v1174_v58 = vpack.c.bf16 %v1163_v45, %v1162_v40  ;;  %v2735_v28 = vpop.f32.mrb[28].mxu0 }
 0x1fa   : > { %v1136_v30 = vpop.permute.xlu1 %1135  ;;  %v2736_v55 = vpop.f32.mrb[29].mxu0 }
 0x1fb   : > { %v1165_v24 = vmul.f32 %v1136_v30, %v4154_v32  ;;  %v2737_v3 = vadd.f32 %v2736_v55, %v2735_v28  ;;  %v2738_v37 = vpop.f32.mrb[30].mxu0  ;;  %2973 = vmatprep.mubr.bf16.mxu1 %v1174_v58 }
 0x1fc   : > { %v2739_v51 = vpop.f32.mrb[31].mxu0 }
 0x1fd   : > { %v1175_v17 = vpack.c.bf16 %v1165_v24, %v1164_v47  ;;  %v2740_v48 = vadd.f32 %v2739_v51, %v2738_v37 }
 0x1fe   : > { %v1144_v41 = vpop.permute.xlu1 %1143  ;;  %v2787_v27 = vpop.f32.mrb[20].mxu1 }
 0x1ff   : > { %v1167_v4 = vmul.f32 %v1144_v41, %v4196_v63  ;;  %v2788_v29 = vpop.f32.mrb[21].mxu1  ;;  %2974 = vmatmul.mubr.bf16.vlgmr.msra.gmra.mrb[64].mxu1 %v1175_v17 }
 0x200   : > { %v2789_v33 = vadd.f32 %v2788_v29, %v2787_v27  ;;  %v2790_v0 = vpop.f32.mrb[22].mxu1 }
 0x201   : > { %v1176_v35 = vpack.c.bf16 %v1167_v4, %v1166_v18  ;;  %v2791_v53 = vpop.f32.mrb[23].mxu1 }
 0x202   : > { %v4419_v32 = vadd.f32 %v2789_v33, %v4372_v34  ;;  %v2792_v60 = vadd.f32 %v2791_v53, %v2790_v0  ;;  %v1152_v46 = vpop.permute.xlu1 %1151 }
 0x203   : > { %v1169_v9 = vmul.f32 %v1152_v46, %v4585_v10  ;;  %2977 = vmatprep.mubr.bf16.mxu1 %v1176_v35 }
 0x204   : > { %v4424_v6 = vadd.f32 %v2792_v60, %v4379_v15 }
 0x205   : > { %v1177_v63 = vpack.c.bf16 %v1169_v9, %v1168_v8 }
 0x207   : > { %2978 = vmatmul.mubr.bf16.gmra.mrb[68].mxu1 %v1177_v63 }
 0x20d   : > { %v2821_v21 = vpop.f32.mrb[32].mxu0 }
 0x20e   : > { %v2822_v44 = vpop.f32.mrb[33].mxu0 }
 0x20f   : > { %v2823_v56 = vadd.f32 %v2822_v44, %v2821_v21  ;;  %v2824_v13 = vpop.f32.mrb[34].mxu0 }
 0x210   : > { %v2825_v14 = vpop.f32.mrb[35].mxu0 }
 0x211   : > { %v1983_v34 = vadd.f32 %v2823_v56, %v4351_v19  ;;  %v2826_v54 = vadd.f32 %v2825_v14, %v2824_v13  ;;  %v2793_v22 = vpop.f32.mrb[24].mxu1 }
 0x212   : > { %v2794_v16 = vpop.f32.mrb[25].mxu1 }
 0x213   : > { %v1986_v62 = vadd.f32 %v2826_v54, %v4356_v11  ;;  %v2795_v12 = vadd.f32 %v2794_v16, %v2793_v22  ;;  %v2796_v52 = vpop.f32.mrb[26].mxu1 }
 0x214   : > { %v2797_v36 = vpop.f32.mrb[27].mxu1 }
 0x215   : > { %v4429_v15 = vadd.f32 %v2795_v12, %v4397_v1  ;;  %v2798_v23 = vadd.f32 %v2797_v36, %v2796_v52 }
 0x217   : > { %v4432_v42 = vadd.f32 %v2798_v23, %v4400_v20 }
 0x220   : > { %v2827_v2 = vpop.f32.mrb[36].mxu0 }
 0x221   : > { %v2828_v43 = vpop.f32.mrb[37].mxu0 }
 0x222   : > { %v2829_v49 = vadd.f32 %v2828_v43, %v2827_v2  ;;  %v2830_v38 = vpop.f32.mrb[38].mxu0 }
 0x223   : > { %v2831_v19 = vpop.f32.mrb[39].mxu0 }
 0x224   : > { %v1991_v40 = vadd.f32 %v2829_v49, %v4363_v26  ;;  %v2832_v45 = vadd.f32 %v2831_v19, %v2830_v38  ;;  %v2799_v7 = vpop.f32.mrb[28].mxu1 }
 0x225   : > { %v2800_v11 = vpop.f32.mrb[29].mxu1 }
 0x226   : > { %v1994_v58 = vadd.f32 %v2832_v45, %v4367_v31  ;;  %v2801_v28 = vadd.f32 %v2800_v11, %v2799_v7  ;;  %v2802_v30 = vpop.f32.mrb[30].mxu1 }
 0x227   : > { %v2803_v1 = vpop.f32.mrb[31].mxu1 }
 0x228   : > { %v4436_v55 = vadd.f32 %v2801_v28, %v2737_v3  ;;  %v2804_v47 = vadd.f32 %v2803_v1, %v2802_v30 }
 0x22a   : > { %v4438_v20 = vadd.f32 %v2804_v47, %v2740_v48 }
 0x22e   : > { %v2833_v24 = vpop.f32.mrb[40].mxu0 }
 0x22f   : > { %v2834_v37 = vpop.f32.mrb[41].mxu0 }
 0x230   : > { %v2835_v51 = vadd.f32 %v2834_v37, %v2833_v24  ;;  %v2836_v17 = vpop.f32.mrb[42].mxu0 }
 0x231   : > { %v2837_v41 = vpop.f32.mrb[43].mxu0 }
 0x232   : > { %v1999_v26 = vadd.f32 %v2835_v51, %v4370_v59  ;;  %v2838_v27 = vadd.f32 %v2837_v41, %v2836_v17 }
 0x234   : > { %v2002_v18 = vadd.f32 %v2838_v27, %v4377_v39 }
 0x237   : > { %v2885_v4 = vpop.f32.mrb[32].mxu1 }
 0x238   : > { %v2886_v31 = vpop.f32.mrb[33].mxu1 }
 0x239   : > { %v2887_v29 = vadd.f32 %v2886_v31, %v2885_v4  ;;  %v2888_v5 = vpop.f32.mrb[34].mxu1 }
 0x23a   : > { %v2889_v33 = vpop.f32.mrb[35].mxu1 }
 0x23b   : > { %v2890_v3 = vadd.f32 %v2889_v33, %v2888_v5  ;;  %v4442_v0 = vadd.f32 %v2887_v29, %v1983_v34 }
 0x23d   : > { %v4444_v48 = vadd.f32 %v2890_v3, %v1986_v62 }
 0x241   : > { %v2839_v35 = vpop.f32.mrb[44].mxu0 }
 0x242   : > { %v2840_v53 = vpop.f32.mrb[45].mxu0 }
 0x243   : > { %v2841_v60 = vadd.f32 %v2840_v53, %v2839_v35  ;;  %v2842_v46 = vpop.f32.mrb[46].mxu0 }
 0x244   : > { %v2843_v8 = vpop.f32.mrb[47].mxu0 }
 0x245   : > { %v2007_v59 = vadd.f32 %v2841_v60, %v4386_v57  ;;  %v2844_v10 = vadd.f32 %v2843_v8, %v2842_v46 }
 0x247   : > { %v2010_v39 = vadd.f32 %v2844_v10, %v4390_v61 }
 0x24a   : > { %v2891_v9 = vpop.f32.mrb[36].mxu1 }
 0x24b   : > { %v2892_v63 = vpop.f32.mrb[37].mxu1 }
 0x24c   : > { %v2893_v21 = vadd.f32 %v2892_v63, %v2891_v9  ;;  %v2894_v44 = vpop.f32.mrb[38].mxu1 }
 0x24d   : > { %v2895_v56 = vpop.f32.mrb[39].mxu1 }
 0x24e   : > { %v2896_v13 = vadd.f32 %v2895_v56, %v2894_v44  ;;  %v4448_v14 = vadd.f32 %v2893_v21, %v1991_v40 }
 0x250   : > { %v4450_v34 = vadd.f32 %v2896_v13, %v1994_v58 }
 0x254   : > { %v2845_v54 = vpop.f32.mrb[48].mxu0 }
 0x255   : > { %v2846_v22 = vpop.f32.mrb[49].mxu0 }
 0x256   : > { %v2847_v16 = vadd.f32 %v2846_v22, %v2845_v54  ;;  %v2848_v62 = vpop.f32.mrb[50].mxu0 }
 0x257   : > { %v2849_v12 = vpop.f32.mrb[51].mxu0 }
 0x258   : > { %v2015_v57 = vadd.f32 %v2847_v16, %v4403_v25  ;;  %v2850_v52 = vadd.f32 %v2849_v12, %v2848_v62 }
 0x25a   : > { %v2018_v61 = vadd.f32 %v2850_v52, %v4406_v50 }
 0x25d   : > { %v2897_v36 = vpop.f32.mrb[40].mxu1 }
 0x25e   : > { %v2898_v23 = vpop.f32.mrb[41].mxu1 }
 0x25f   : > { %v2899_v2 = vadd.f32 %v2898_v23, %v2897_v36  ;;  %v2900_v43 = vpop.f32.mrb[42].mxu1 }
 0x260   : > { %v2901_v49 = vpop.f32.mrb[43].mxu1 }
 0x261   : > { %v2902_v38 = vadd.f32 %v2901_v49, %v2900_v43  ;;  %v4454_v19 = vadd.f32 %v2899_v2, %v1999_v26 }
 0x263   : > { %v4456_v40 = vadd.f32 %v2902_v38, %v2002_v18 }
 0x267   : > { %v2851_v45 = vpop.f32.mrb[52].mxu0 }
 0x268   : > { %v2852_v7 = vpop.f32.mrb[53].mxu0 }
 0x269   : > { %v2853_v11 = vadd.f32 %v2852_v7, %v2851_v45  ;;  %v2854_v58 = vpop.f32.mrb[54].mxu0 }
 0x26a   : > { %v2855_v28 = vpop.f32.mrb[55].mxu0 }
 0x26b   : > { %v2023_v25 = vadd.f32 %v2853_v11, %v4419_v32  ;;  %v2856_v30 = vadd.f32 %v2855_v28, %v2854_v58 }
 0x26d   : > { %v2026_v50 = vadd.f32 %v2856_v30, %v4424_v6 }
 0x270   : > { %v2903_v1 = vpop.f32.mrb[44].mxu1 }
 0x271   : > { %v2904_v47 = vpop.f32.mrb[45].mxu1 }
 0x272   : > { %v2905_v24 = vadd.f32 %v2904_v47, %v2903_v1  ;;  %v2906_v37 = vpop.f32.mrb[46].mxu1 }
 0x273   : > { %v2907_v51 = vpop.f32.mrb[47].mxu1 }
 0x274   : > { %v2908_v17 = vadd.f32 %v2907_v51, %v2906_v37  ;;  %v4460_v41 = vadd.f32 %v2905_v24, %v2007_v59 }
 0x276   : > { %v4462_v26 = vadd.f32 %v2908_v17, %v2010_v39 }
 0x27a   : > { %v2857_v27 = vpop.f32.mrb[56].mxu0 }
 0x27b   : > { %v2858_v18 = vpop.f32.mrb[57].mxu0 }
 0x27c   : > { %v2859_v4 = vadd.f32 %v2858_v18, %v2857_v27  ;;  %v2860_v31 = vpop.f32.mrb[58].mxu0 }
 0x27d   : > { %v2861_v29 = vpop.f32.mrb[59].mxu0 }
 0x27e   : > { %v2031_v32 = vadd.f32 %v2859_v4, %v4429_v15  ;;  %v2862_v5 = vadd.f32 %v2861_v29, %v2860_v31 }
 0x280   : > { %v2034_v6 = vadd.f32 %v2862_v5, %v4432_v42 }
 0x283   : > { %v2909_v33 = vpop.f32.mrb[48].mxu1 }
 0x284   : > { %v2910_v3 = vpop.f32.mrb[49].mxu1 }
 0x285   : > { %v2911_v35 = vadd.f32 %v2910_v3, %v2909_v33  ;;  %v2912_v53 = vpop.f32.mrb[50].mxu1 }
 0x286   : > { %v2913_v60 = vpop.f32.mrb[51].mxu1 }
 0x287   : > { %v2914_v46 = vadd.f32 %v2913_v60, %v2912_v53  ;;  %v4466_v8 = vadd.f32 %v2911_v35, %v2015_v57 }
 0x289   : > { %v4468_v59 = vadd.f32 %v2914_v46, %v2018_v61 }
 0x28d   : > { %v2863_v10 = vpop.f32.mrb[60].mxu0 }
 0x28e   : > { %v2864_v39 = vpop.f32.mrb[61].mxu0 }
 0x28f   : > { %v2865_v9 = vadd.f32 %v2864_v39, %v2863_v10  ;;  %v2866_v63 = vpop.f32.mrb[62].mxu0 }
 0x290   : > { %v2867_v21 = vpop.f32.mrb[63].mxu0 }
 0x291   : > { %v2039_v15 = vadd.f32 %v2865_v9, %v4436_v55  ;;  %v2868_v44 = vadd.f32 %v2867_v21, %v2866_v63 }
 0x293   : > { %v2042_v42 = vadd.f32 %v2868_v44, %v4438_v20 }
 0x296   : > { %v2915_v56 = vpop.f32.mrb[52].mxu1 }
 0x297   : > { %v2916_v13 = vpop.f32.mrb[53].mxu1 }
 0x298   : > { %v2917_v54 = vadd.f32 %v2916_v13, %v2915_v56  ;;  %v2918_v22 = vpop.f32.mrb[54].mxu1 }
 0x299   : > { %v2919_v16 = vpop.f32.mrb[55].mxu1 }
 0x29a   : > { %v2920_v62 = vadd.f32 %v2919_v16, %v2918_v22  ;;  %v2120_v12 = vadd.f32 %v2917_v54, %v2023_v25 }
 0x29c   : > { %v4472_v57 = vadd.f32 %v2920_v62, %v2026_v50 }
 0x2a9   : > { %v2921_v52 = vpop.f32.mrb[56].mxu1 }
 0x2aa   : > { %v2922_v61 = vpop.f32.mrb[57].mxu1 }
 0x2ab   : > { %v2923_v36 = vadd.f32 %v2922_v61, %v2921_v52  ;;  %v2924_v23 = vpop.f32.mrb[58].mxu1 }
 0x2ac   : > { %v2925_v2 = vpop.f32.mrb[59].mxu1 }
 0x2ad   : > { %v2926_v43 = vadd.f32 %v2925_v2, %v2924_v23  ;;  %v4474_v55 = vadd.f32 %v2923_v36, %v2031_v32 }
 0x2af   : > { %v4476_v49 = vadd.f32 %v2926_v43, %v2034_v6 }
 0x2b2   : > { %v2967_v20 = vpop.f32.mrb[64].mxu0 }
 0x2b3   : > { %v2185_v38 = vadd.f32 %v2967_v20, %v4448_v14  ;;  %v2176_v45 = vpop.f32.mrb[65].mxu0 }
 0x2b4   : > { %v2177_v7 = vadd.f32 %v2176_v45, %v4442_v0  ;;  %v2968_v11 = vpop.f32.mrb[66].mxu0 }
 0x2b5   : > { %v2188_v58 = vadd.f32 %v2968_v11, %v4450_v34  ;;  %v2179_v28 = vpop.f32.mrb[67].mxu0  ;;  %v2342_v0 = vmul.f32 %v2185_v38, %v2185_v38 }
 0x2b6   : > { %v2180_v25 = vadd.f32 %v2179_v28, %v4444_v48  ;;  %v2340_v50 = vmul.f32 %v2177_v7, %v2177_v7 }
 0x2b7   : > { %v2631_v30 = vpack.c.bf16 %v2188_v58, %v2185_v38  ;;  %v2343_v37 = vmul.f32 %v2188_v58, %v2188_v58 }
 0x2b8   : > { %v2626_v14 = vpack.c.bf16 %v2180_v25, %v2177_v7  ;;  %v2319_v1 = vadd.f32 %v2180_v25, %v2177_v7  ;;  %v2341_v47 = vmul.f32 %v2180_v25, %v2180_v25 }
 0x2b9   : > { %2670 = vst [vmem:[%s4486_s23 + $0x8] sm:$0xff] %v2631_v30  }
 0x2ba   : > { %2627 = vst [vmem:[%s4486_s23] sm:$0xff] %v2626_v14   ;;  %v2320_v34 = vadd.f32 %v2319_v1, %v2185_v38  ;;  %v2356_v24 = vadd.f32 %v2341_v47, %v2340_v50 }
 0x2bc   : > { %v2357_v51 = vadd.f32 %v2356_v24, %v2342_v0  ;;  %v2321_v17 = vadd.f32 %v2320_v34, %v2188_v58 }
 0x2be   : > { %v2358_v27 = vadd.f32 %v2357_v51, %v2343_v37 }
 0x2c5   : > { %v2927_v18 = vpop.f32.mrb[60].mxu1 }
 0x2c6   : > { %v2928_v4 = vpop.f32.mrb[61].mxu1 }
 0x2c7   : > { %v2929_v31 = vadd.f32 %v2928_v4, %v2927_v18  ;;  %v2930_v29 = vpop.f32.mrb[62].mxu1 }
 0x2c8   : > { %v2931_v32 = vpop.f32.mrb[63].mxu1 }
 0x2c9   : > { %v2932_v48 = vadd.f32 %v2931_v32, %v2930_v29  ;;  %v2136_v5 = vadd.f32 %v2929_v31, %v2039_v15 }
 0x2ca   : > { %v2971_v6 = vpop.f32.mrb[68].mxu0 }
 0x2cb   : > { %v2201_v33 = vadd.f32 %v2971_v6, %v4460_v41  ;;  %v2192_v3 = vpop.f32.mrb[69].mxu0  ;;  %v2139_v35 = vadd.f32 %v2932_v48, %v2042_v42 }
 0x2cc   : > { %v2193_v53 = vadd.f32 %v2192_v3, %v4454_v19  ;;  %v2972_v60 = vpop.f32.mrb[70].mxu0 }
 0x2cd   : > { %v2204_v46 = vadd.f32 %v2972_v60, %v4462_v26  ;;  %v2195_v10 = vpop.f32.mrb[71].mxu0  ;;  %v2346_v41 = vmul.f32 %v2201_v33, %v2201_v33 }
 0x2ce   : > { %v2322_v39 = vadd.f32 %v2321_v17, %v2193_v53  ;;  %v2344_v9 = vmul.f32 %v2193_v53, %v2193_v53  ;;  %v2196_v63 = vadd.f32 %v2195_v10, %v4456_v40 }
 0x2cf   : > { %v2641_v21 = vpack.c.bf16 %v2204_v46, %v2201_v33  ;;  %v2347_v62 = vmul.f32 %v2204_v46, %v2204_v46 }
 0x2d0   : > { %v2359_v44 = vadd.f32 %v2358_v27, %v2344_v9  ;;  %v2636_v15 = vpack.c.bf16 %v2196_v63, %v2193_v53  ;;  %v2323_v56 = vadd.f32 %v2322_v39, %v2196_v63  ;;  %v2345_v13 = vmul.f32 %v2196_v63, %v2196_v63 }
 0x2d1   : > { %2672 = vst [vmem:[%s4486_s23 + $0x18] sm:$0xff] %v2641_v21  }
 0x2d2   : > { %2671 = vst [vmem:[%s4486_s23 + $0x10] sm:$0xff] %v2636_v15   ;;  %v2324_v54 = vadd.f32 %v2323_v56, %v2201_v33  ;;  %v2360_v42 = vadd.f32 %v2359_v44, %v2345_v13  ;;  %v2975_v22 = vpop.f32.mrb[64].mxu1 }
 0x2d3   : > { %v2217_v19 = vadd.f32 %v2975_v22, %v2120_v12  ;;  %v2208_v16 = vpop.f32.mrb[65].mxu1 }
 0x2d4   : > { %v2361_v26 = vadd.f32 %v2360_v42, %v2346_v41  ;;  %v2209_v52 = vadd.f32 %v2208_v16, %v4466_v8  ;;  %v2325_v40 = vadd.f32 %v2324_v54, %v2204_v46  ;;  %v2976_v61 = vpop.f32.mrb[66].mxu1 }
 0x2d5   : > { %v2220_v36 = vadd.f32 %v2976_v61, %v4472_v57  ;;  %v2211_v23 = vpop.f32.mrb[67].mxu1  ;;  %v2350_v28 = vmul.f32 %v2217_v19, %v2217_v19 }
 0x2d6   : > { %v2326_v2 = vadd.f32 %v2325_v40, %v2209_v52  ;;  %v2348_v43 = vmul.f32 %v2209_v52, %v2209_v52  ;;  %v2362_v20 = vadd.f32 %v2361_v26, %v2347_v62  ;;  %v2212_v38 = vadd.f32 %v2211_v23, %v4468_v59 }
 0x2d7   : > { %v2651_v45 = vpack.c.bf16 %v2220_v36, %v2217_v19  ;;  %v2351_v57 = vmul.f32 %v2220_v36, %v2220_v36 }
 0x2d8   : > { %v2363_v7 = vadd.f32 %v2362_v20, %v2348_v43  ;;  %v2646_v12 = vpack.c.bf16 %v2212_v38, %v2209_v52  ;;  %v2327_v11 = vadd.f32 %v2326_v2, %v2212_v38  ;;  %v2349_v58 = vmul.f32 %v2212_v38, %v2212_v38 }
 0x2d9   : > { %2674 = vst [vmem:[%s4486_s23 + $0x28] sm:$0xff] %v2651_v45  }
 0x2da   : > { %2673 = vst [vmem:[%s4486_s23 + $0x20] sm:$0xff] %v2646_v12   ;;  %v2328_v8 = vadd.f32 %v2327_v11, %v2217_v19  ;;  %v2364_v25 = vadd.f32 %v2363_v7, %v2349_v58  ;;  %v2979_v30 = vpop.f32.mrb[68].mxu1 }
 0x2db   : > { %v2233_v50 = vadd.f32 %v2979_v30, %v2136_v5  ;;  %v2224_v14 = vpop.f32.mrb[69].mxu1 }
 0x2dc   : > { %v2365_v1 = vadd.f32 %v2364_v25, %v2350_v28  ;;  %v2225_v47 = vadd.f32 %v2224_v14, %v4474_v55  ;;  %v2329_v59 = vadd.f32 %v2328_v8, %v2220_v36  ;;  %v2980_v0 = vpop.f32.mrb[70].mxu1 }
 0x2dd   : > { %v2236_v34 = vadd.f32 %v2980_v0, %v2139_v35  ;;  %v2227_v24 = vpop.f32.mrb[71].mxu1  ;;  %v2354_v48 = vmul.f32 %v2233_v50, %v2233_v50 }
 0x2de   : > { %v2330_v37 = vadd.f32 %v2329_v59, %v2225_v47  ;;  %v2352_v51 = vmul.f32 %v2225_v47, %v2225_v47  ;;  %v2366_v17 = vadd.f32 %v2365_v1, %v2351_v57  ;;  %v2228_v27 = vadd.f32 %v2227_v24, %v4476_v49 }
 0x2df   : > { %v2661_v18 = vpack.c.bf16 %v2236_v34, %v2233_v50  ;;  %v2355_v6 = vmul.f32 %v2236_v34, %v2236_v34 }
 0x2e0   : > { %v2367_v4 = vadd.f32 %v2366_v17, %v2352_v51  ;;  %v2656_v31 = vpack.c.bf16 %v2228_v27, %v2225_v47  ;;  %v2331_v29 = vadd.f32 %v2330_v37, %v2228_v27  ;;  %v2353_v32 = vmul.f32 %v2228_v27, %v2228_v27 }
 0x2e1   : > { %2676 = vst [vmem:[%s4486_s23 + $0x38] sm:$0xff] %v2661_v18  }
 0x2e2   : > { %2675 = vst [vmem:[%s4486_s23 + $0x30] sm:$0xff] %v2656_v31   ;;  %v2332_v55 = vadd.f32 %v2331_v29, %v2233_v50  ;;  %v2368_v5 = vadd.f32 %v2367_v4, %v2353_v32 }
 0x2e4   : > { %v2333_v33 = vadd.f32 %v2332_v55, %v2236_v34  ;;  %v2369_v3 = vadd.f32 %v2368_v5, %v2354_v48 }
 0x2e6   : > { %v2334_v35 = vrot.slane %v2333_v33, 4  ;;  %v2370_v53 = vadd.f32 %v2369_v3, %v2355_v6 }
 0x2e8   : > { %v2335_v60 = vadd.f32 %v2334_v35, %v2333_v33  ;;  %v2371_v49 = vrot.slane %v2370_v53, 4 }
 0x2ea   : > { %v2336_v46 = vrot.slane %v2335_v60, 2  ;;  %v2372_v10 = vadd.f32 %v2371_v49, %v2370_v53 }
 0x2ec   : > { %v2337_v39 = vadd.f32 %v2336_v46, %v2335_v60  ;;  %v2373_v9 = vrot.slane %v2372_v10, 2 }
 0x2ee   : > { %v2338_v63 = vrot.slane %v2337_v39, 1  ;;  %v2374_v21 = vadd.f32 %v2373_v9, %v2372_v10 }
 0x2f0   : > { %v2375_v44 = vrot.slane %v2374_v21, 1  ;;  %v2339_v15 = vadd.f32 %v2338_v63, %v2337_v39 }
 0x2f2   : > { %v2376_v56 = vadd.f32 %v2375_v44, %v2374_v21 }
 0x2f4   : > { %v2378_v13 = vsel %vm2377_vm2, %v2339_v15, %v2376_v56 }
 0x2f5   : > { %2379 = vst [vmem:[%s270_s25] sm:$0x3] %v2378_v13 }
 0x2f6 PF: > { %s17_s21 = sadd.s32 1, %s3171_s21  }
 0x2f7   : > { %p14_p5 = scmp.ge.s32.totalorder %s17_s21, 4  }
 0x2f9   :  { %16 = sbr.rel (!%p14_p5) target bundleno = 1 (0x1), region = 82 }

</bundles_post_ra>
